<compile_context>
chip_gen: v7x
topology: tpu7x:2x2x1
jax: 0.10.0
libtpu: 0.0.40
codegen_flags: <defaults>
</compile_context>

<pallas_src>
import jax
import jax.numpy as jnp
from jax import lax
from jax.experimental import pallas as pl
from jax.experimental.pallas import tpu as pltpu


def ffm_kernel(x1_ref, x2_ref, w1_ref, b1_ref, w2_ref, b2_ref, o_ref, pad_ref):
    """One grid step processes one full image (1, H, W, C).

    pad_ref: (H+2, W+2, C) zero-border staging buffer shared by both convs.
    """
    _, H, W, C = x1_ref.shape
    Hp, Wp = H + 2, W + 2

    # Zero only the 1-pixel border (interior is fully overwritten before every
    # windowed read).  Unconditional per-step so it is safe when the batch
    # axis is megacore-sharded (scratch is per-core).
    pad_ref[0:1, :, :] = jnp.zeros((1, Wp, C), jnp.float32)
    pad_ref[Hp - 1:Hp, :, :] = jnp.zeros((1, Wp, C), jnp.float32)
    pad_ref[:, 0:1, :] = jnp.zeros((Hp, 1, C), jnp.float32)
    pad_ref[:, Wp - 1:Wp, :] = jnp.zeros((Hp, 1, C), jnp.float32)

    def conv3x3_relu(w_ref, b_ref):
        # 9 accumulating (H*W, C) x (C, C) matmuls straight off the padded
        # buffer (no materialized im2col).  BN scale is pre-folded into the
        # weights, so only the bias add + ReLU remain after the dots.
        acc = jnp.zeros((H * W, C), jnp.float32)
        for ky in range(3):
            for kx in range(3):
                win = pad_ref[ky:ky + H, kx:kx + W, :].reshape(H * W, C)
                acc += jnp.dot(win, w_ref[ky * 3 + kx],
                               preferred_element_type=jnp.float32)
        y = jnp.maximum(acc + b_ref[...], 0.0)
        return y.reshape(H, W, C)

    # elementwise fuse, staged straight into the padded buffer
    pad_ref[1:H + 1, 1:W + 1, :] = x1_ref[0] * x2_ref[0]
    y1 = conv3x3_relu(w1_ref, b1_ref)

    # second conv reads from the same pad buffer (border still zero)
    pad_ref[1:H + 1, 1:W + 1, :] = y1
    o_ref[0] = conv3x3_relu(w2_ref, b2_ref)


def _fold_params(w_hwio, scale, bias):
    """Fold BN scale into conv weights; return (9, Cin, Cout) taps + (1, Cout) bias."""
    kh, kw, ci, co = w_hwio.shape
    w_folded = (w_hwio * scale).reshape(kh * kw, ci, co)   # tap = ky*3 + kx
    return w_folded, bias.reshape(1, co)


@jax.jit
def ffm_forward(x1_nhwc, x2_nhwc, w1_hwio, s1, b1, w2_hwio, s2, b2):
    N, H, W, C = x1_nhwc.shape

    w1m, b1r = _fold_params(w1_hwio, s1, b1)
    w2m, b2r = _fold_params(w2_hwio, s2, b2)

    img_spec = pl.BlockSpec((1, H, W, C), lambda n: (n, 0, 0, 0))
    w_spec = pl.BlockSpec((9, C, C), lambda n: (0, 0, 0))
    b_spec = pl.BlockSpec((1, C), lambda n: (0, 0))

    return pl.pallas_call(
        ffm_kernel,
        out_shape=jax.ShapeDtypeStruct((N, H, W, C), jnp.float32),
        grid_spec=pltpu.PrefetchScalarGridSpec(
            num_scalar_prefetch=0,
            grid=(N,),
            in_specs=[img_spec, img_spec,
                      w_spec, b_spec,
                      w_spec, b_spec],
            out_specs=img_spec,
            scratch_shapes=[
                pltpu.VMEM((H + 2, W + 2, C), jnp.float32),   # shared pad buffer
            ],
        ),
        compiler_params=pltpu.CompilerParams(
            # batch axis is fully independent -> megacore-shardable on v7x
            dimension_semantics=("parallel",),
        ),
    )(x1_nhwc, x2_nhwc, w1m, b1r, w2m, b2r)


# ----------------------------- reference (plain JAX) -------------------------
def _conv_bn_relu_ref(x, w_hwio, scale, bias):
    y = lax.conv_general_dilated(
        x, w_hwio, window_strides=(1, 1), padding="SAME",
        dimension_numbers=("NHWC", "HWIO", "NHWC"),
        precision=lax.Precision.HIGHEST)
    return jnp.maximum(y * scale + bias, 0.0)


def ffm_ref(x1, x2, w1_hwio, s1, b1, w2_hwio, s2, b2):
    out = x1 * x2
    out = _conv_bn_relu_ref(out, w1_hwio, s1, b1)
    out = _conv_bn_relu_ref(out, w2_hwio, s2, b2)
    return out


# ----------------------------- parameter init --------------------------------
def make_bn_scale_bias(key, C, eps=1e-3):
    k1, k2, k3, k4 = jax.random.split(key, 4)
    gamma = jax.random.uniform(k1, (C,), jnp.float32, 0.5, 1.5)
    beta = jax.random.normal(k2, (C,), jnp.float32) * 0.1
    running_mean = jax.random.normal(k3, (C,), jnp.float32) * 0.1
    running_var = jax.random.uniform(k4, (C,), jnp.float32, 0.5, 1.5)
    scale = gamma / jnp.sqrt(running_var + eps)
    bias = beta - running_mean * scale
    return scale, bias


if __name__ == "__main__":
    N, C, H, W = 2, 8, 16, 16

    key = jax.random.PRNGKey(0)
    kx1, kx2, kw1, kw2, kb1, kb2 = jax.random.split(key, 6)

    # PyTorch-style NCHW inputs
    x1_nchw = jax.random.normal(kx1, (N, C, H, W), jnp.float32)
    x2_nchw = jax.random.normal(kx2, (N, C, H, W), jnp.float32)

    # Conv weights: HWIO (3, 3, C_in, C_out), deterministic init
    w1_hwio = jax.random.normal(kw1, (3, 3, C, C), jnp.float32) * 0.1
    w2_hwio = jax.random.normal(kw2, (3, 3, C, C), jnp.float32) * 0.1

    # folded BatchNorm (inference) scale / bias, eps = 0.001
    s1, b1 = make_bn_scale_bias(kb1, C)
    s2, b2 = make_bn_scale_bias(kb2, C)

    # kernel works in NHWC
    x1 = jnp.transpose(x1_nchw, (0, 2, 3, 1))
    x2 = jnp.transpose(x2_nchw, (0, 2, 3, 1))

    out = ffm_forward(x1, x2, w1_hwio, s1, b1, w2_hwio, s2, b2)
    out = jax.block_until_ready(out)

    ref = ffm_ref(x1, x2, w1_hwio, s1, b1, w2_hwio, s2, b2)
    assert out.shape == (N, H, W, C)
    assert jnp.allclose(out, ref, atol=1e-4, rtol=1e-4), (
        float(jnp.max(jnp.abs(out - ref))))

    print("KERNEL_OK")
</pallas_src>

<mosaic_0001>
module attributes {stable_mosaic.version = 11 : i64} {
  func.func @ffm_kernel(%arg0: i32, %arg1: memref<1x16x16x8xf32, #tpu.memory_space<vmem>>, %arg2: memref<1x16x16x8xf32, #tpu.memory_space<vmem>>, %arg3: memref<9x8x8xf32, #tpu.memory_space<vmem>>, %arg4: memref<1x8xf32, #tpu.memory_space<vmem>>, %arg5: memref<9x8x8xf32, #tpu.memory_space<vmem>>, %arg6: memref<1x8xf32, #tpu.memory_space<vmem>>, %arg7: memref<1x16x16x8xf32, #tpu.memory_space<vmem>>, %arg8: memref<18x18x8xf32, #tpu.memory_space<vmem>>) attributes {dimension_semantics = [#tpu.dimension_semantics<parallel>], iteration_bounds = array<i64: 2>, scalar_prefetch = 0 : i64, scratch_operands = 1 : i64, tpu.core_type = #tpu.core_type<tc>, window_params = [{transform_indices = @transform_0, window_bounds = array<i64: 1, 16, 16, 8>}, {transform_indices = @transform_1, window_bounds = array<i64: 1, 16, 16, 8>}, {pipeline_mode = #tpu.pipeline_mode<synchronous>, transform_indices = @transform_2, window_bounds = array<i64: 9, 8, 8>}, {pipeline_mode = #tpu.pipeline_mode<synchronous>, transform_indices = @transform_3, window_bounds = array<i64: 1, 8>}, {pipeline_mode = #tpu.pipeline_mode<synchronous>, transform_indices = @transform_4, window_bounds = array<i64: 9, 8, 8>}, {pipeline_mode = #tpu.pipeline_mode<synchronous>, transform_indices = @transform_5, window_bounds = array<i64: 1, 8>}, {transform_indices = @transform_6, window_bounds = array<i64: 1, 16, 16, 8>}]} {
    %cst = arith.constant 0.000000e+00 : f32
    %0 = vector.broadcast %cst : f32 to vector<1x18x8xf32>
    %c0 = arith.constant 0 : index
    %c0_0 = arith.constant 0 : index
    %c0_1 = arith.constant 0 : index
    %1 = vector.load %arg8[%c0, %c0_0, %c0_1] : memref<18x18x8xf32, #tpu.memory_space<vmem>>, vector<1x18x8xf32>
    tpu.vector_store %arg8[%c0, %c0_0, %c0_1], %0 {strides = array<i32>} : memref<18x18x8xf32, #tpu.memory_space<vmem>>, vector<1x18x8xf32>,
    %cst_2 = arith.constant 0.000000e+00 : f32
    %2 = vector.broadcast %cst_2 : f32 to vector<1x18x8xf32>
    %c17 = arith.constant 17 : index
    %c0_3 = arith.constant 0 : index
    %c0_4 = arith.constant 0 : index
    %3 = vector.load %arg8[%c17, %c0_3, %c0_4] : memref<18x18x8xf32, #tpu.memory_space<vmem>>, vector<1x18x8xf32>
    tpu.vector_store %arg8[%c17, %c0_3, %c0_4], %2 {strides = array<i32>} : memref<18x18x8xf32, #tpu.memory_space<vmem>>, vector<1x18x8xf32>,
    %cst_5 = arith.constant 0.000000e+00 : f32
    %4 = vector.broadcast %cst_5 : f32 to vector<18x1x8xf32>
    %c0_6 = arith.constant 0 : index
    %c0_7 = arith.constant 0 : index
    %c0_8 = arith.constant 0 : index
    %5 = vector.load %arg8[%c0_6, %c0_7, %c0_8] : memref<18x18x8xf32, #tpu.memory_space<vmem>>, vector<18x1x8xf32>
    tpu.vector_store %arg8[%c0_6, %c0_7, %c0_8], %4 {strides = array<i32>} : memref<18x18x8xf32, #tpu.memory_space<vmem>>, vector<18x1x8xf32>,
    %cst_9 = arith.constant 0.000000e+00 : f32
    %6 = vector.broadcast %cst_9 : f32 to vector<18x1x8xf32>
    %c0_10 = arith.constant 0 : index
    %c17_11 = arith.constant 17 : index
    %c0_12 = arith.constant 0 : index
    %7 = vector.load %arg8[%c0_10, %c17_11, %c0_12] : memref<18x18x8xf32, #tpu.memory_space<vmem>>, vector<18x1x8xf32>
    tpu.vector_store %arg8[%c0_10, %c17_11, %c0_12], %6 {strides = array<i32>} : memref<18x18x8xf32, #tpu.memory_space<vmem>>, vector<18x1x8xf32>,
    %c0_13 = arith.constant 0 : index
    %c0_14 = arith.constant 0 : index
    %c0_15 = arith.constant 0 : index
    %c0_16 = arith.constant 0 : index
    %8 = vector.load %arg1[%c0_13, %c0_14, %c0_15, %c0_16] : memref<1x16x16x8xf32, #tpu.memory_space<vmem>>, vector<1x16x16x8xf32>
    %9 = vector.shape_cast %8 : vector<1x16x16x8xf32> to vector<16x16x8xf32>
    %c0_17 = arith.constant 0 : index
    %c0_18 = arith.constant 0 : index
    %c0_19 = arith.constant 0 : index
    %c0_20 = arith.constant 0 : index
    %10 = vector.load %arg2[%c0_17, %c0_18, %c0_19, %c0_20] : memref<1x16x16x8xf32, #tpu.memory_space<vmem>>, vector<1x16x16x8xf32>
    %11 = vector.shape_cast %10 : vector<1x16x16x8xf32> to vector<16x16x8xf32>
    %12 = arith.mulf %9, %11 : vector<16x16x8xf32>
    %c1 = arith.constant 1 : index
    %c1_21 = arith.constant 1 : index
    %c0_22 = arith.constant 0 : index
    %13 = vector.load %arg8[%c1, %c1_21, %c0_22] : memref<18x18x8xf32, #tpu.memory_space<vmem>>, vector<16x16x8xf32>
    tpu.vector_store %arg8[%c1, %c1_21, %c0_22], %12 {strides = array<i32>} : memref<18x18x8xf32, #tpu.memory_space<vmem>>, vector<16x16x8xf32>,
    %cst_23 = arith.constant 0.000000e+00 : f32
    %14 = vector.broadcast %cst_23 : f32 to vector<256x8xf32>
    %c0_24 = arith.constant 0 : index
    %c0_25 = arith.constant 0 : index
    %c0_26 = arith.constant 0 : index
    %15 = vector.load %arg8[%c0_24, %c0_25, %c0_26] : memref<18x18x8xf32, #tpu.memory_space<vmem>>, vector<16x16x8xf32>
    %16 = vector.shape_cast %15 : vector<16x16x8xf32> to vector<256x8xf32>
    %c0_27 = arith.constant 0 : index
    %c0_28 = arith.constant 0 : index
    %c0_29 = arith.constant 0 : index
    %17 = vector.load %arg3[%c0_27, %c0_28, %c0_29] : memref<9x8x8xf32, #tpu.memory_space<vmem>>, vector<1x8x8xf32>
    %18 = vector.shape_cast %17 : vector<1x8x8xf32> to vector<8x8xf32>
    %cst_30 = arith.constant dense<0.000000e+00> : vector<256x8xf32>
    %19 = tpu.matmul %16, %18, %cst_30 {dimension_numbers = #tpu.dot_dimension_numbers<[1], [0], [0], [1], [0, 0, 1, 1], [], []>} : vector<256x8xf32>, vector<8x8xf32>, vector<256x8xf32> -> vector<256x8xf32>
    %20 = arith.addf %14, %19 : vector<256x8xf32>
    %c0_31 = arith.constant 0 : index
    %c1_32 = arith.constant 1 : index
    %c0_33 = arith.constant 0 : index
    %21 = vector.load %arg8[%c0_31, %c1_32, %c0_33] : memref<18x18x8xf32, #tpu.memory_space<vmem>>, vector<16x16x8xf32>
    %22 = vector.shape_cast %21 : vector<16x16x8xf32> to vector<256x8xf32>
    %c1_34 = arith.constant 1 : index
    %c0_35 = arith.constant 0 : index
    %c0_36 = arith.constant 0 : index
    %23 = vector.load %arg3[%c1_34, %c0_35, %c0_36] : memref<9x8x8xf32, #tpu.memory_space<vmem>>, vector<1x8x8xf32>
    %24 = vector.shape_cast %23 : vector<1x8x8xf32> to vector<8x8xf32>
    %cst_37 = arith.constant dense<0.000000e+00> : vector<256x8xf32>
    %25 = tpu.matmul %22, %24, %cst_37 {dimension_numbers = #tpu.dot_dimension_numbers<[1], [0], [0], [1], [0, 0, 1, 1], [], []>} : vector<256x8xf32>, vector<8x8xf32>, vector<256x8xf32> -> vector<256x8xf32>
    %26 = arith.addf %20, %25 : vector<256x8xf32>
    %c0_38 = arith.constant 0 : index
    %c2 = arith.constant 2 : index
    %c0_39 = arith.constant 0 : index
    %27 = vector.load %arg8[%c0_38, %c2, %c0_39] : memref<18x18x8xf32, #tpu.memory_space<vmem>>, vector<16x16x8xf32>
    %28 = vector.shape_cast %27 : vector<16x16x8xf32> to vector<256x8xf32>
    %c2_40 = arith.constant 2 : index
    %c0_41 = arith.constant 0 : index
    %c0_42 = arith.constant 0 : index
    %29 = vector.load %arg3[%c2_40, %c0_41, %c0_42] : memref<9x8x8xf32, #tpu.memory_space<vmem>>, vector<1x8x8xf32>
    %30 = vector.shape_cast %29 : vector<1x8x8xf32> to vector<8x8xf32>
    %cst_43 = arith.constant dense<0.000000e+00> : vector<256x8xf32>
    %31 = tpu.matmul %28, %30, %cst_43 {dimension_numbers = #tpu.dot_dimension_numbers<[1], [0], [0], [1], [0, 0, 1, 1], [], []>} : vector<256x8xf32>, vector<8x8xf32>, vector<256x8xf32> -> vector<256x8xf32>
    %32 = arith.addf %26, %31 : vector<256x8xf32>
    %c1_44 = arith.constant 1 : index
    %c0_45 = arith.constant 0 : index
    %c0_46 = arith.constant 0 : index
    %33 = vector.load %arg8[%c1_44, %c0_45, %c0_46] : memref<18x18x8xf32, #tpu.memory_space<vmem>>, vector<16x16x8xf32>
    %34 = vector.shape_cast %33 : vector<16x16x8xf32> to vector<256x8xf32>
    %c3 = arith.constant 3 : index
    %c0_47 = arith.constant 0 : index
    %c0_48 = arith.constant 0 : index
    %35 = vector.load %arg3[%c3, %c0_47, %c0_48] : memref<9x8x8xf32, #tpu.memory_space<vmem>>, vector<1x8x8xf32>
    %36 = vector.shape_cast %35 : vector<1x8x8xf32> to vector<8x8xf32>
    %cst_49 = arith.constant dense<0.000000e+00> : vector<256x8xf32>
    %37 = tpu.matmul %34, %36, %cst_49 {dimension_numbers = #tpu.dot_dimension_numbers<[1], [0], [0], [1], [0, 0, 1, 1], [], []>} : vector<256x8xf32>, vector<8x8xf32>, vector<256x8xf32> -> vector<256x8xf32>
    %38 = arith.addf %32, %37 : vector<256x8xf32>
    %c1_50 = arith.constant 1 : index
    %c1_51 = arith.constant 1 : index
    %c0_52 = arith.constant 0 : index
    %39 = vector.load %arg8[%c1_50, %c1_51, %c0_52] : memref<18x18x8xf32, #tpu.memory_space<vmem>>, vector<16x16x8xf32>
    %40 = vector.shape_cast %39 : vector<16x16x8xf32> to vector<256x8xf32>
    %c4 = arith.constant 4 : index
    %c0_53 = arith.constant 0 : index
    %c0_54 = arith.constant 0 : index
    %41 = vector.load %arg3[%c4, %c0_53, %c0_54] : memref<9x8x8xf32, #tpu.memory_space<vmem>>, vector<1x8x8xf32>
    %42 = vector.shape_cast %41 : vector<1x8x8xf32> to vector<8x8xf32>
    %cst_55 = arith.constant dense<0.000000e+00> : vector<256x8xf32>
    %43 = tpu.matmul %40, %42, %cst_55 {dimension_numbers = #tpu.dot_dimension_numbers<[1], [0], [0], [1], [0, 0, 1, 1], [], []>} : vector<256x8xf32>, vector<8x8xf32>, vector<256x8xf32> -> vector<256x8xf32>
    %44 = arith.addf %38, %43 : vector<256x8xf32>
    %c1_56 = arith.constant 1 : index
    %c2_57 = arith.constant 2 : index
    %c0_58 = arith.constant 0 : index
    %45 = vector.load %arg8[%c1_56, %c2_57, %c0_58] : memref<18x18x8xf32, #tpu.memory_space<vmem>>, vector<16x16x8xf32>
    %46 = vector.shape_cast %45 : vector<16x16x8xf32> to vector<256x8xf32>
    %c5 = arith.constant 5 : index
    %c0_59 = arith.constant 0 : index
    %c0_60 = arith.constant 0 : index
    %47 = vector.load %arg3[%c5, %c0_59, %c0_60] : memref<9x8x8xf32, #tpu.memory_space<vmem>>, vector<1x8x8xf32>
    %48 = vector.shape_cast %47 : vector<1x8x8xf32> to vector<8x8xf32>
    %cst_61 = arith.constant dense<0.000000e+00> : vector<256x8xf32>
    %49 = tpu.matmul %46, %48, %cst_61 {dimension_numbers = #tpu.dot_dimension_numbers<[1], [0], [0], [1], [0, 0, 1, 1], [], []>} : vector<256x8xf32>, vector<8x8xf32>, vector<256x8xf32> -> vector<256x8xf32>
    %50 = arith.addf %44, %49 : vector<256x8xf32>
    %c2_62 = arith.constant 2 : index
    %c0_63 = arith.constant 0 : index
    %c0_64 = arith.constant 0 : index
    %51 = vector.load %arg8[%c2_62, %c0_63, %c0_64] : memref<18x18x8xf32, #tpu.memory_space<vmem>>, vector<16x16x8xf32>
    %52 = vector.shape_cast %51 : vector<16x16x8xf32> to vector<256x8xf32>
    %c6 = arith.constant 6 : index
    %c0_65 = arith.constant 0 : index
    %c0_66 = arith.constant 0 : index
    %53 = vector.load %arg3[%c6, %c0_65, %c0_66] : memref<9x8x8xf32, #tpu.memory_space<vmem>>, vector<1x8x8xf32>
    %54 = vector.shape_cast %53 : vector<1x8x8xf32> to vector<8x8xf32>
    %cst_67 = arith.constant dense<0.000000e+00> : vector<256x8xf32>
    %55 = tpu.matmul %52, %54, %cst_67 {dimension_numbers = #tpu.dot_dimension_numbers<[1], [0], [0], [1], [0, 0, 1, 1], [], []>} : vector<256x8xf32>, vector<8x8xf32>, vector<256x8xf32> -> vector<256x8xf32>
    %56 = arith.addf %50, %55 : vector<256x8xf32>
    %c2_68 = arith.constant 2 : index
    %c1_69 = arith.constant 1 : index
    %c0_70 = arith.constant 0 : index
    %57 = vector.load %arg8[%c2_68, %c1_69, %c0_70] : memref<18x18x8xf32, #tpu.memory_space<vmem>>, vector<16x16x8xf32>
    %58 = vector.shape_cast %57 : vector<16x16x8xf32> to vector<256x8xf32>
    %c7 = arith.constant 7 : index
    %c0_71 = arith.constant 0 : index
    %c0_72 = arith.constant 0 : index
    %59 = vector.load %arg3[%c7, %c0_71, %c0_72] : memref<9x8x8xf32, #tpu.memory_space<vmem>>, vector<1x8x8xf32>
    %60 = vector.shape_cast %59 : vector<1x8x8xf32> to vector<8x8xf32>
    %cst_73 = arith.constant dense<0.000000e+00> : vector<256x8xf32>
    %61 = tpu.matmul %58, %60, %cst_73 {dimension_numbers = #tpu.dot_dimension_numbers<[1], [0], [0], [1], [0, 0, 1, 1], [], []>} : vector<256x8xf32>, vector<8x8xf32>, vector<256x8xf32> -> vector<256x8xf32>
    %62 = arith.addf %56, %61 : vector<256x8xf32>
    %c2_74 = arith.constant 2 : index
    %c2_75 = arith.constant 2 : index
    %c0_76 = arith.constant 0 : index
    %63 = vector.load %arg8[%c2_74, %c2_75, %c0_76] : memref<18x18x8xf32, #tpu.memory_space<vmem>>, vector<16x16x8xf32>
    %64 = vector.shape_cast %63 : vector<16x16x8xf32> to vector<256x8xf32>
    %c8 = arith.constant 8 : index
    %c0_77 = arith.constant 0 : index
    %c0_78 = arith.constant 0 : index
    %65 = vector.load %arg3[%c8, %c0_77, %c0_78] : memref<9x8x8xf32, #tpu.memory_space<vmem>>, vector<1x8x8xf32>
    %66 = vector.shape_cast %65 : vector<1x8x8xf32> to vector<8x8xf32>
    %cst_79 = arith.constant dense<0.000000e+00> : vector<256x8xf32>
    %67 = tpu.matmul %64, %66, %cst_79 {dimension_numbers = #tpu.dot_dimension_numbers<[1], [0], [0], [1], [0, 0, 1, 1], [], []>} : vector<256x8xf32>, vector<8x8xf32>, vector<256x8xf32> -> vector<256x8xf32>
    %68 = arith.addf %62, %67 : vector<256x8xf32>
    %c0_80 = arith.constant 0 : index
    %c0_81 = arith.constant 0 : index
    %69 = vector.load %arg4[%c0_80, %c0_81] : memref<1x8xf32, #tpu.memory_space<vmem>>, vector<1x8xf32>
    %70 = vector.broadcast %69 : vector<1x8xf32> to vector<256x8xf32>
    %71 = arith.addf %68, %70 : vector<256x8xf32>
    %cst_82 = arith.constant 0.000000e+00 : f32
    %72 = vector.broadcast %cst_82 : f32 to vector<256x8xf32>
    %73 = arith.maximumf %71, %72 : vector<256x8xf32>
    %74 = vector.shape_cast %73 : vector<256x8xf32> to vector<16x16x8xf32>
    %c1_83 = arith.constant 1 : index
    %c1_84 = arith.constant 1 : index
    %c0_85 = arith.constant 0 : index
    %75 = vector.load %arg8[%c1_83, %c1_84, %c0_85] : memref<18x18x8xf32, #tpu.memory_space<vmem>>, vector<16x16x8xf32>
    tpu.vector_store %arg8[%c1_83, %c1_84, %c0_85], %74 {strides = array<i32>} : memref<18x18x8xf32, #tpu.memory_space<vmem>>, vector<16x16x8xf32>,
    %cst_86 = arith.constant 0.000000e+00 : f32
    %76 = vector.broadcast %cst_86 : f32 to vector<256x8xf32>
    %c0_87 = arith.constant 0 : index
    %c0_88 = arith.constant 0 : index
    %c0_89 = arith.constant 0 : index
    %77 = vector.load %arg8[%c0_87, %c0_88, %c0_89] : memref<18x18x8xf32, #tpu.memory_space<vmem>>, vector<16x16x8xf32>
    %78 = vector.shape_cast %77 : vector<16x16x8xf32> to vector<256x8xf32>
    %c0_90 = arith.constant 0 : index
    %c0_91 = arith.constant 0 : index
    %c0_92 = arith.constant 0 : index
    %79 = vector.load %arg5[%c0_90, %c0_91, %c0_92] : memref<9x8x8xf32, #tpu.memory_space<vmem>>, vector<1x8x8xf32>
    %80 = vector.shape_cast %79 : vector<1x8x8xf32> to vector<8x8xf32>
    %cst_93 = arith.constant dense<0.000000e+00> : vector<256x8xf32>
    %81 = tpu.matmul %78, %80, %cst_93 {dimension_numbers = #tpu.dot_dimension_numbers<[1], [0], [0], [1], [0, 0, 1, 1], [], []>} : vector<256x8xf32>, vector<8x8xf32>, vector<256x8xf32> -> vector<256x8xf32>
    %82 = arith.addf %76, %81 : vector<256x8xf32>
    %c0_94 = arith.constant 0 : index
    %c1_95 = arith.constant 1 : index
    %c0_96 = arith.constant 0 : index
    %83 = vector.load %arg8[%c0_94, %c1_95, %c0_96] : memref<18x18x8xf32, #tpu.memory_space<vmem>>, vector<16x16x8xf32>
    %84 = vector.shape_cast %83 : vector<16x16x8xf32> to vector<256x8xf32>
    %c1_97 = arith.constant 1 : index
    %c0_98 = arith.constant 0 : index
    %c0_99 = arith.constant 0 : index
    %85 = vector.load %arg5[%c1_97, %c0_98, %c0_99] : memref<9x8x8xf32, #tpu.memory_space<vmem>>, vector<1x8x8xf32>
    %86 = vector.shape_cast %85 : vector<1x8x8xf32> to vector<8x8xf32>
    %cst_100 = arith.constant dense<0.000000e+00> : vector<256x8xf32>
    %87 = tpu.matmul %84, %86, %cst_100 {dimension_numbers = #tpu.dot_dimension_numbers<[1], [0], [0], [1], [0, 0, 1, 1], [], []>} : vector<256x8xf32>, vector<8x8xf32>, vector<256x8xf32> -> vector<256x8xf32>
    %88 = arith.addf %82, %87 : vector<256x8xf32>
    %c0_101 = arith.constant 0 : index
    %c2_102 = arith.constant 2 : index
    %c0_103 = arith.constant 0 : index
    %89 = vector.load %arg8[%c0_101, %c2_102, %c0_103] : memref<18x18x8xf32, #tpu.memory_space<vmem>>, vector<16x16x8xf32>
    %90 = vector.shape_cast %89 : vector<16x16x8xf32> to vector<256x8xf32>
    %c2_104 = arith.constant 2 : index
    %c0_105 = arith.constant 0 : index
    %c0_106 = arith.constant 0 : index
    %91 = vector.load %arg5[%c2_104, %c0_105, %c0_106] : memref<9x8x8xf32, #tpu.memory_space<vmem>>, vector<1x8x8xf32>
    %92 = vector.shape_cast %91 : vector<1x8x8xf32> to vector<8x8xf32>
    %cst_107 = arith.constant dense<0.000000e+00> : vector<256x8xf32>
    %93 = tpu.matmul %90, %92, %cst_107 {dimension_numbers = #tpu.dot_dimension_numbers<[1], [0], [0], [1], [0, 0, 1, 1], [], []>} : vector<256x8xf32>, vector<8x8xf32>, vector<256x8xf32> -> vector<256x8xf32>
    %94 = arith.addf %88, %93 : vector<256x8xf32>
    %c1_108 = arith.constant 1 : index
    %c0_109 = arith.constant 0 : index
    %c0_110 = arith.constant 0 : index
    %95 = vector.load %arg8[%c1_108, %c0_109, %c0_110] : memref<18x18x8xf32, #tpu.memory_space<vmem>>, vector<16x16x8xf32>
    %96 = vector.shape_cast %95 : vector<16x16x8xf32> to vector<256x8xf32>
    %c3_111 = arith.constant 3 : index
    %c0_112 = arith.constant 0 : index
    %c0_113 = arith.constant 0 : index
    %97 = vector.load %arg5[%c3_111, %c0_112, %c0_113] : memref<9x8x8xf32, #tpu.memory_space<vmem>>, vector<1x8x8xf32>
    %98 = vector.shape_cast %97 : vector<1x8x8xf32> to vector<8x8xf32>
    %cst_114 = arith.constant dense<0.000000e+00> : vector<256x8xf32>
    %99 = tpu.matmul %96, %98, %cst_114 {dimension_numbers = #tpu.dot_dimension_numbers<[1], [0], [0], [1], [0, 0, 1, 1], [], []>} : vector<256x8xf32>, vector<8x8xf32>, vector<256x8xf32> -> vector<256x8xf32>
    %100 = arith.addf %94, %99 : vector<256x8xf32>
    %c1_115 = arith.constant 1 : index
    %c1_116 = arith.constant 1 : index
    %c0_117 = arith.constant 0 : index
    %101 = vector.load %arg8[%c1_115, %c1_116, %c0_117] : memref<18x18x8xf32, #tpu.memory_space<vmem>>, vector<16x16x8xf32>
    %102 = vector.shape_cast %101 : vector<16x16x8xf32> to vector<256x8xf32>
    %c4_118 = arith.constant 4 : index
    %c0_119 = arith.constant 0 : index
    %c0_120 = arith.constant 0 : index
    %103 = vector.load %arg5[%c4_118, %c0_119, %c0_120] : memref<9x8x8xf32, #tpu.memory_space<vmem>>, vector<1x8x8xf32>
    %104 = vector.shape_cast %103 : vector<1x8x8xf32> to vector<8x8xf32>
    %cst_121 = arith.constant dense<0.000000e+00> : vector<256x8xf32>
    %105 = tpu.matmul %102, %104, %cst_121 {dimension_numbers = #tpu.dot_dimension_numbers<[1], [0], [0], [1], [0, 0, 1, 1], [], []>} : vector<256x8xf32>, vector<8x8xf32>, vector<256x8xf32> -> vector<256x8xf32>
    %106 = arith.addf %100, %105 : vector<256x8xf32>
    %c1_122 = arith.constant 1 : index
    %c2_123 = arith.constant 2 : index
    %c0_124 = arith.constant 0 : index
    %107 = vector.load %arg8[%c1_122, %c2_123, %c0_124] : memref<18x18x8xf32, #tpu.memory_space<vmem>>, vector<16x16x8xf32>
    %108 = vector.shape_cast %107 : vector<16x16x8xf32> to vector<256x8xf32>
    %c5_125 = arith.constant 5 : index
    %c0_126 = arith.constant 0 : index
    %c0_127 = arith.constant 0 : index
    %109 = vector.load %arg5[%c5_125, %c0_126, %c0_127] : memref<9x8x8xf32, #tpu.memory_space<vmem>>, vector<1x8x8xf32>
    %110 = vector.shape_cast %109 : vector<1x8x8xf32> to vector<8x8xf32>
    %cst_128 = arith.constant dense<0.000000e+00> : vector<256x8xf32>
    %111 = tpu.matmul %108, %110, %cst_128 {dimension_numbers = #tpu.dot_dimension_numbers<[1], [0], [0], [1], [0, 0, 1, 1], [], []>} : vector<256x8xf32>, vector<8x8xf32>, vector<256x8xf32> -> vector<256x8xf32>
    %112 = arith.addf %106, %111 : vector<256x8xf32>
    %c2_129 = arith.constant 2 : index
    %c0_130 = arith.constant 0 : index
    %c0_131 = arith.constant 0 : index
    %113 = vector.load %arg8[%c2_129, %c0_130, %c0_131] : memref<18x18x8xf32, #tpu.memory_space<vmem>>, vector<16x16x8xf32>
    %114 = vector.shape_cast %113 : vector<16x16x8xf32> to vector<256x8xf32>
    %c6_132 = arith.constant 6 : index
    %c0_133 = arith.constant 0 : index
    %c0_134 = arith.constant 0 : index
    %115 = vector.load %arg5[%c6_132, %c0_133, %c0_134] : memref<9x8x8xf32, #tpu.memory_space<vmem>>, vector<1x8x8xf32>
    %116 = vector.shape_cast %115 : vector<1x8x8xf32> to vector<8x8xf32>
    %cst_135 = arith.constant dense<0.000000e+00> : vector<256x8xf32>
    %117 = tpu.matmul %114, %116, %cst_135 {dimension_numbers = #tpu.dot_dimension_numbers<[1], [0], [0], [1], [0, 0, 1, 1], [], []>} : vector<256x8xf32>, vector<8x8xf32>, vector<256x8xf32> -> vector<256x8xf32>
    %118 = arith.addf %112, %117 : vector<256x8xf32>
    %c2_136 = arith.constant 2 : index
    %c1_137 = arith.constant 1 : index
    %c0_138 = arith.constant 0 : index
    %119 = vector.load %arg8[%c2_136, %c1_137, %c0_138] : memref<18x18x8xf32, #tpu.memory_space<vmem>>, vector<16x16x8xf32>
    %120 = vector.shape_cast %119 : vector<16x16x8xf32> to vector<256x8xf32>
    %c7_139 = arith.constant 7 : index
    %c0_140 = arith.constant 0 : index
    %c0_141 = arith.constant 0 : index
    %121 = vector.load %arg5[%c7_139, %c0_140, %c0_141] : memref<9x8x8xf32, #tpu.memory_space<vmem>>, vector<1x8x8xf32>
    %122 = vector.shape_cast %121 : vector<1x8x8xf32> to vector<8x8xf32>
    %cst_142 = arith.constant dense<0.000000e+00> : vector<256x8xf32>
    %123 = tpu.matmul %120, %122, %cst_142 {dimension_numbers = #tpu.dot_dimension_numbers<[1], [0], [0], [1], [0, 0, 1, 1], [], []>} : vector<256x8xf32>, vector<8x8xf32>, vector<256x8xf32> -> vector<256x8xf32>
    %124 = arith.addf %118, %123 : vector<256x8xf32>
    %c2_143 = arith.constant 2 : index
    %c2_144 = arith.constant 2 : index
    %c0_145 = arith.constant 0 : index
    %125 = vector.load %arg8[%c2_143, %c2_144, %c0_145] : memref<18x18x8xf32, #tpu.memory_space<vmem>>, vector<16x16x8xf32>
    %126 = vector.shape_cast %125 : vector<16x16x8xf32> to vector<256x8xf32>
    %c8_146 = arith.constant 8 : index
    %c0_147 = arith.constant 0 : index
    %c0_148 = arith.constant 0 : index
    %127 = vector.load %arg5[%c8_146, %c0_147, %c0_148] : memref<9x8x8xf32, #tpu.memory_space<vmem>>, vector<1x8x8xf32>
    %128 = vector.shape_cast %127 : vector<1x8x8xf32> to vector<8x8xf32>
    %cst_149 = arith.constant dense<0.000000e+00> : vector<256x8xf32>
    %129 = tpu.matmul %126, %128, %cst_149 {dimension_numbers = #tpu.dot_dimension_numbers<[1], [0], [0], [1], [0, 0, 1, 1], [], []>} : vector<256x8xf32>, vector<8x8xf32>, vector<256x8xf32> -> vector<256x8xf32>
    %130 = arith.addf %124, %129 : vector<256x8xf32>
    %c0_150 = arith.constant 0 : index
    %c0_151 = arith.constant 0 : index
    %131 = vector.load %arg6[%c0_150, %c0_151] : memref<1x8xf32, #tpu.memory_space<vmem>>, vector<1x8xf32>
    %132 = vector.broadcast %131 : vector<1x8xf32> to vector<256x8xf32>
    %133 = arith.addf %130, %132 : vector<256x8xf32>
    %cst_152 = arith.constant 0.000000e+00 : f32
    %134 = vector.broadcast %cst_152 : f32 to vector<256x8xf32>
    %135 = arith.maximumf %133, %134 : vector<256x8xf32>
    %136 = vector.shape_cast %135 : vector<256x8xf32> to vector<16x16x8xf32>
    %c0_153 = arith.constant 0 : index
    %c0_154 = arith.constant 0 : index
    %c0_155 = arith.constant 0 : index
    %c0_156 = arith.constant 0 : index
    %137 = vector.load %arg7[%c0_153, %c0_154, %c0_155, %c0_156] : memref<1x16x16x8xf32, #tpu.memory_space<vmem>>, vector<1x16x16x8xf32>
    %138 = vector.shape_cast %137 : vector<1x16x16x8xf32> to vector<16x16x8xf32>
    %139 = vector.shape_cast %136 : vector<16x16x8xf32> to vector<1x16x16x8xf32>
    tpu.vector_store %arg7[%c0_153, %c0_154, %c0_155, %c0_156], %139 {strides = array<i32>} : memref<1x16x16x8xf32, #tpu.memory_space<vmem>>, vector<1x16x16x8xf32>,
    return
  }
  func.func @transform_0(%arg0: i32) -> (i32, i32, i32, i32) {
    %c0_i32 = arith.constant 0 : i32
    %c0_i32_0 = arith.constant 0 : i32
    %c0_i32_1 = arith.constant 0 : i32
    %c0_i32_2 = arith.constant 0 : i32
    return %arg0, %c0_i32, %c0_i32_0, %c0_i32_1 : i32, i32, i32, i32
  }
  func.func @transform_1(%arg0: i32) -> (i32, i32, i32, i32) {
    %c0_i32 = arith.constant 0 : i32
    %c0_i32_0 = arith.constant 0 : i32
    %c0_i32_1 = arith.constant 0 : i32
    %c0_i32_2 = arith.constant 0 : i32
    return %arg0, %c0_i32, %c0_i32_0, %c0_i32_1 : i32, i32, i32, i32
  }
  func.func @transform_2(%arg0: i32) -> (i32, i32, i32) {
    %c0_i32 = arith.constant 0 : i32
    %c0_i32_0 = arith.constant 0 : i32
    %c0_i32_1 = arith.constant 0 : i32
    %c0_i32_2 = arith.constant 0 : i32
    return %c0_i32, %c0_i32_0, %c0_i32_1 : i32, i32, i32
  }
  func.func @transform_3(%arg0: i32) -> (i32, i32) {
    %c0_i32 = arith.constant 0 : i32
    %c0_i32_0 = arith.constant 0 : i32
    %c0_i32_1 = arith.constant 0 : i32
    return %c0_i32, %c0_i32_0 : i32, i32
  }
  func.func @transform_4(%arg0: i32) -> (i32, i32, i32) {
    %c0_i32 = arith.constant 0 : i32
    %c0_i32_0 = arith.constant 0 : i32
    %c0_i32_1 = arith.constant 0 : i32
    %c0_i32_2 = arith.constant 0 : i32
    return %c0_i32, %c0_i32_0, %c0_i32_1 : i32, i32, i32
  }
  func.func @transform_5(%arg0: i32) -> (i32, i32) {
    %c0_i32 = arith.constant 0 : i32
    %c0_i32_0 = arith.constant 0 : i32
    %c0_i32_1 = arith.constant 0 : i32
    return %c0_i32, %c0_i32_0 : i32, i32
  }
  func.func @transform_6(%arg0: i32) -> (i32, i32, i32, i32) {
    %c0_i32 = arith.constant 0 : i32
    %c0_i32_0 = arith.constant 0 : i32
    %c0_i32_1 = arith.constant 0 : i32
    %c0_i32_2 = arith.constant 0 : i32
    return %arg0, %c0_i32, %c0_i32_0, %c0_i32_1 : i32, i32, i32, i32
  }
}

</mosaic_0001>

<bundles_post_ra>
// kernel: ffm_forward.1
= control target key start
LH: loop header
LB: loop body
LE: loop exit
PB: predicated region body
PF: predicated region fallthrough
CT: control target
= control target key end

     0   :  { %s10226_s21 = smov 0   ;;  %s12124_s0 = inlined_call_operand.vmem [shape: f32[2,16,16,8], index: 0, kind: input, shape index: {}]   ;;  %s12125_s1 = inlined_call_operand.vmem [shape: f32[2,16,16,8], index: 1, kind: input, shape index: {}]   ;;  %s12126_s2 = inlined_call_operand.vmem [shape: f32[9,8,8], index: 2, kind: input, shape index: {}]   ;;  %s12127_s3 = inlined_call_operand.vmem [shape: f32[1,8], index: 3, kind: input, shape index: {}]   ;;  %s12128_s4 = inlined_call_operand.vmem [shape: f32[9,8,8], index: 4, kind: input, shape index: {}]   ;;  %s12129_s5 = inlined_call_operand.vmem [shape: f32[1,8], index: 5, kind: input, shape index: {}]   ;;  %s12130_s6 = inlined_call_operand.vmem [shape: f32[2,16,16,8], index: 6, kind: output, shape index: {}]  }
   0x1 LB: > { %s7557_s22 = sadd.s32 4294967295, %s10188_s21   ;;  %p7561_p0 = scmp.ge.s32.totalorder %s10188_s21, 1  ;;  %s10188_s21 = sphi %s10226_s21, %s16_s21  }
   0x2   : > { %p222_p1 = scmp.lt.s32.totalorder %s10188_s21, 3 }
   0x4   : > { %p223_p2 = pnand %p7561_p0, %p222_p1 }
   0x6   : > { %226 = sbr.rel (%p223_p2) target bundleno = 1564 (0x61c), region = 44 }
   0xd   : > { %v7568_v0 = vld [vmem:[%s12126_s2 + $0x8] sm:$0xff]  ;;  %vm272_vm0 = vcmask 64512   ;;  %v10240_v1 = vld [vmem:[%s12126_s2] sm:$0xff]  ;;  %vm275_vm1 = vcmask 58368   ;;  %p257_p3 = scmp.lt.s32.totalorder %s7557_s22, 1  ;;  %v10190_v2 = vmov 0.0  }
   0xe   : > { %8761 = vmatprep.subr.mxu0 %v7568_v0  ;;  %273 = vst.msk [vmem:[#allocation2] sm:$0xff] %vm272_vm0, %v10190_v2  ;;  %274 = vst.msk [vmem:[#allocation2 + $0x8] sm:$0xff] %vm272_vm0, %v10190_v2  ;;  %vm281_vm2 = vcmask 57344   ;;  %v10309_v10 = vld [vmem:[%s12126_s2 + $0x10] sm:$0xff] }
   0xf   : > { %278 = vst.msk [vmem:[#allocation2 + $0x198] sm:$0xff] %vm272_vm0, %v10190_v2  ;;  %279 = vst.msk [vmem:[#allocation2 + $0x1a0] sm:$0xff] %vm272_vm0, %v10190_v2  ;;  %8762 = vmatpush3.msra.mxu0 %v7568_v0  ;;  %s12375_s22 = smov (!%p257_p3, %s7557_s22), 1 }
  0x10   : > { %276 = vst.msk [vmem:[#allocation2 + $0x10] sm:$0x3] %vm275_vm1, %v10190_v2  ;;  %280 = vst.msk [vmem:[#allocation2 + $0x1a8] sm:$0x3] %vm275_vm1, %v10190_v2  ;;  %8811 = vmatprep.subr.mxu0 %v10240_v1  ;;  %s10286_s27 = sshll.u32 %s12375_s22, 8 }
  0x11   : > { %282 = vst.msk [vmem:[#allocation2] sm:$0x1] %vm281_vm2, %v10190_v2  ;;  %283 = vst.msk [vmem:[#allocation2 + $0x18] sm:$0x1] %vm281_vm2, %v10190_v2  ;;  %s10292_s30 = scalar_lea.vmem %s12124_s0, %s10286_s27  ;;  %s10298_s9 = scalar_lea.vmem %s12125_s1, %s10286_s27 }
  0x12   : > { %284 = vst.msk [vmem:[#allocation2 + $0x30] sm:$0x1] %vm281_vm2, %v10190_v2  ;;  %285 = vst.msk [vmem:[#allocation2 + $0x48] sm:$0x1] %vm281_vm2, %v10190_v2  ;;  %v318_v3 = vld [vmem:[%s10292_s30] sm:$0xff]  ;;  %v319_v5 = vld [vmem:[%s10292_s30 + $0x8] sm:$0xff]  ;;  %s12024_s28 = scalar_lea.vmem %s12130_s6, %s10286_s27 }
  0x13   : > { %286 = vst.msk [vmem:[#allocation2 + $0x60] sm:$0x1] %vm281_vm2, %v10190_v2  ;;  %287 = vst.msk [vmem:[#allocation2 + $0x78] sm:$0x1] %vm281_vm2, %v10190_v2  ;;  %v350_v4 = vld [vmem:[%s10298_s9] sm:$0xff]  ;;  %v351_v7 = vld [vmem:[%s10298_s9 + $0x8] sm:$0xff] }
  0x14   : > { %288 = vst.msk [vmem:[#allocation2 + $0x90] sm:$0x1] %vm281_vm2, %v10190_v2  ;;  %289 = vst.msk [vmem:[#allocation2 + $0xa8] sm:$0x1] %vm281_vm2, %v10190_v2  ;;  %v382_v6 = vmul.f32 %v350_v4, %v318_v3  ;;  %v320_v8 = vld [vmem:[%s10292_s30 + $0x10] sm:$0xff]  ;;  %v383_v13 = vmul.f32 %v351_v7, %v319_v5  ;;  %v321_v15 = vld [vmem:[%s10292_s30 + $0x18] sm:$0xff] }
  0x15   : > { %290 = vst.msk [vmem:[#allocation2 + $0xc0] sm:$0x1] %vm281_vm2, %v10190_v2  ;;  %291 = vst.msk [vmem:[#allocation2 + $0xd8] sm:$0x1] %vm281_vm2, %v10190_v2  ;;  %v352_v9 = vld [vmem:[%s10298_s9 + $0x10] sm:$0xff]  ;;  %v480_v11 = vld [vmem:[#allocation2 + $0x1] sm:$0xff] }
  0x16   : > { %292 = vst.msk [vmem:[#allocation2 + $0xf0] sm:$0x1] %vm281_vm2, %v10190_v2  ;;  %293 = vst.msk [vmem:[#allocation2 + $0x108] sm:$0x1] %vm281_vm2, %v10190_v2  ;;  %v384_v14 = vmul.f32 %v352_v9, %v320_v8  ;;  %8763 = vmatprep.mubr.msk.f32.mxu0 %vm272_vm0, %v480_v11  ;;  %v353_v16 = vld [vmem:[%s10298_s9 + $0x18] sm:$0xff]  ;;  %v322_v17 = vld [vmem:[%s10292_s30 + $0x20] sm:$0xff] }
  0x17   : > { %294 = vst.msk [vmem:[#allocation2 + $0x120] sm:$0x1] %vm281_vm2, %v10190_v2  ;;  %295 = vst.msk [vmem:[#allocation2 + $0x138] sm:$0x1] %vm281_vm2, %v10190_v2  ;;  %v481_v12 = vld [vmem:[#allocation2 + $0x9] sm:$0xff]  ;;  %v354_v18 = vld [vmem:[%s10298_s9 + $0x20] sm:$0xff]  ;;  %v385_v19 = vmul.f32 %v353_v16, %v321_v15 }
  0x18   : > { %296 = vst.msk [vmem:[#allocation2 + $0x150] sm:$0x1] %vm281_vm2, %v10190_v2  ;;  %297 = vst.msk [vmem:[#allocation2 + $0x168] sm:$0x1] %vm281_vm2, %v10190_v2  ;;  %8764 = vmatmul.mubr.msk.f32.vlgmr.msra.gmra.mrb[0].mxu0 %vm272_vm0, %v481_v12  ;;  %v386_v20 = vmul.f32 %v354_v18, %v322_v17  ;;  %v323_v21 = vld [vmem:[%s10292_s30 + $0x28] sm:$0xff]  ;;  %v324_v23 = vld [vmem:[%s10292_s30 + $0x30] sm:$0xff] }
  0x19   : > { %298 = vst.msk [vmem:[#allocation2 + $0x180] sm:$0x1] %vm281_vm2, %v10190_v2  ;;  %299 = vst.msk [vmem:[#allocation2 + $0x198] sm:$0x1] %vm281_vm2, %v10190_v2  ;;  %v355_v22 = vld [vmem:[%s10298_s9 + $0x28] sm:$0xff]  ;;  %8812 = vmatpush3.msra.mxu0 %v10240_v1  ;;  %v356_v25 = vld [vmem:[%s10298_s9 + $0x30] sm:$0xff] }
  0x1a   : > { %300 = vst.msk [vmem:[#allocation2 + $0x11] sm:$0x1] %vm281_vm2, %v10190_v2  ;;  %301 = vst.msk [vmem:[#allocation2 + $0x29] sm:$0x1] %vm281_vm2, %v10190_v2  ;;  %v387_v24 = vmul.f32 %v355_v22, %v323_v21  ;;  %v325_v26 = vld [vmem:[%s10292_s30 + $0x38] sm:$0xff]  ;;  %v388_v28 = vmul.f32 %v356_v25, %v324_v23  ;;  %v326_v30 = vld [vmem:[%s10292_s30 + $0x40] sm:$0xff]  ;;  %8861 = vmatprep.subr.mxu0 %v10309_v10 }
  0x1b   : > { %302 = vst.msk [vmem:[#allocation2 + $0x41] sm:$0x1] %vm281_vm2, %v10190_v2  ;;  %303 = vst.msk [vmem:[#allocation2 + $0x59] sm:$0x1] %vm281_vm2, %v10190_v2  ;;  %v357_v27 = vld [vmem:[%s10298_s9 + $0x38] sm:$0xff]  ;;  %v358_v31 = vld [vmem:[%s10298_s9 + $0x40] sm:$0xff] }
  0x1c   : > { %304 = vst.msk [vmem:[#allocation2 + $0x71] sm:$0x1] %vm281_vm2, %v10190_v2  ;;  %305 = vst.msk [vmem:[#allocation2 + $0x89] sm:$0x1] %vm281_vm2, %v10190_v2  ;;  %v389_v29 = vmul.f32 %v357_v27, %v325_v26  ;;  %v327_v32 = vld [vmem:[%s10292_s30 + $0x48] sm:$0xff]  ;;  %v390_v33 = vmul.f32 %v358_v31, %v326_v30  ;;  %v328_v35 = vld [vmem:[%s10292_s30 + $0x50] sm:$0xff] }
  0x1d   : > { %306 = vst.msk [vmem:[#allocation2 + $0xa1] sm:$0x1] %vm281_vm2, %v10190_v2  ;;  %307 = vst.msk [vmem:[#allocation2 + $0xb9] sm:$0x1] %vm281_vm2, %v10190_v2  ;;  %v359_v34 = vld [vmem:[%s10298_s9 + $0x48] sm:$0xff]  ;;  %v360_v36 = vld [vmem:[%s10298_s9 + $0x50] sm:$0xff] }
  0x1e   : > { %308 = vst.msk [vmem:[#allocation2 + $0xd1] sm:$0x1] %vm281_vm2, %v10190_v2  ;;  %309 = vst.msk [vmem:[#allocation2 + $0xe9] sm:$0x1] %vm281_vm2, %v10190_v2  ;;  %v391_v37 = vmul.f32 %v359_v34, %v327_v32  ;;  %v392_v38 = vmul.f32 %v360_v36, %v328_v35  ;;  %v329_v39 = vld [vmem:[%s10292_s30 + $0x58] sm:$0xff]  ;;  %v330_v41 = vld [vmem:[%s10292_s30 + $0x60] sm:$0xff] }
  0x1f   : > { %310 = vst.msk [vmem:[#allocation2 + $0x101] sm:$0x1] %vm281_vm2, %v10190_v2  ;;  %311 = vst.msk [vmem:[#allocation2 + $0x119] sm:$0x1] %vm281_vm2, %v10190_v2  ;;  %v361_v40 = vld [vmem:[%s10298_s9 + $0x58] sm:$0xff]  ;;  %v362_v43 = vld [vmem:[%s10298_s9 + $0x60] sm:$0xff] }
  0x20   : > { %312 = vst.msk [vmem:[#allocation2 + $0x131] sm:$0x1] %vm281_vm2, %v10190_v2  ;;  %313 = vst.msk [vmem:[#allocation2 + $0x149] sm:$0x1] %vm281_vm2, %v10190_v2  ;;  %v393_v42 = vmul.f32 %v361_v40, %v329_v39  ;;  %v331_v44 = vld [vmem:[%s10292_s30 + $0x68] sm:$0xff]  ;;  %v394_v47 = vmul.f32 %v362_v43, %v330_v41  ;;  %v332_v49 = vld [vmem:[%s10292_s30 + $0x70] sm:$0xff] }
  0x21   : > { %314 = vst.msk [vmem:[#allocation2 + $0x161] sm:$0x1] %vm281_vm2, %v10190_v2  ;;  %315 = vst.msk [vmem:[#allocation2 + $0x179] sm:$0x1] %vm281_vm2, %v10190_v2  ;;  %v363_v45 = vld [vmem:[%s10298_s9 + $0x68] sm:$0xff]  ;;  %v364_v50 = vld [vmem:[%s10298_s9 + $0x70] sm:$0xff] }
  0x22   : > { %316 = vst.msk [vmem:[#allocation2 + $0x191] sm:$0x1] %vm281_vm2, %v10190_v2  ;;  %317 = vst.msk [vmem:[#allocation2 + $0x1a9] sm:$0x1] %vm281_vm2, %v10190_v2  ;;  %v395_v48 = vmul.f32 %v363_v45, %v331_v44  ;;  %v396_v53 = vmul.f32 %v364_v50, %v332_v49  ;;  %v333_v54 = vld [vmem:[%s10292_s30 + $0x78] sm:$0xff]  ;;  %v334_v56 = vld [vmem:[%s10292_s30 + $0x80] sm:$0xff] }
  0x23   : > { %415 = vst.msk [vmem:[#allocation2 + $0x19] sm:$0xff] %vm272_vm0, %v382_v6  ;;  %416 = vst.msk [vmem:[#allocation2 + $0x21] sm:$0xff] %vm272_vm0, %v383_v13  ;;  %v365_v55 = vld [vmem:[%s10298_s9 + $0x78] sm:$0xff]  ;;  %v366_v57 = vld [vmem:[%s10298_s9 + $0x80] sm:$0xff] }
  0x24   : > { %417 = vst.msk [vmem:[#allocation2 + $0x31] sm:$0xff] %vm272_vm0, %v384_v14  ;;  %418 = vst.msk [vmem:[#allocation2 + $0x39] sm:$0xff] %vm272_vm0, %v385_v19  ;;  %v397_v59 = vmul.f32 %v365_v55, %v333_v54  ;;  %v398_v60 = vmul.f32 %v366_v57, %v334_v56  ;;  %v335_v61 = vld [vmem:[%s10292_s30 + $0x88] sm:$0xff]  ;;  %v336_v0 = vld [vmem:[%s10292_s30 + $0x90] sm:$0xff] }
  0x25   : > { %419 = vst.msk [vmem:[#allocation2 + $0x49] sm:$0xff] %vm272_vm0, %v386_v20  ;;  %420 = vst.msk [vmem:[#allocation2 + $0x51] sm:$0xff] %vm272_vm0, %v387_v24  ;;  %v367_v63 = vld [vmem:[%s10298_s9 + $0x88] sm:$0xff]  ;;  %v368_v2 = vld [vmem:[%s10298_s9 + $0x90] sm:$0xff] }
  0x26   : > { %421 = vst.msk [vmem:[#allocation2 + $0x61] sm:$0xff] %vm272_vm0, %v388_v28  ;;  %422 = vst.msk [vmem:[#allocation2 + $0x69] sm:$0xff] %vm272_vm0, %v389_v29  ;;  %v399_v1 = vmul.f32 %v367_v63, %v335_v61  ;;  %v400_v3 = vmul.f32 %v368_v2, %v336_v0  ;;  %v337_v4 = vld [vmem:[%s10292_s30 + $0x98] sm:$0xff]  ;;  %v338_v8 = vld [vmem:[%s10292_s30 + $0xa0] sm:$0xff] }
  0x27   : > { %423 = vst.msk [vmem:[#allocation2 + $0x79] sm:$0xff] %vm272_vm0, %v390_v33  ;;  %424 = vst.msk [vmem:[#allocation2 + $0x81] sm:$0xff] %vm272_vm0, %v391_v37  ;;  %v369_v5 = vld [vmem:[%s10298_s9 + $0x98] sm:$0xff]  ;;  %v370_v11 = vld [vmem:[%s10298_s9 + $0xa0] sm:$0xff] }
  0x28   : > { %425 = vst.msk [vmem:[#allocation2 + $0x91] sm:$0xff] %vm272_vm0, %v392_v38  ;;  %426 = vst.msk [vmem:[#allocation2 + $0x99] sm:$0xff] %vm272_vm0, %v393_v42  ;;  %v401_v7 = vmul.f32 %v369_v5, %v337_v4  ;;  %v339_v12 = vld [vmem:[%s10292_s30 + $0xa8] sm:$0xff]  ;;  %v402_v13 = vmul.f32 %v370_v11, %v338_v8  ;;  %v340_v17 = vld [vmem:[%s10292_s30 + $0xb0] sm:$0xff] }
  0x29   : > { %427 = vst.msk [vmem:[#allocation2 + $0xa9] sm:$0xff] %vm272_vm0, %v394_v47  ;;  %428 = vst.msk [vmem:[#allocation2 + $0xb1] sm:$0xff] %vm272_vm0, %v395_v48  ;;  %v371_v14 = vld [vmem:[%s10298_s9 + $0xa8] sm:$0xff]  ;;  %v372_v18 = vld [vmem:[%s10298_s9 + $0xb0] sm:$0xff] }
  0x2a   : > { %v10346_v46 = vld [vmem:[#allocation2 + $0x19] sm:$0xff]  ;;  %v10354_v51 = vld [vmem:[#allocation2 + $0x21] sm:$0xff]  ;;  %429 = vst.msk [vmem:[#allocation2 + $0xc1] sm:$0xff] %vm272_vm0, %v396_v53  ;;  %430 = vst.msk [vmem:[#allocation2 + $0xc9] sm:$0xff] %vm272_vm0, %v397_v59  ;;  %v403_v16 = vmul.f32 %v371_v14, %v339_v12  ;;  %v404_v19 = vmul.f32 %v372_v18, %v340_v17 }
  0x2b   : > { %8766 = vmatprep.mubr.msk.f32.mxu0 %vm272_vm0, %v10346_v46  ;;  %v10356_v52 = vld [vmem:[#allocation2 + $0x31] sm:$0xff]  ;;  %v10369_v58 = vld [vmem:[#allocation2 + $0x39] sm:$0xff]  ;;  %431 = vst.msk [vmem:[#allocation2 + $0xd9] sm:$0xff] %vm272_vm0, %v398_v60  ;;  %432 = vst.msk [vmem:[#allocation2 + $0xe1] sm:$0xff] %vm272_vm0, %v399_v1 }
  0x2c   : > { %8767 = vmatmul.mubr.msk.f32.gmra.mrb[2].mxu0 %vm272_vm0, %v10354_v51  ;;  %v10373_v62 = vld [vmem:[#allocation2 + $0x49] sm:$0xff]  ;;  %v10386_v6 = vld [vmem:[#allocation2 + $0x51] sm:$0xff]  ;;  %433 = vst.msk [vmem:[#allocation2 + $0xf1] sm:$0xff] %vm272_vm0, %v400_v3  ;;  %434 = vst.msk [vmem:[#allocation2 + $0xf9] sm:$0xff] %vm272_vm0, %v401_v7 }
  0x2d   : > { %8769 = vmatprep.mubr.msk.f32.mxu0 %vm272_vm0, %v10356_v52  ;;  %v10390_v9 = vld [vmem:[#allocation2 + $0x61] sm:$0xff]  ;;  %v10399_v15 = vld [vmem:[#allocation2 + $0x69] sm:$0xff]  ;;  %435 = vst.msk [vmem:[#allocation2 + $0x109] sm:$0xff] %vm272_vm0, %v402_v13  ;;  %v341_v20 = vld [vmem:[%s10292_s30 + $0xb8] sm:$0xff] }
  0x2e   : > { %v373_v21 = vld [vmem:[%s10298_s9 + $0xb8] sm:$0xff]  ;;  %v342_v22 = vld [vmem:[%s10292_s30 + $0xc0] sm:$0xff]  ;;  %436 = vst.msk [vmem:[#allocation2 + $0x111] sm:$0xff] %vm272_vm0, %v403_v16  ;;  %437 = vst.msk [vmem:[#allocation2 + $0x121] sm:$0xff] %vm272_vm0, %v404_v19 }
  0x2f   : > { %v10409_v23 = vld [vmem:[#allocation2 + $0x79] sm:$0xff]  ;;  %v405_v24 = vmul.f32 %v373_v21, %v341_v20  ;;  %v343_v27 = vld [vmem:[%s10292_s30 + $0xc8] sm:$0xff]  ;;  %v344_v29 = vld [vmem:[%s10292_s30 + $0xd0] sm:$0xff] }
  0x30   : > { %8770 = vmatmul.mubr.msk.f32.gmra.mrb[4].mxu0 %vm272_vm0, %v10369_v58  ;;  %v374_v25 = vld [vmem:[%s10298_s9 + $0xc0] sm:$0xff]  ;;  %v375_v28 = vld [vmem:[%s10298_s9 + $0xc8] sm:$0xff]  ;;  %v376_v31 = vld [vmem:[%s10298_s9 + $0xd0] sm:$0xff] }
  0x31   : > { %8772 = vmatprep.mubr.msk.f32.mxu0 %vm272_vm0, %v10373_v62  ;;  %v406_v26 = vmul.f32 %v374_v25, %v342_v22  ;;  %438 = vst.msk [vmem:[#allocation2 + $0x129] sm:$0xff] %vm272_vm0, %v405_v24  ;;  %v407_v30 = vmul.f32 %v375_v28, %v343_v27  ;;  %v345_v32 = vld [vmem:[%s10292_s30 + $0xd8] sm:$0xff]  ;;  %v10424_v33 = vld [vmem:[#allocation2 + $0x81] sm:$0xff]  ;;  %v408_v34 = vmul.f32 %v376_v31, %v344_v29  ;;  %v10444_v45 = vld [vmem:[#allocation2 + $0xa9] sm:$0xff] }
  0x32   : > { %v377_v35 = vld [vmem:[%s10298_s9 + $0xd8] sm:$0xff]  ;;  %v346_v36 = vld [vmem:[%s10292_s30 + $0xe0] sm:$0xff]  ;;  %v347_v40 = vld [vmem:[%s10292_s30 + $0xe8] sm:$0xff] }
  0x33   : > { %439 = vst.msk [vmem:[#allocation2 + $0x139] sm:$0xff] %vm272_vm0, %v406_v26  ;;  %v10429_v37 = vld [vmem:[#allocation2 + $0x91] sm:$0xff]  ;;  %440 = vst.msk [vmem:[#allocation2 + $0x141] sm:$0xff] %vm272_vm0, %v407_v30  ;;  %v409_v38 = vmul.f32 %v377_v35, %v345_v32  ;;  %v378_v39 = vld [vmem:[%s10298_s9 + $0xe0] sm:$0xff] }
  0x34   : > { %8773 = vmatmul.mubr.msk.f32.gmra.mrb[6].mxu0 %vm272_vm0, %v10386_v6  ;;  %441 = vst.msk [vmem:[#allocation2 + $0x151] sm:$0xff] %vm272_vm0, %v408_v34  ;;  %v410_v41 = vmul.f32 %v378_v39, %v346_v36  ;;  %v379_v42 = vld [vmem:[%s10298_s9 + $0xe8] sm:$0xff]  ;;  %v10441_v44 = vld [vmem:[#allocation2 + $0x99] sm:$0xff]  ;;  %v10451_v47 = vld [vmem:[#allocation2 + $0xb1] sm:$0xff] }
  0x35   : > { %8775 = vmatprep.mubr.msk.f32.mxu0 %vm272_vm0, %v10390_v9  ;;  %442 = vst.msk [vmem:[#allocation2 + $0x159] sm:$0xff] %vm272_vm0, %v409_v38  ;;  %v411_v43 = vmul.f32 %v379_v42, %v347_v40  ;;  %v10453_v48 = vld [vmem:[#allocation2 + $0xc1] sm:$0xff]  ;;  %v10459_v49 = vld [vmem:[#allocation2 + $0xc9] sm:$0xff]  ;;  %v10461_v50 = vld [vmem:[#allocation2 + $0xd9] sm:$0xff] }
  0x36   : > { %443 = vst.msk [vmem:[#allocation2 + $0x169] sm:$0xff] %vm272_vm0, %v410_v41  ;;  %v10467_v53 = vld [vmem:[#allocation2 + $0xe1] sm:$0xff]  ;;  %v10469_v54 = vld [vmem:[#allocation2 + $0xf1] sm:$0xff]  ;;  %v10475_v55 = vld [vmem:[#allocation2 + $0xf9] sm:$0xff] }
  0x37   : > { %444 = vst.msk [vmem:[#allocation2 + $0x171] sm:$0xff] %vm272_vm0, %v411_v43  ;;  %v10477_v56 = vld [vmem:[#allocation2 + $0x109] sm:$0xff]  ;;  %v10483_v57 = vld [vmem:[#allocation2 + $0x111] sm:$0xff]  ;;  %v10485_v59 = vld [vmem:[#allocation2 + $0x121] sm:$0xff] }
  0x38   : > { %8776 = vmatmul.mubr.msk.f32.gmra.mrb[8].mxu0 %vm272_vm0, %v10399_v15  ;;  %v10491_v60 = vld [vmem:[#allocation2 + $0x129] sm:$0xff]  ;;  %v447_v4 = vld [vmem:[#allocation2] sm:$0xff]  ;;  %v10520_v7 = vld [vmem:[#allocation2 + $0x18] sm:$0xff] }
  0x39   : > { %8778 = vmatprep.mubr.msk.f32.mxu0 %vm272_vm0, %v10409_v23  ;;  %v448_v5 = vld [vmem:[#allocation2 + $0x8] sm:$0xff]  ;;  %v10525_v8 = vld [vmem:[%s12126_s2 + $0x18] sm:$0xff]  ;;  %v10531_v11 = vld [vmem:[#allocation2 + $0x20] sm:$0xff] }
  0x3a   : > { %v10493_v61 = vld [vmem:[#allocation2 + $0x139] sm:$0xff]  ;;  %v10499_v63 = vld [vmem:[#allocation2 + $0x141] sm:$0xff]  ;;  %v10533_v12 = vld [vmem:[#allocation2 + $0x30] sm:$0xff] }
  0x3b   : > { %v10501_v0 = vld [vmem:[#allocation2 + $0x151] sm:$0xff]  ;;  %v10542_v14 = vld [vmem:[#allocation2 + $0x48] sm:$0xff]  ;;  %v10550_v16 = vld [vmem:[#allocation2 + $0x60] sm:$0xff] }
  0x3c   : > { %8779 = vmatmul.mubr.msk.f32.gmra.mrb[10].mxu0 %vm272_vm0, %v10424_v33  ;;  %v10507_v1 = vld [vmem:[#allocation2 + $0x159] sm:$0xff]  ;;  %v10556_v17 = vld [vmem:[#allocation2 + $0x68] sm:$0xff]  ;;  %v10566_v20 = vld [vmem:[#allocation2 + $0x90] sm:$0xff] }
  0x3d   : > { %8781 = vmatprep.mubr.msk.f32.mxu0 %vm272_vm0, %v10429_v37  ;;  %12240 = vst [vmem:[#allocation3_spill] sm:$0xff] %v10507_v1  ;;  %v10509_v2 = vld [vmem:[#allocation2 + $0x169] sm:$0xff]  ;;  %v10540_v13 = vld [vmem:[#allocation2 + $0x38] sm:$0xff]  ;;  %v10564_v19 = vld [vmem:[#allocation2 + $0x80] sm:$0xff] }
  0x3e   : > { %12241 = vst [vmem:[#allocation4_spill] sm:$0xff] %v10509_v2  ;;  %v10515_v3 = vld [vmem:[#allocation2 + $0x171] sm:$0xff]  ;;  %v10574_v22 = vld [vmem:[#allocation2 + $0xa8] sm:$0xff]  ;;  %v10582_v25 = vld [vmem:[#allocation2 + $0xc0] sm:$0xff] }
  0x3f   : > { %12242 = vst [vmem:[#allocation5_spill] sm:$0xff] %v10515_v3  ;;  %v10558_v18 = vld [vmem:[#allocation2 + $0x78] sm:$0xff]  ;;  %v10580_v24 = vld [vmem:[#allocation2 + $0xb0] sm:$0xff]  ;;  %v10588_v26 = vld [vmem:[#allocation2 + $0xc8] sm:$0xff] }
  0x40   : > { %8782 = vmatmul.mubr.msk.f32.gmra.mrb[12].mxu0 %vm272_vm0, %v10441_v44  ;;  %v10572_v21 = vld [vmem:[#allocation2 + $0x98] sm:$0xff]  ;;  %v10596_v28 = vld [vmem:[#allocation2 + $0xe0] sm:$0xff]  ;;  %v10598_v29 = vld [vmem:[#allocation2 + $0xf0] sm:$0xff] }
  0x41   : > { %8784 = vmatprep.mubr.msk.f32.mxu0 %vm272_vm0, %v10444_v45  ;;  %v10590_v27 = vld [vmem:[#allocation2 + $0xd8] sm:$0xff]  ;;  %v10606_v31 = vld [vmem:[#allocation2 + $0x108] sm:$0xff]  ;;  %v10612_v32 = vld [vmem:[#allocation2 + $0x110] sm:$0xff] }
  0x42   : > { %v10604_v30 = vld [vmem:[#allocation2 + $0xf8] sm:$0xff]  ;;  %v10614_v34 = vld [vmem:[#allocation2 + $0x120] sm:$0xff]  ;;  %v10620_v35 = vld [vmem:[#allocation2 + $0x128] sm:$0xff] }
  0x43   : > { %v10622_v36 = vld [vmem:[#allocation2 + $0x138] sm:$0xff]  ;;  %v348_v38 = vld [vmem:[%s10292_s30 + $0xf0] sm:$0xff]  ;;  %v10630_v40 = vld [vmem:[#allocation2 + $0x140] sm:$0xff] }
  0x44   : > { %8785 = vmatmul.mubr.msk.f32.gmra.mrb[14].mxu0 %vm272_vm0, %v10451_v47  ;;  %v380_v39 = vld [vmem:[%s10298_s9 + $0xf0] sm:$0xff]  ;;  %v349_v42 = vld [vmem:[%s10292_s30 + $0xf8] sm:$0xff] }
  0x45   : > { %8787 = vmatprep.mubr.msk.f32.mxu0 %vm272_vm0, %v10453_v48  ;;  %v412_v41 = vmul.f32 %v380_v39, %v348_v38  ;;  %v381_v43 = vld [vmem:[%s10298_s9 + $0xf8] sm:$0xff]  ;;  %v10650_v38 = vld [vmem:[#allocation2 + $0x170] sm:$0xff]  ;;  %v1156_v39 = vld [vmem:[#allocation2 + $0x2] sm:$0xff] }
  0x47   : > { %445 = vst.msk [vmem:[#allocation2 + $0x181] sm:$0xff] %vm272_vm0, %v412_v41  ;;  %v1157_v41 = vld [vmem:[#allocation2 + $0xa] sm:$0xff] }
  0x48   : > { %8788 = vmatmul.mubr.msk.f32.gmra.mrb[16].mxu0 %vm272_vm0, %v10459_v49 }
  0x49   : > { %8790 = vmatprep.mubr.msk.f32.mxu0 %vm272_vm0, %v10461_v50 }
  0x4c   : > { %8791 = vmatmul.mubr.msk.f32.gmra.mrb[18].mxu0 %vm272_vm0, %v10467_v53 }
  0x4d   : > { %8793 = vmatprep.mubr.msk.f32.mxu0 %vm272_vm0, %v10469_v54 }
  0x50   : > { %8794 = vmatmul.mubr.msk.f32.gmra.mrb[20].mxu0 %vm272_vm0, %v10475_v55 }
  0x51   : > { %8796 = vmatprep.mubr.msk.f32.mxu0 %vm272_vm0, %v10477_v56 }
  0x54   : > { %8797 = vmatmul.mubr.msk.f32.gmra.mrb[22].mxu0 %vm272_vm0, %v10483_v57 }
  0x55   : > { %8799 = vmatprep.mubr.msk.f32.mxu0 %vm272_vm0, %v10485_v59 }
  0x58   : > { %8800 = vmatmul.mubr.msk.f32.gmra.mrb[24].mxu0 %vm272_vm0, %v10491_v60 }
  0x59   : > { %8802 = vmatprep.mubr.msk.f32.mxu0 %vm272_vm0, %v10493_v61 }
  0x5c   : > { %8803 = vmatmul.mubr.msk.f32.gmra.mrb[26].mxu0 %vm272_vm0, %v10499_v63 }
  0x5d   : > { %8805 = vmatprep.mubr.msk.f32.mxu0 %vm272_vm0, %v10501_v0 }
  0x60   : > { %8806 = vmatmul.mubr.msk.f32.gmra.mrb[28].mxu0 %vm272_vm0, %v10507_v1  ;;  %v10668_v1 = vld [vmem:[#allocation2 + $0x32] sm:$0xff] }
  0x61   : > { %8808 = vmatprep.mubr.msk.f32.mxu0 %vm272_vm0, %v10509_v2  ;;  %v10644_v2 = vld [vmem:[#allocation2 + $0x168] sm:$0xff]  ;;  %12245 = vst [vmem:[#allocation8_spill] sm:$0xff] %v10668_v1 }
  0x64   : > { %8809 = vmatmul.mubr.msk.f32.gmra.mrb[30].mxu0 %vm272_vm0, %v10515_v3  ;;  %v10642_v3 = vld [vmem:[#allocation2 + $0x158] sm:$0xff] }
  0x65   : > { %8813 = vmatprep.mubr.msk.f32.mxu0 %vm272_vm0, %v447_v4  ;;  %v10634_v4 = vld [vmem:[#allocation2 + $0x150] sm:$0xff] }
  0x68   : > { %8814 = vmatmul.mubr.msk.f32.vlgmr.msra.gmra.mrb[0].mxu0 %vm272_vm0, %v448_v5  ;;  %v413_v5 = vmul.f32 %v381_v43, %v349_v42  ;;  %v10655_v42 = vld [vmem:[#allocation2 + $0x1a] sm:$0xff] }
  0x69   : > { %8862 = vmatpush3.msra.mxu0 %v10309_v10  ;;  %8816 = vmatprep.mubr.msk.f32.mxu0 %vm272_vm0, %v10520_v7  ;;  %v10548_v10 = vld [vmem:[#allocation2 + $0x50] sm:$0xff]  ;;  %12243 = vst [vmem:[#allocation6_spill] sm:$0xff] %v10655_v42  ;;  %v10660_v43 = vld [vmem:[%s12126_s2 + $0x20] sm:$0xff] }
  0x6a   : > { %8911 = vmatprep.subr.mxu0 %v10525_v8  ;;  %446 = vst.msk [vmem:[#allocation2 + $0x189] sm:$0xff] %vm272_vm0, %v413_v5  ;;  %v10666_v5 = vld [vmem:[#allocation2 + $0x22] sm:$0xff] }
  0x6b   : > { %12244 = vst [vmem:[#allocation7_spill] sm:$0xff] %v10666_v5 }
  0x6c   : > { %8817 = vmatmul.mubr.msk.f32.gmra.mrb[2].mxu0 %vm272_vm0, %v10531_v11 }
  0x6d   : > { %8819 = vmatprep.mubr.msk.f32.mxu0 %vm272_vm0, %v10533_v12 }
  0x70   : > { %8820 = vmatmul.mubr.msk.f32.gmra.mrb[4].mxu0 %vm272_vm0, %v10540_v13 }
  0x71   : > { %8822 = vmatprep.mubr.msk.f32.mxu0 %vm272_vm0, %v10542_v14 }
  0x74   : > { %8823 = vmatmul.mubr.msk.f32.gmra.mrb[6].mxu0 %vm272_vm0, %v10548_v10 }
  0x75   : > { %8825 = vmatprep.mubr.msk.f32.mxu0 %vm272_vm0, %v10550_v16 }
  0x78   : > { %8826 = vmatmul.mubr.msk.f32.gmra.mrb[8].mxu0 %vm272_vm0, %v10556_v17 }
  0x79   : > { %8828 = vmatprep.mubr.msk.f32.mxu0 %vm272_vm0, %v10558_v18 }
  0x7c   : > { %8829 = vmatmul.mubr.msk.f32.gmra.mrb[10].mxu0 %vm272_vm0, %v10564_v19 }
  0x7d   : > { %8831 = vmatprep.mubr.msk.f32.mxu0 %vm272_vm0, %v10566_v20 }
  0x80   : > { %8832 = vmatmul.mubr.msk.f32.gmra.mrb[12].mxu0 %vm272_vm0, %v10572_v21 }
  0x81   : > { %8834 = vmatprep.mubr.msk.f32.mxu0 %vm272_vm0, %v10574_v22 }
  0x84   : > { %8835 = vmatmul.mubr.msk.f32.gmra.mrb[14].mxu0 %vm272_vm0, %v10580_v24 }
  0x85   : > { %8837 = vmatprep.mubr.msk.f32.mxu0 %vm272_vm0, %v10582_v25 }
  0x88   : > { %8838 = vmatmul.mubr.msk.f32.gmra.mrb[16].mxu0 %vm272_vm0, %v10588_v26 }
  0x89   : > { %8840 = vmatprep.mubr.msk.f32.mxu0 %vm272_vm0, %v10590_v27 }
  0x8c   : > { %8841 = vmatmul.mubr.msk.f32.gmra.mrb[18].mxu0 %vm272_vm0, %v10596_v28 }
  0x8d   : > { %8843 = vmatprep.mubr.msk.f32.mxu0 %vm272_vm0, %v10598_v29 }
  0x90   : > { %8844 = vmatmul.mubr.msk.f32.gmra.mrb[20].mxu0 %vm272_vm0, %v10604_v30 }
  0x91   : > { %8846 = vmatprep.mubr.msk.f32.mxu0 %vm272_vm0, %v10606_v31 }
  0x94   : > { %8847 = vmatmul.mubr.msk.f32.gmra.mrb[22].mxu0 %vm272_vm0, %v10612_v32 }
  0x95   : > { %8849 = vmatprep.mubr.msk.f32.mxu0 %vm272_vm0, %v10614_v34 }
  0x98   : > { %8850 = vmatmul.mubr.msk.f32.gmra.mrb[24].mxu0 %vm272_vm0, %v10620_v35 }
  0x99   : > { %8852 = vmatprep.mubr.msk.f32.mxu0 %vm272_vm0, %v10622_v36 }
  0x9c   : > { %8853 = vmatmul.mubr.msk.f32.gmra.mrb[26].mxu0 %vm272_vm0, %v10630_v40 }
  0x9d   : > { %8855 = vmatprep.mubr.msk.f32.mxu0 %vm272_vm0, %v10634_v4 }
  0xa0   : > { %8856 = vmatmul.mubr.msk.f32.gmra.mrb[28].mxu0 %vm272_vm0, %v10642_v3 }
  0xa1   : > { %8858 = vmatprep.mubr.msk.f32.mxu0 %vm272_vm0, %v10644_v2 }
  0xa4   : > { %8859 = vmatmul.mubr.msk.f32.gmra.mrb[30].mxu0 %vm272_vm0, %v10650_v38 }
  0xa5   : > { %8863 = vmatprep.mubr.msk.f32.mxu0 %vm272_vm0, %v1156_v39  ;;  %v10675_v39 = vld [vmem:[#allocation2 + $0x3a] sm:$0xff] }
  0xa6   : > { %12246 = vst [vmem:[#allocation9_spill] sm:$0xff] %v10675_v39 }
  0xa8   : > { %8864 = vmatmul.mubr.msk.f32.vlgmr.msra.gmra.mrb[0].mxu0 %vm272_vm0, %v1157_v41  ;;  %v10677_v41 = vld [vmem:[#allocation2 + $0x4a] sm:$0xff] }
  0xa9   : > { %8912 = vmatpush3.msra.mxu0 %v10525_v8  ;;  %8866 = vmatprep.mubr.msk.f32.mxu0 %vm272_vm0, %v10655_v42  ;;  %12247 = vst [vmem:[#allocation10_spill] sm:$0xff] %v10677_v41  ;;  %v10683_v8 = vld [vmem:[#allocation2 + $0x52] sm:$0xff]  ;;  %v10685_v42 = vld [vmem:[#allocation2 + $0x62] sm:$0xff] }
  0xaa   : > { %8961 = vmatprep.subr.mxu0 %v10660_v43  ;;  %12248 = vst [vmem:[#allocation11_spill] sm:$0xff] %v10683_v8  ;;  %12249 = vst [vmem:[#allocation12_spill] sm:$0xff] %v10685_v42 }
  0xac   : > { %8867 = vmatmul.mubr.msk.f32.gmra.mrb[2].mxu0 %vm272_vm0, %v10666_v5  ;;  %v10693_v5 = vld [vmem:[#allocation2 + $0x7a] sm:$0xff] }
  0xad   : > { %8869 = vmatprep.mubr.msk.f32.mxu0 %vm272_vm0, %v10668_v1  ;;  %v10691_v1 = vld [vmem:[#allocation2 + $0x6a] sm:$0xff]  ;;  %12251 = vst [vmem:[#allocation14_spill] sm:$0xff] %v10693_v5 }
  0xae   : > { %12250 = vst [vmem:[#allocation13_spill] sm:$0xff] %v10691_v1 }
  0xb0   : > { %8870 = vmatmul.mubr.msk.f32.gmra.mrb[4].mxu0 %vm272_vm0, %v10675_v39  ;;  %v10701_v39 = vld [vmem:[#allocation2 + $0x92] sm:$0xff] }
  0xb1   : > { %8872 = vmatprep.mubr.msk.f32.mxu0 %vm272_vm0, %v10677_v41  ;;  %v10699_v41 = vld [vmem:[#allocation2 + $0x82] sm:$0xff]  ;;  %12253 = vst [vmem:[#allocation16_spill] sm:$0xff] %v10701_v39 }
  0xb2   : > { %12252 = vst [vmem:[#allocation15_spill] sm:$0xff] %v10699_v41 }
  0xb4   : > { %8873 = vmatmul.mubr.msk.f32.gmra.mrb[6].mxu0 %vm272_vm0, %v10683_v8  ;;  %v10709_v8 = vld [vmem:[#allocation2 + $0xaa] sm:$0xff] }
  0xb5   : > { %8875 = vmatprep.mubr.msk.f32.mxu0 %vm272_vm0, %v10685_v42  ;;  %v10707_v42 = vld [vmem:[#allocation2 + $0x9a] sm:$0xff]  ;;  %12255 = vst [vmem:[#allocation18_spill] sm:$0xff] %v10709_v8 }
  0xb6   : > { %12254 = vst [vmem:[#allocation17_spill] sm:$0xff] %v10707_v42 }
  0xb8   : > { %8876 = vmatmul.mubr.msk.f32.gmra.mrb[8].mxu0 %vm272_vm0, %v10691_v1  ;;  %v10717_v1 = vld [vmem:[#allocation2 + $0xc2] sm:$0xff] }
  0xb9   : > { %8878 = vmatprep.mubr.msk.f32.mxu0 %vm272_vm0, %v10693_v5  ;;  %v10715_v5 = vld [vmem:[#allocation2 + $0xb2] sm:$0xff]  ;;  %12257 = vst [vmem:[#allocation20_spill] sm:$0xff] %v10717_v1 }
  0xba   : > { %12256 = vst [vmem:[#allocation19_spill] sm:$0xff] %v10715_v5 }
  0xbc   : > { %8879 = vmatmul.mubr.msk.f32.gmra.mrb[10].mxu0 %vm272_vm0, %v10699_v41  ;;  %v10725_v41 = vld [vmem:[#allocation2 + $0xda] sm:$0xff] }
  0xbd   : > { %8881 = vmatprep.mubr.msk.f32.mxu0 %vm272_vm0, %v10701_v39  ;;  %v10723_v39 = vld [vmem:[#allocation2 + $0xca] sm:$0xff]  ;;  %12259 = vst [vmem:[#allocation22_spill] sm:$0xff] %v10725_v41 }
  0xbe   : > { %12258 = vst [vmem:[#allocation21_spill] sm:$0xff] %v10723_v39 }
  0xc0   : > { %8882 = vmatmul.mubr.msk.f32.gmra.mrb[12].mxu0 %vm272_vm0, %v10707_v42  ;;  %v10733_v42 = vld [vmem:[#allocation2 + $0xf2] sm:$0xff] }
  0xc1   : > { %8884 = vmatprep.mubr.msk.f32.mxu0 %vm272_vm0, %v10709_v8  ;;  %v10731_v8 = vld [vmem:[#allocation2 + $0xe2] sm:$0xff]  ;;  %12261 = vst [vmem:[#allocation24_spill] sm:$0xff] %v10733_v42 }
  0xc2   : > { %12260 = vst [vmem:[#allocation23_spill] sm:$0xff] %v10731_v8 }
  0xc4   : > { %8885 = vmatmul.mubr.msk.f32.gmra.mrb[14].mxu0 %vm272_vm0, %v10715_v5  ;;  %v10741_v5 = vld [vmem:[#allocation2 + $0x10a] sm:$0xff] }
  0xc5   : > { %8887 = vmatprep.mubr.msk.f32.mxu0 %vm272_vm0, %v10717_v1  ;;  %v10739_v1 = vld [vmem:[#allocation2 + $0xfa] sm:$0xff]  ;;  %12263 = vst [vmem:[#allocation26_spill] sm:$0xff] %v10741_v5 }
  0xc6   : > { %12262 = vst [vmem:[#allocation25_spill] sm:$0xff] %v10739_v1 }
  0xc8   : > { %8888 = vmatmul.mubr.msk.f32.gmra.mrb[16].mxu0 %vm272_vm0, %v10723_v39  ;;  %v10749_v39 = vld [vmem:[#allocation2 + $0x122] sm:$0xff] }
  0xc9   : > { %8890 = vmatprep.mubr.msk.f32.mxu0 %vm272_vm0, %v10725_v41  ;;  %v10747_v41 = vld [vmem:[#allocation2 + $0x112] sm:$0xff]  ;;  %12265 = vst [vmem:[#allocation28_spill] sm:$0xff] %v10749_v39 }
  0xca   : > { %12264 = vst [vmem:[#allocation27_spill] sm:$0xff] %v10747_v41 }
  0xcc   : > { %8891 = vmatmul.mubr.msk.f32.gmra.mrb[18].mxu0 %vm272_vm0, %v10731_v8  ;;  %v10757_v8 = vld [vmem:[#allocation2 + $0x13a] sm:$0xff] }
  0xcd   : > { %8893 = vmatprep.mubr.msk.f32.mxu0 %vm272_vm0, %v10733_v42  ;;  %v10755_v42 = vld [vmem:[#allocation2 + $0x12a] sm:$0xff]  ;;  %12266 = vst [vmem:[#allocation29_spill] sm:$0xff] %v10757_v8 }
  0xd0   : > { %8894 = vmatmul.mubr.msk.f32.gmra.mrb[20].mxu0 %vm272_vm0, %v10739_v1  ;;  %v10765_v1 = vld [vmem:[#allocation2 + $0x152] sm:$0xff] }
  0xd1   : > { %8896 = vmatprep.mubr.msk.f32.mxu0 %vm272_vm0, %v10741_v5  ;;  %v10763_v5 = vld [vmem:[#allocation2 + $0x142] sm:$0xff]  ;;  %12267 = vst [vmem:[#allocation30_spill] sm:$0xff] %v10765_v1 }
  0xd4   : > { %8897 = vmatmul.mubr.msk.f32.gmra.mrb[22].mxu0 %vm272_vm0, %v10747_v41  ;;  %v10773_v41 = vld [vmem:[#allocation2 + $0x16a] sm:$0xff] }
  0xd5   : > { %8899 = vmatprep.mubr.msk.f32.mxu0 %vm272_vm0, %v10749_v39  ;;  %v10771_v39 = vld [vmem:[#allocation2 + $0x15a] sm:$0xff]  ;;  %12268 = vst [vmem:[#allocation31_spill] sm:$0xff] %v10773_v41 }
  0xd8   : > { %8900 = vmatmul.mubr.msk.f32.gmra.mrb[24].mxu0 %vm272_vm0, %v10755_v42 }
  0xd9   : > { %8902 = vmatprep.mubr.msk.f32.mxu0 %vm272_vm0, %v10757_v8  ;;  %v10779_v8 = vld [vmem:[#allocation2 + $0x172] sm:$0xff] }
  0xdc   : > { %8903 = vmatmul.mubr.msk.f32.gmra.mrb[26].mxu0 %vm272_vm0, %v10763_v5 }
  0xdd   : > { %8905 = vmatprep.mubr.msk.f32.mxu0 %vm272_vm0, %v10765_v1  ;;  %v7732_v1 = vld [vmem:[%s12126_s2 + $0x28] sm:$0xff] }
  0xe0   : > { %8906 = vmatmul.mubr.msk.f32.gmra.mrb[28].mxu0 %vm272_vm0, %v10771_v39 }
  0xe1   : > { %8908 = vmatprep.mubr.msk.f32.mxu0 %vm272_vm0, %v10773_v41 }
  0xe4   : > { %8909 = vmatmul.mubr.msk.f32.gmra.mrb[30].mxu0 %vm272_vm0, %v10779_v8 }
  0xe5   : > { %8913 = vmatprep.mubr.msk.f32.mxu0 %vm272_vm0, %v10520_v7  ;;  %v10845_v7 = vld [vmem:[#allocation2 + $0x180] sm:$0xff] }
  0xe8   : > { %8914 = vmatmul.mubr.msk.f32.vlgmr.msra.gmra.mrb[0].mxu0 %vm272_vm0, %v10531_v11  ;;  %v10851_v11 = vld [vmem:[#allocation2 + $0x188] sm:$0xff] }
  0xe9   : > { %8962 = vmatpush3.msra.mxu0 %v10660_v43  ;;  %8916 = vmatprep.mubr.msk.f32.mxu0 %vm272_vm0, %v10533_v12  ;;  %v7765_v43 = vld [vmem:[%s12126_s2 + $0x30] sm:$0xff] }
  0xea   : > { %9011 = vmatprep.subr.mxu0 %v7732_v1 }
  0xec   : > { %8917 = vmatmul.mubr.msk.f32.gmra.mrb[2].mxu0 %vm272_vm0, %v10540_v13 }
  0xed   : > { %8919 = vmatprep.mubr.msk.f32.mxu0 %vm272_vm0, %v10542_v14 }
  0xf0   : > { %8920 = vmatmul.mubr.msk.f32.gmra.mrb[4].mxu0 %vm272_vm0, %v10548_v10 }
  0xf1   : > { %8922 = vmatprep.mubr.msk.f32.mxu0 %vm272_vm0, %v10550_v16 }
  0xf4   : > { %8923 = vmatmul.mubr.msk.f32.gmra.mrb[6].mxu0 %vm272_vm0, %v10556_v17 }
  0xf5   : > { %8925 = vmatprep.mubr.msk.f32.mxu0 %vm272_vm0, %v10558_v18 }
  0xf8   : > { %8926 = vmatmul.mubr.msk.f32.gmra.mrb[8].mxu0 %vm272_vm0, %v10564_v19 }
  0xf9   : > { %8928 = vmatprep.mubr.msk.f32.mxu0 %vm272_vm0, %v10566_v20 }
  0xfc   : > { %8929 = vmatmul.mubr.msk.f32.gmra.mrb[10].mxu0 %vm272_vm0, %v10572_v21 }
  0xfd   : > { %8931 = vmatprep.mubr.msk.f32.mxu0 %vm272_vm0, %v10574_v22 }
 0x100   : > { %8932 = vmatmul.mubr.msk.f32.gmra.mrb[12].mxu0 %vm272_vm0, %v10580_v24 }
 0x101   : > { %8934 = vmatprep.mubr.msk.f32.mxu0 %vm272_vm0, %v10582_v25 }
 0x104   : > { %8935 = vmatmul.mubr.msk.f32.gmra.mrb[14].mxu0 %vm272_vm0, %v10588_v26 }
 0x105   : > { %8937 = vmatprep.mubr.msk.f32.mxu0 %vm272_vm0, %v10590_v27 }
 0x108   : > { %8938 = vmatmul.mubr.msk.f32.gmra.mrb[16].mxu0 %vm272_vm0, %v10596_v28 }
 0x109   : > { %8940 = vmatprep.mubr.msk.f32.mxu0 %vm272_vm0, %v10598_v29 }
 0x10c   : > { %8941 = vmatmul.mubr.msk.f32.gmra.mrb[18].mxu0 %vm272_vm0, %v10604_v30 }
 0x10d   : > { %8943 = vmatprep.mubr.msk.f32.mxu0 %vm272_vm0, %v10606_v31 }
 0x110   : > { %8944 = vmatmul.mubr.msk.f32.gmra.mrb[20].mxu0 %vm272_vm0, %v10612_v32 }
 0x111   : > { %8946 = vmatprep.mubr.msk.f32.mxu0 %vm272_vm0, %v10614_v34 }
 0x114   : > { %8947 = vmatmul.mubr.msk.f32.gmra.mrb[22].mxu0 %vm272_vm0, %v10620_v35 }
 0x115   : > { %8949 = vmatprep.mubr.msk.f32.mxu0 %vm272_vm0, %v10622_v36 }
 0x118   : > { %8950 = vmatmul.mubr.msk.f32.gmra.mrb[24].mxu0 %vm272_vm0, %v10630_v40 }
 0x119   : > { %8952 = vmatprep.mubr.msk.f32.mxu0 %vm272_vm0, %v10634_v4 }
 0x11c   : > { %8953 = vmatmul.mubr.msk.f32.gmra.mrb[26].mxu0 %vm272_vm0, %v10642_v3 }
 0x11d   : > { %8955 = vmatprep.mubr.msk.f32.mxu0 %vm272_vm0, %v10644_v2 }
 0x120   : > { %8956 = vmatmul.mubr.msk.f32.gmra.mrb[28].mxu0 %vm272_vm0, %v10650_v38 }
 0x121   : > { %8958 = vmatprep.mubr.msk.f32.mxu0 %vm272_vm0, %v10845_v7 }
 0x124   : > { %8959 = vmatmul.mubr.msk.f32.gmra.mrb[30].mxu0 %vm272_vm0, %v10851_v11 }
 0x125   : > { %8963 = vmatprep.mubr.msk.f32.mxu0 %vm272_vm0, %v10346_v46  ;;  %v12269_v46 = vld [vmem:[#allocation3_spill] sm:$0xff] }
 0x128   : > { %8964 = vmatmul.mubr.msk.f32.vlgmr.msra.gmra.mrb[0].mxu0 %vm272_vm0, %v10354_v51  ;;  %v12270_v51 = vld [vmem:[#allocation4_spill] sm:$0xff] }
 0x129   : > { %9012 = vmatpush3.msra.mxu0 %v7732_v1  ;;  %8966 = vmatprep.mubr.msk.f32.mxu0 %vm272_vm0, %v10356_v52  ;;  %v10916_v52 = vld [vmem:[#allocation2 + $0x181] sm:$0xff]  ;;  %v12293_v1 = vld [vmem:[#allocation27_spill] sm:$0xff] }
 0x12a   : > { %9061 = vmatprep.subr.mxu0 %v7765_v43 }
 0x12c   : > { %8967 = vmatmul.mubr.msk.f32.gmra.mrb[2].mxu0 %vm272_vm0, %v10369_v58  ;;  %v12271_v58 = vld [vmem:[#allocation5_spill] sm:$0xff] }
 0x12d   : > { %8969 = vmatprep.mubr.msk.f32.mxu0 %vm272_vm0, %v10373_v62  ;;  %v10922_v62 = vld [vmem:[#allocation2 + $0x189] sm:$0xff] }
 0x130   : > { %8970 = vmatmul.mubr.msk.f32.gmra.mrb[4].mxu0 %vm272_vm0, %v10386_v6  ;;  %v12272_v6 = vld [vmem:[#allocation6_spill] sm:$0xff] }
 0x131   : > { %8972 = vmatprep.mubr.msk.f32.mxu0 %vm272_vm0, %v10390_v9  ;;  %v7798_v9 = vld [vmem:[%s12126_s2 + $0x38] sm:$0xff] }
 0x134   : > { %8973 = vmatmul.mubr.msk.f32.gmra.mrb[6].mxu0 %vm272_vm0, %v10399_v15  ;;  %v12273_v15 = vld [vmem:[#allocation7_spill] sm:$0xff] }
 0x135   : > { %8975 = vmatprep.mubr.msk.f32.mxu0 %vm272_vm0, %v10409_v23  ;;  %v12274_v23 = vld [vmem:[#allocation8_spill] sm:$0xff] }
 0x138   : > { %8976 = vmatmul.mubr.msk.f32.gmra.mrb[8].mxu0 %vm272_vm0, %v10424_v33  ;;  %v12275_v33 = vld [vmem:[#allocation9_spill] sm:$0xff] }
 0x139   : > { %8978 = vmatprep.mubr.msk.f32.mxu0 %vm272_vm0, %v10429_v37  ;;  %v12276_v37 = vld [vmem:[#allocation10_spill] sm:$0xff] }
 0x13c   : > { %8979 = vmatmul.mubr.msk.f32.gmra.mrb[10].mxu0 %vm272_vm0, %v10441_v44  ;;  %v12277_v44 = vld [vmem:[#allocation11_spill] sm:$0xff] }
 0x13d   : > { %8981 = vmatprep.mubr.msk.f32.mxu0 %vm272_vm0, %v10444_v45  ;;  %v12278_v45 = vld [vmem:[#allocation12_spill] sm:$0xff] }
 0x140   : > { %8982 = vmatmul.mubr.msk.f32.gmra.mrb[12].mxu0 %vm272_vm0, %v10451_v47  ;;  %v12279_v47 = vld [vmem:[#allocation13_spill] sm:$0xff] }
 0x141   : > { %8984 = vmatprep.mubr.msk.f32.mxu0 %vm272_vm0, %v10453_v48  ;;  %v12280_v48 = vld [vmem:[#allocation14_spill] sm:$0xff] }
 0x144   : > { %8985 = vmatmul.mubr.msk.f32.gmra.mrb[14].mxu0 %vm272_vm0, %v10459_v49  ;;  %v12281_v49 = vld [vmem:[#allocation15_spill] sm:$0xff] }
 0x145   : > { %8987 = vmatprep.mubr.msk.f32.mxu0 %vm272_vm0, %v10461_v50  ;;  %v12282_v50 = vld [vmem:[#allocation16_spill] sm:$0xff] }
 0x148   : > { %8988 = vmatmul.mubr.msk.f32.gmra.mrb[16].mxu0 %vm272_vm0, %v10467_v53  ;;  %v12283_v53 = vld [vmem:[#allocation17_spill] sm:$0xff] }
 0x149   : > { %8990 = vmatprep.mubr.msk.f32.mxu0 %vm272_vm0, %v10469_v54  ;;  %v12284_v54 = vld [vmem:[#allocation18_spill] sm:$0xff] }
 0x14c   : > { %8991 = vmatmul.mubr.msk.f32.gmra.mrb[18].mxu0 %vm272_vm0, %v10475_v55  ;;  %v12285_v55 = vld [vmem:[#allocation19_spill] sm:$0xff] }
 0x14d   : > { %8993 = vmatprep.mubr.msk.f32.mxu0 %vm272_vm0, %v10477_v56  ;;  %v12286_v56 = vld [vmem:[#allocation20_spill] sm:$0xff] }
 0x150   : > { %8994 = vmatmul.mubr.msk.f32.gmra.mrb[20].mxu0 %vm272_vm0, %v10483_v57  ;;  %v12287_v57 = vld [vmem:[#allocation21_spill] sm:$0xff] }
 0x151   : > { %8996 = vmatprep.mubr.msk.f32.mxu0 %vm272_vm0, %v10485_v59  ;;  %v12288_v59 = vld [vmem:[#allocation22_spill] sm:$0xff] }
 0x154   : > { %8997 = vmatmul.mubr.msk.f32.gmra.mrb[22].mxu0 %vm272_vm0, %v10491_v60  ;;  %v12289_v60 = vld [vmem:[#allocation23_spill] sm:$0xff] }
 0x155   : > { %8999 = vmatprep.mubr.msk.f32.mxu0 %vm272_vm0, %v10493_v61  ;;  %v12290_v61 = vld [vmem:[#allocation24_spill] sm:$0xff] }
 0x158   : > { %9000 = vmatmul.mubr.msk.f32.gmra.mrb[24].mxu0 %vm272_vm0, %v10499_v63  ;;  %v12291_v63 = vld [vmem:[#allocation25_spill] sm:$0xff] }
 0x159   : > { %9002 = vmatprep.mubr.msk.f32.mxu0 %vm272_vm0, %v10501_v0  ;;  %v12292_v0 = vld [vmem:[#allocation26_spill] sm:$0xff] }
 0x15c   : > { %9003 = vmatmul.mubr.msk.f32.gmra.mrb[26].mxu0 %vm272_vm0, %v12269_v46  ;;  %v12295_v46 = vld [vmem:[#allocation29_spill] sm:$0xff] }
 0x15d   : > { %9005 = vmatprep.mubr.msk.f32.mxu0 %vm272_vm0, %v12270_v51 }
 0x160   : > { %9006 = vmatmul.mubr.msk.f32.gmra.mrb[28].mxu0 %vm272_vm0, %v12271_v58 }
 0x161   : > { %9008 = vmatprep.mubr.msk.f32.mxu0 %vm272_vm0, %v10916_v52 }
 0x164   : > { %9009 = vmatmul.mubr.msk.f32.gmra.mrb[30].mxu0 %vm272_vm0, %v10922_v62 }
 0x165   : > { %9013 = vmatprep.mubr.msk.f32.mxu0 %vm272_vm0, %v12272_v6  ;;  %v12296_v6 = vld [vmem:[#allocation30_spill] sm:$0xff] }
 0x168   : > { %9014 = vmatmul.mubr.msk.f32.vlgmr.msra.gmra.mrb[0].mxu0 %vm272_vm0, %v12273_v15  ;;  %v10987_v15 = vld [vmem:[#allocation2 + $0x182] sm:$0xff] }
 0x169   : > { %9062 = vmatpush3.msra.mxu0 %v7765_v43  ;;  %9016 = vmatprep.mubr.msk.f32.mxu0 %vm272_vm0, %v12274_v23  ;;  %v12294_v43 = vld [vmem:[#allocation28_spill] sm:$0xff] }
 0x16a   : > { %9111 = vmatprep.subr.mxu0 %v7798_v9 }
 0x16c   : > { %9017 = vmatmul.mubr.msk.f32.gmra.mrb[2].mxu0 %vm272_vm0, %v12275_v33 }
 0x16d   : > { %9019 = vmatprep.mubr.msk.f32.mxu0 %vm272_vm0, %v12276_v37 }
 0x170   : > { %9020 = vmatmul.mubr.msk.f32.gmra.mrb[4].mxu0 %vm272_vm0, %v12277_v44 }
 0x171   : > { %9022 = vmatprep.mubr.msk.f32.mxu0 %vm272_vm0, %v12278_v45 }
 0x174   : > { %9023 = vmatmul.mubr.msk.f32.gmra.mrb[6].mxu0 %vm272_vm0, %v12279_v47 }
 0x175   : > { %9025 = vmatprep.mubr.msk.f32.mxu0 %vm272_vm0, %v12280_v48 }
 0x178   : > { %9026 = vmatmul.mubr.msk.f32.gmra.mrb[8].mxu0 %vm272_vm0, %v12281_v49 }
 0x179   : > { %9028 = vmatprep.mubr.msk.f32.mxu0 %vm272_vm0, %v12282_v50 }
 0x17c   : > { %9029 = vmatmul.mubr.msk.f32.gmra.mrb[10].mxu0 %vm272_vm0, %v12283_v53 }
 0x17d   : > { %9031 = vmatprep.mubr.msk.f32.mxu0 %vm272_vm0, %v12284_v54 }
 0x180   : > { %9032 = vmatmul.mubr.msk.f32.gmra.mrb[12].mxu0 %vm272_vm0, %v12285_v55 }
 0x181   : > { %9034 = vmatprep.mubr.msk.f32.mxu0 %vm272_vm0, %v12286_v56 }
 0x184   : > { %9035 = vmatmul.mubr.msk.f32.gmra.mrb[14].mxu0 %vm272_vm0, %v12287_v57 }
 0x185   : > { %9037 = vmatprep.mubr.msk.f32.mxu0 %vm272_vm0, %v12288_v59 }
 0x188   : > { %9038 = vmatmul.mubr.msk.f32.gmra.mrb[16].mxu0 %vm272_vm0, %v12289_v60 }
 0x189   : > { %9040 = vmatprep.mubr.msk.f32.mxu0 %vm272_vm0, %v12290_v61 }
 0x18c   : > { %9041 = vmatmul.mubr.msk.f32.gmra.mrb[18].mxu0 %vm272_vm0, %v12291_v63 }
 0x18d   : > { %9043 = vmatprep.mubr.msk.f32.mxu0 %vm272_vm0, %v12292_v0 }
 0x190   : > { %9044 = vmatmul.mubr.msk.f32.gmra.mrb[20].mxu0 %vm272_vm0, %v12293_v1 }
 0x191   : > { %9046 = vmatprep.mubr.msk.f32.mxu0 %vm272_vm0, %v12294_v43 }
 0x194   : > { %9047 = vmatmul.mubr.msk.f32.gmra.mrb[22].mxu0 %vm272_vm0, %v10755_v42 }
 0x195   : > { %9049 = vmatprep.mubr.msk.f32.mxu0 %vm272_vm0, %v12295_v46  ;;  %v10993_v46 = vld [vmem:[#allocation2 + $0x18a] sm:$0xff] }
 0x198   : > { %9050 = vmatmul.mubr.msk.f32.gmra.mrb[24].mxu0 %vm272_vm0, %v10763_v5 }
 0x199   : > { %9052 = vmatprep.mubr.msk.f32.mxu0 %vm272_vm0, %v12296_v6 }
 0x19c   : > { %9053 = vmatmul.mubr.msk.f32.gmra.mrb[26].mxu0 %vm272_vm0, %v10771_v39 }
 0x19d   : > { %9055 = vmatprep.mubr.msk.f32.mxu0 %vm272_vm0, %v10773_v41  ;;  %v7831_v41 = vld [vmem:[%s12126_s2 + $0x40] sm:$0xff] }
 0x1a0   : > { %9056 = vmatmul.mubr.msk.f32.gmra.mrb[28].mxu0 %vm272_vm0, %v10779_v8 }
 0x1a1   : > { %9058 = vmatprep.mubr.msk.f32.mxu0 %vm272_vm0, %v10987_v15 }
 0x1a4   : > { %9059 = vmatmul.mubr.msk.f32.gmra.mrb[30].mxu0 %vm272_vm0, %v10993_v46 }
 0x1a5   : > { %9063 = vmatprep.mubr.msk.f32.mxu0 %vm272_vm0, %v10533_v12  ;;  %v2735_v12 = vld [vmem:[#allocation2 + $0x198] sm:$0xff] }
 0x1a8   : > { %9064 = vmatmul.mubr.msk.f32.vlgmr.msra.gmra.mrb[0].mxu0 %vm272_vm0, %v10540_v13  ;;  %v2736_v13 = vld [vmem:[#allocation2 + $0x1a0] sm:$0xff] }
 0x1a9   : > { %9112 = vmatpush3.msra.mxu0 %v7798_v9  ;;  %9066 = vmatprep.mubr.msk.f32.mxu0 %vm272_vm0, %v10542_v14  ;;  %v3092_v14 = vld [vmem:[#allocation2 + $0x31] sm:$0xff]  ;;  %v11177_v9 = vld [vmem:[%s12127_s3] ss:$0 sm:$0xff] }
 0x1aa   : > { %9161 = vmatprep.subr.mxu0 %v7831_v41 }
 0x1ac   : > { %9067 = vmatmul.mubr.msk.f32.gmra.mrb[2].mxu0 %vm272_vm0, %v10548_v10  ;;  %v3095_v10 = vld [vmem:[#allocation2 + $0x51] sm:$0xff] }
 0x1ad   : > { %9069 = vmatprep.mubr.msk.f32.mxu0 %vm272_vm0, %v10550_v16  ;;  %v3096_v16 = vld [vmem:[#allocation2 + $0x61] sm:$0xff] }
 0x1b0   : > { %9070 = vmatmul.mubr.msk.f32.gmra.mrb[4].mxu0 %vm272_vm0, %v10556_v17  ;;  %v3097_v17 = vld [vmem:[#allocation2 + $0x69] sm:$0xff] }
 0x1b1   : > { %9072 = vmatprep.mubr.msk.f32.mxu0 %vm272_vm0, %v10558_v18  ;;  %v3098_v18 = vld [vmem:[#allocation2 + $0x79] sm:$0xff] }
 0x1b4   : > { %9073 = vmatmul.mubr.msk.f32.gmra.mrb[6].mxu0 %vm272_vm0, %v10564_v19  ;;  %v3099_v19 = vld [vmem:[#allocation2 + $0x81] sm:$0xff] }
 0x1b5   : > { %9075 = vmatprep.mubr.msk.f32.mxu0 %vm272_vm0, %v10566_v20  ;;  %v3100_v20 = vld [vmem:[#allocation2 + $0x91] sm:$0xff] }
 0x1b8   : > { %9076 = vmatmul.mubr.msk.f32.gmra.mrb[8].mxu0 %vm272_vm0, %v10572_v21  ;;  %v3101_v21 = vld [vmem:[#allocation2 + $0x99] sm:$0xff] }
 0x1b9   : > { %9078 = vmatprep.mubr.msk.f32.mxu0 %vm272_vm0, %v10574_v22  ;;  %v3102_v22 = vld [vmem:[#allocation2 + $0xa9] sm:$0xff] }
 0x1bc   : > { %9079 = vmatmul.mubr.msk.f32.gmra.mrb[10].mxu0 %vm272_vm0, %v10580_v24  ;;  %v3103_v24 = vld [vmem:[#allocation2 + $0xb1] sm:$0xff] }
 0x1bd   : > { %9081 = vmatprep.mubr.msk.f32.mxu0 %vm272_vm0, %v10582_v25  ;;  %v3104_v25 = vld [vmem:[#allocation2 + $0xc1] sm:$0xff] }
 0x1c0   : > { %9082 = vmatmul.mubr.msk.f32.gmra.mrb[12].mxu0 %vm272_vm0, %v10588_v26  ;;  %v3105_v26 = vld [vmem:[#allocation2 + $0xc9] sm:$0xff] }
 0x1c1   : > { %9084 = vmatprep.mubr.msk.f32.mxu0 %vm272_vm0, %v10590_v27  ;;  %v3106_v27 = vld [vmem:[#allocation2 + $0xd9] sm:$0xff] }
 0x1c4   : > { %9085 = vmatmul.mubr.msk.f32.gmra.mrb[14].mxu0 %vm272_vm0, %v10596_v28  ;;  %v3107_v28 = vld [vmem:[#allocation2 + $0xe1] sm:$0xff] }
 0x1c5   : > { %9087 = vmatprep.mubr.msk.f32.mxu0 %vm272_vm0, %v10598_v29  ;;  %v3108_v29 = vld [vmem:[#allocation2 + $0xf1] sm:$0xff] }
 0x1c8   : > { %9088 = vmatmul.mubr.msk.f32.gmra.mrb[16].mxu0 %vm272_vm0, %v10604_v30  ;;  %v3109_v30 = vld [vmem:[#allocation2 + $0xf9] sm:$0xff] }
 0x1c9   : > { %9090 = vmatprep.mubr.msk.f32.mxu0 %vm272_vm0, %v10606_v31  ;;  %v3110_v31 = vld [vmem:[#allocation2 + $0x109] sm:$0xff] }
 0x1cc   : > { %9091 = vmatmul.mubr.msk.f32.gmra.mrb[18].mxu0 %vm272_vm0, %v10612_v32  ;;  %v3111_v32 = vld [vmem:[#allocation2 + $0x111] sm:$0xff] }
 0x1cd   : > { %9093 = vmatprep.mubr.msk.f32.mxu0 %vm272_vm0, %v10614_v34  ;;  %v3112_v34 = vld [vmem:[#allocation2 + $0x121] sm:$0xff] }
 0x1d0   : > { %9094 = vmatmul.mubr.msk.f32.gmra.mrb[20].mxu0 %vm272_vm0, %v10620_v35  ;;  %v3113_v35 = vld [vmem:[#allocation2 + $0x129] sm:$0xff] }
 0x1d1   : > { %9096 = vmatprep.mubr.msk.f32.mxu0 %vm272_vm0, %v10622_v36  ;;  %v3114_v36 = vld [vmem:[#allocation2 + $0x139] sm:$0xff] }
 0x1d4   : > { %9097 = vmatmul.mubr.msk.f32.gmra.mrb[22].mxu0 %vm272_vm0, %v10630_v40  ;;  %v3115_v40 = vld [vmem:[#allocation2 + $0x141] sm:$0xff] }
 0x1d5   : > { %9099 = vmatprep.mubr.msk.f32.mxu0 %vm272_vm0, %v10634_v4  ;;  %v3116_v4 = vld [vmem:[#allocation2 + $0x151] sm:$0xff] }
 0x1d8   : > { %9100 = vmatmul.mubr.msk.f32.gmra.mrb[24].mxu0 %vm272_vm0, %v10642_v3  ;;  %v3093_v3 = vld [vmem:[#allocation2 + $0x39] sm:$0xff] }
 0x1d9   : > { %9102 = vmatprep.mubr.msk.f32.mxu0 %vm272_vm0, %v10644_v2  ;;  %v3094_v2 = vld [vmem:[#allocation2 + $0x49] sm:$0xff] }
 0x1dc   : > { %9103 = vmatmul.mubr.msk.f32.gmra.mrb[26].mxu0 %vm272_vm0, %v10650_v38  ;;  %v3117_v38 = vld [vmem:[#allocation2 + $0x159] sm:$0xff] }
 0x1dd   : > { %9105 = vmatprep.mubr.msk.f32.mxu0 %vm272_vm0, %v10845_v7  ;;  %v3123_v7 = vld [vmem:[#allocation2 + $0x1a1] sm:$0xff] }
 0x1e0   : > { %9106 = vmatmul.mubr.msk.f32.gmra.mrb[28].mxu0 %vm272_vm0, %v10851_v11  ;;  %v12297_v11 = vld [vmem:[#allocation29_spill] sm:$0xff] }
 0x1e1   : > { %9108 = vmatprep.mubr.msk.f32.mxu0 %vm272_vm0, %v2735_v12 }
 0x1e4   : > { %9109 = vmatmul.mubr.msk.f32.gmra.mrb[30].mxu0 %vm272_vm0, %v2736_v13 }
 0x1e5   : > { %9113 = vmatprep.mubr.msk.f32.mxu0 %vm272_vm0, %v3092_v14 }
 0x1e8   : > { %9114 = vmatmul.mubr.msk.f32.vlgmr.msra.gmra.mrb[0].mxu0 %vm272_vm0, %v3093_v3 }
 0x1e9   : > { %9162 = vmatpush3.msra.mxu0 %v7831_v41  ;;  %9116 = vmatprep.mubr.msk.f32.mxu0 %vm272_vm0, %v3094_v2  ;;  %v3122_v41 = vld [vmem:[#allocation2 + $0x199] sm:$0xff] }
 0x1ec   : > { %9117 = vmatmul.mubr.msk.f32.gmra.mrb[2].mxu0 %vm272_vm0, %v3095_v10 }
 0x1ed   : > { %9119 = vmatprep.mubr.msk.f32.mxu0 %vm272_vm0, %v3096_v16 }
 0x1f0   : > { %9120 = vmatmul.mubr.msk.f32.gmra.mrb[4].mxu0 %vm272_vm0, %v3097_v17 }
 0x1f1   : > { %9122 = vmatprep.mubr.msk.f32.mxu0 %vm272_vm0, %v3098_v18 }
 0x1f4   : > { %9123 = vmatmul.mubr.msk.f32.gmra.mrb[6].mxu0 %vm272_vm0, %v3099_v19 }
 0x1f5   : > { %9125 = vmatprep.mubr.msk.f32.mxu0 %vm272_vm0, %v3100_v20 }
 0x1f8   : > { %9126 = vmatmul.mubr.msk.f32.gmra.mrb[8].mxu0 %vm272_vm0, %v3101_v21 }
 0x1f9   : > { %9128 = vmatprep.mubr.msk.f32.mxu0 %vm272_vm0, %v3102_v22 }
 0x1fc   : > { %9129 = vmatmul.mubr.msk.f32.gmra.mrb[10].mxu0 %vm272_vm0, %v3103_v24 }
 0x1fd   : > { %9131 = vmatprep.mubr.msk.f32.mxu0 %vm272_vm0, %v3104_v25 }
 0x200   : > { %9132 = vmatmul.mubr.msk.f32.gmra.mrb[12].mxu0 %vm272_vm0, %v3105_v26 }
 0x201   : > { %9134 = vmatprep.mubr.msk.f32.mxu0 %vm272_vm0, %v3106_v27 }
 0x204   : > { %9135 = vmatmul.mubr.msk.f32.gmra.mrb[14].mxu0 %vm272_vm0, %v3107_v28 }
 0x205   : > { %9137 = vmatprep.mubr.msk.f32.mxu0 %vm272_vm0, %v3108_v29 }
 0x208   : > { %9138 = vmatmul.mubr.msk.f32.gmra.mrb[16].mxu0 %vm272_vm0, %v3109_v30 }
 0x209   : > { %9140 = vmatprep.mubr.msk.f32.mxu0 %vm272_vm0, %v3110_v31 }
 0x20c   : > { %9141 = vmatmul.mubr.msk.f32.gmra.mrb[18].mxu0 %vm272_vm0, %v3111_v32 }
 0x20d   : > { %9143 = vmatprep.mubr.msk.f32.mxu0 %vm272_vm0, %v3112_v34 }
 0x210   : > { %9144 = vmatmul.mubr.msk.f32.gmra.mrb[20].mxu0 %vm272_vm0, %v3113_v35 }
 0x211   : > { %9146 = vmatprep.mubr.msk.f32.mxu0 %vm272_vm0, %v3114_v36 }
 0x214   : > { %9147 = vmatmul.mubr.msk.f32.gmra.mrb[22].mxu0 %vm272_vm0, %v3115_v40 }
 0x215   : > { %9149 = vmatprep.mubr.msk.f32.mxu0 %vm272_vm0, %v3116_v4 }
 0x218   : > { %9150 = vmatmul.mubr.msk.f32.gmra.mrb[24].mxu0 %vm272_vm0, %v3117_v38 }
 0x219   : > { %9152 = vmatprep.mubr.msk.f32.mxu0 %vm272_vm0, %v12270_v51  ;;  %v12298_v51 = vld [vmem:[#allocation31_spill] sm:$0xff] }
 0x21c   : > { %9153 = vmatmul.mubr.msk.f32.gmra.mrb[26].mxu0 %vm272_vm0, %v12271_v58  ;;  %v4001_v58 = vld [vmem:[%s12128_s4] sm:$0xff] }
 0x21d   : > { %9155 = vmatprep.mubr.msk.f32.mxu0 %vm272_vm0, %v10916_v52  ;;  %v4002_v52 = vld [vmem:[#allocation2 + $0x1] sm:$0xff] }
 0x21e   : > { %9213 = vmatprep.mubr.msk.f32.mxu1 %vm272_vm0, %v4002_v52 }
 0x220   : > { %9156 = vmatmul.mubr.msk.f32.gmra.mrb[28].mxu0 %vm272_vm0, %v10922_v62  ;;  %v11171_v62 = vld [vmem:[%s12128_s4 + $0x10] sm:$0xff] }
 0x221   : > { %9158 = vmatprep.mubr.msk.f32.mxu0 %vm272_vm0, %v3122_v41 }
 0x224   : > { %9159 = vmatmul.mubr.msk.f32.gmra.mrb[30].mxu0 %vm272_vm0, %v3123_v7 }
 0x225   : > { %9163 = vmatprep.mubr.msk.f32.mxu0 %vm272_vm0, %v12274_v23 }
 0x228   : > { %9164 = vmatmul.mubr.msk.f32.vlgmr.msra.gmra.mrb[0].mxu0 %vm272_vm0, %v12275_v33 }
 0x229   : > { %9166 = vmatprep.mubr.msk.f32.mxu0 %vm272_vm0, %v12276_v37 }
 0x22c   : > { %9167 = vmatmul.mubr.msk.f32.gmra.mrb[2].mxu0 %vm272_vm0, %v12277_v44 }
 0x22d   : > { %9169 = vmatprep.mubr.msk.f32.mxu0 %vm272_vm0, %v12278_v45 }
 0x230   : > { %9170 = vmatmul.mubr.msk.f32.gmra.mrb[4].mxu0 %vm272_vm0, %v12279_v47 }
 0x231   : > { %9172 = vmatprep.mubr.msk.f32.mxu0 %vm272_vm0, %v12280_v48 }
 0x234   : > { %9173 = vmatmul.mubr.msk.f32.gmra.mrb[6].mxu0 %vm272_vm0, %v12281_v49 }
 0x235   : > { %9175 = vmatprep.mubr.msk.f32.mxu0 %vm272_vm0, %v12282_v50 }
 0x238   : > { %9176 = vmatmul.mubr.msk.f32.gmra.mrb[8].mxu0 %vm272_vm0, %v12283_v53 }
 0x239   : > { %9178 = vmatprep.mubr.msk.f32.mxu0 %vm272_vm0, %v12284_v54 }
 0x23c   : > { %9179 = vmatmul.mubr.msk.f32.gmra.mrb[10].mxu0 %vm272_vm0, %v12285_v55 }
 0x23d   : > { %9181 = vmatprep.mubr.msk.f32.mxu0 %vm272_vm0, %v12286_v56 }
 0x240   : > { %9182 = vmatmul.mubr.msk.f32.gmra.mrb[12].mxu0 %vm272_vm0, %v12287_v57 }
 0x241   : > { %9184 = vmatprep.mubr.msk.f32.mxu0 %vm272_vm0, %v12288_v59 }
 0x244   : > { %9185 = vmatmul.mubr.msk.f32.gmra.mrb[14].mxu0 %vm272_vm0, %v12289_v60 }
 0x245   : > { %9187 = vmatprep.mubr.msk.f32.mxu0 %vm272_vm0, %v12290_v61 }
 0x248   : > { %9188 = vmatmul.mubr.msk.f32.gmra.mrb[16].mxu0 %vm272_vm0, %v12291_v63 }
 0x249   : > { %9190 = vmatprep.mubr.msk.f32.mxu0 %vm272_vm0, %v12292_v0 }
 0x24c   : > { %9191 = vmatmul.mubr.msk.f32.gmra.mrb[18].mxu0 %vm272_vm0, %v12293_v1 }
 0x24d   : > { %9193 = vmatprep.mubr.msk.f32.mxu0 %vm272_vm0, %v12294_v43 }
 0x250   : > { %9194 = vmatmul.mubr.msk.f32.gmra.mrb[20].mxu0 %vm272_vm0, %v10755_v42  ;;  %v3509_v42 = vld [vmem:[#allocation2 + $0x19a] sm:$0xff] }
 0x251   : > { %9196 = vmatprep.mubr.msk.f32.mxu0 %vm272_vm0, %v12297_v11 }
 0x254   : > { %9197 = vmatmul.mubr.msk.f32.gmra.mrb[22].mxu0 %vm272_vm0, %v10763_v5  ;;  %v3510_v5 = vld [vmem:[#allocation2 + $0x1a2] sm:$0xff] }
 0x255   : > { %9199 = vmatprep.mubr.msk.f32.mxu0 %vm272_vm0, %v12296_v6 }
 0x258   : > { %9200 = vmatmul.mubr.msk.f32.gmra.mrb[24].mxu0 %vm272_vm0, %v10771_v39  ;;  %v7865_v39 = vld [vmem:[%s12128_s4 + $0x8] sm:$0xff] }
 0x259   : > { %9202 = vmatprep.mubr.msk.f32.mxu0 %vm272_vm0, %v12298_v51  ;;  %9211 = vmatprep.subr.mxu1 %v7865_v39 }
 0x25a   : > { %9212 = vmatpush3.msra.mxu1 %v7865_v39 }
 0x25b   : > { %9261 = vmatprep.subr.mxu1 %v4001_v58 }
 0x25c   : > { %9203 = vmatmul.mubr.msk.f32.gmra.mrb[26].mxu0 %vm272_vm0, %v10779_v8  ;;  %v4003_v8 = vld [vmem:[#allocation2 + $0x9] sm:$0xff] }
 0x25d   : > { %9205 = vmatprep.mubr.msk.f32.mxu0 %vm272_vm0, %v10987_v15  ;;  %9214 = vmatmul.mubr.msk.f32.vlgmr.msra.gmra.mrb[0].mxu1 %vm272_vm0, %v4003_v8 }
 0x25e   : > { %9262 = vmatpush3.msra.mxu1 %v4001_v58 }
 0x25f   : > { %9311 = vmatprep.subr.mxu1 %v11171_v62 }
 0x260   : > { %9206 = vmatmul.mubr.msk.f32.gmra.mrb[28].mxu0 %vm272_vm0, %v10993_v46 }
 0x261   : > { %9208 = vmatprep.mubr.msk.f32.mxu0 %vm272_vm0, %v3509_v42 }
 0x264   : > { %9209 = vmatmul.mubr.msk.f32.gmra.mrb[30].mxu0 %vm272_vm0, %v3510_v5 }
 0x2fb   : > { %v9165_v23 = vpop.f32.mrb[0].mxu0 }
 0x2fc   : > { %v3874_v33 = vadd.f32 %v9165_v23, %v11177_v9  ;;  %v3675_v37 = vpop.f32.mrb[1].mxu0 }
 0x2fd   : > { %v3873_v44 = vadd.f32 %v11177_v9, %v3675_v37 }
 0x2fe   : > { %v3906_v45 = vmax.f32 %v3874_v33, 0.0 }
 0x2ff   : > { %v3905_v47 = vmax.f32 %v3873_v44, 0.0  ;;  %v9168_v48 = vpop.f32.mrb[2].mxu0 }
 0x300   : > { %3938 = vst.msk [vmem:[#allocation2 + $0x21] sm:$0xff] %vm272_vm0, %v3906_v45  ;;  %v3876_v49 = vadd.f32 %v9168_v48, %v11177_v9  ;;  %v3685_v50 = vpop.f32.mrb[3].mxu0 }
 0x301   : > { %3937 = vst.msk [vmem:[#allocation2 + $0x19] sm:$0xff] %vm272_vm0, %v3905_v47  ;;  %v3875_v53 = vadd.f32 %v11177_v9, %v3685_v50 }
 0x302   : > { %v3908_v54 = vmax.f32 %v3876_v49, 0.0 }
 0x303   : > { %v3907_v55 = vmax.f32 %v3875_v53, 0.0  ;;  %v9171_v56 = vpop.f32.mrb[4].mxu0 }
 0x304   : > { %3940 = vst.msk [vmem:[#allocation2 + $0x39] sm:$0xff] %vm272_vm0, %v3908_v54  ;;  %v3878_v57 = vadd.f32 %v9171_v56, %v11177_v9  ;;  %v3695_v59 = vpop.f32.mrb[5].mxu0 }
 0x305   : > { %3939 = vst.msk [vmem:[#allocation2 + $0x31] sm:$0xff] %vm272_vm0, %v3907_v55  ;;  %v3877_v60 = vadd.f32 %v11177_v9, %v3695_v59 }
 0x306   : > { %v3910_v61 = vmax.f32 %v3878_v57, 0.0 }
 0x307   : > { %v3909_v63 = vmax.f32 %v3877_v60, 0.0  ;;  %v9174_v0 = vpop.f32.mrb[6].mxu0  ;;  %v11197_v15 = vld [vmem:[#allocation2 + $0x21] sm:$0xff] }
 0x308   : > { %3942 = vst.msk [vmem:[#allocation2 + $0x51] sm:$0xff] %vm272_vm0, %v3910_v61  ;;  %v3880_v1 = vadd.f32 %v9174_v0, %v11177_v9  ;;  %v3705_v43 = vpop.f32.mrb[7].mxu0  ;;  %v11191_v46 = vld [vmem:[#allocation2 + $0x19] sm:$0xff] }
 0x309   : > { %3941 = vst.msk [vmem:[#allocation2 + $0x49] sm:$0xff] %vm272_vm0, %v3909_v63  ;;  %v3879_v6 = vadd.f32 %v11177_v9, %v3705_v43  ;;  %9216 = vmatprep.mubr.msk.f32.mxu1 %vm272_vm0, %v11191_v46 }
 0x30a   : > { %v3912_v12 = vmax.f32 %v3880_v1, 0.0  ;;  %9217 = vmatmul.mubr.msk.f32.gmra.mrb[2].mxu1 %vm272_vm0, %v11197_v15 }
 0x30b   : > { %v3911_v13 = vmax.f32 %v3879_v6, 0.0  ;;  %v9177_v14 = vpop.f32.mrb[8].mxu0  ;;  %v11209_v17 = vld [vmem:[#allocation2 + $0x39] sm:$0xff] }
 0x30c   : > { %3944 = vst.msk [vmem:[#allocation2 + $0x69] sm:$0xff] %vm272_vm0, %v3912_v12  ;;  %v3882_v3 = vadd.f32 %v9177_v14, %v11177_v9  ;;  %v3715_v2 = vpop.f32.mrb[9].mxu0  ;;  %v11203_v10 = vld [vmem:[#allocation2 + $0x31] sm:$0xff] }
 0x30d   : > { %3943 = vst.msk [vmem:[#allocation2 + $0x61] sm:$0xff] %vm272_vm0, %v3911_v13  ;;  %v3881_v16 = vadd.f32 %v11177_v9, %v3715_v2  ;;  %9219 = vmatprep.mubr.msk.f32.mxu1 %vm272_vm0, %v11203_v10 }
 0x30e   : > { %v3914_v18 = vmax.f32 %v3882_v3, 0.0  ;;  %9220 = vmatmul.mubr.msk.f32.gmra.mrb[4].mxu1 %vm272_vm0, %v11209_v17 }
 0x30f   : > { %v3913_v19 = vmax.f32 %v3881_v16, 0.0  ;;  %v9180_v20 = vpop.f32.mrb[10].mxu0  ;;  %v11221_v26 = vld [vmem:[#allocation2 + $0x51] sm:$0xff] }
 0x310   : > { %3946 = vst.msk [vmem:[#allocation2 + $0x81] sm:$0xff] %vm272_vm0, %v3914_v18  ;;  %v3884_v21 = vadd.f32 %v9180_v20, %v11177_v9  ;;  %v3725_v22 = vpop.f32.mrb[11].mxu0  ;;  %v11215_v24 = vld [vmem:[#allocation2 + $0x49] sm:$0xff] }
 0x311   : > { %3945 = vst.msk [vmem:[#allocation2 + $0x79] sm:$0xff] %vm272_vm0, %v3913_v19  ;;  %v3883_v25 = vadd.f32 %v11177_v9, %v3725_v22  ;;  %9222 = vmatprep.mubr.msk.f32.mxu1 %vm272_vm0, %v11215_v24 }
 0x312   : > { %v3916_v27 = vmax.f32 %v3884_v21, 0.0  ;;  %9223 = vmatmul.mubr.msk.f32.gmra.mrb[6].mxu1 %vm272_vm0, %v11221_v26 }
 0x313   : > { %v3915_v28 = vmax.f32 %v3883_v25, 0.0  ;;  %v9183_v29 = vpop.f32.mrb[12].mxu0  ;;  %v11233_v35 = vld [vmem:[#allocation2 + $0x69] sm:$0xff] }
 0x314   : > { %3948 = vst.msk [vmem:[#allocation2 + $0x99] sm:$0xff] %vm272_vm0, %v3916_v27  ;;  %v3886_v30 = vadd.f32 %v9183_v29, %v11177_v9  ;;  %v3735_v31 = vpop.f32.mrb[13].mxu0  ;;  %v11227_v32 = vld [vmem:[#allocation2 + $0x61] sm:$0xff] }
 0x315   : > { %3947 = vst.msk [vmem:[#allocation2 + $0x91] sm:$0xff] %vm272_vm0, %v3915_v28  ;;  %v3885_v34 = vadd.f32 %v11177_v9, %v3735_v31  ;;  %9225 = vmatprep.mubr.msk.f32.mxu1 %vm272_vm0, %v11227_v32 }
 0x316   : > { %v3918_v36 = vmax.f32 %v3886_v30, 0.0  ;;  %9226 = vmatmul.mubr.msk.f32.gmra.mrb[8].mxu1 %vm272_vm0, %v11233_v35 }
 0x317   : > { %v3917_v40 = vmax.f32 %v3885_v34, 0.0  ;;  %v9186_v4 = vpop.f32.mrb[14].mxu0  ;;  %v11245_v51 = vld [vmem:[#allocation2 + $0x81] sm:$0xff] }
 0x318   : > { %3950 = vst.msk [vmem:[#allocation2 + $0xb1] sm:$0xff] %vm272_vm0, %v3918_v36  ;;  %v3888_v38 = vadd.f32 %v9186_v4, %v11177_v9  ;;  %v3745_v41 = vpop.f32.mrb[15].mxu0  ;;  %v11239_v7 = vld [vmem:[#allocation2 + $0x79] sm:$0xff] }
 0x319   : > { %3949 = vst.msk [vmem:[#allocation2 + $0xa9] sm:$0xff] %vm272_vm0, %v3917_v40  ;;  %v3887_v11 = vadd.f32 %v11177_v9, %v3745_v41  ;;  %9228 = vmatprep.mubr.msk.f32.mxu1 %vm272_vm0, %v11239_v7 }
 0x31a   : > { %v3920_v42 = vmax.f32 %v3888_v38, 0.0  ;;  %9229 = vmatmul.mubr.msk.f32.gmra.mrb[10].mxu1 %vm272_vm0, %v11245_v51 }
 0x31b   : > { %v3919_v5 = vmax.f32 %v3887_v11, 0.0  ;;  %v9189_v39 = vpop.f32.mrb[16].mxu0  ;;  %v11257_v33 = vld [vmem:[#allocation2 + $0x99] sm:$0xff] }
 0x31c   : > { %3952 = vst.msk [vmem:[#allocation2 + $0xc9] sm:$0xff] %vm272_vm0, %v3920_v42  ;;  %v3890_v52 = vadd.f32 %v9189_v39, %v11177_v9  ;;  %v3755_v8 = vpop.f32.mrb[17].mxu0  ;;  %v11251_v58 = vld [vmem:[#allocation2 + $0x91] sm:$0xff] }
 0x31d   : > { %3951 = vst.msk [vmem:[#allocation2 + $0xc1] sm:$0xff] %vm272_vm0, %v3919_v5  ;;  %v3889_v23 = vadd.f32 %v11177_v9, %v3755_v8  ;;  %9231 = vmatprep.mubr.msk.f32.mxu1 %vm272_vm0, %v11251_v58 }
 0x31e   : > { %v3922_v37 = vmax.f32 %v3890_v52, 0.0  ;;  %9232 = vmatmul.mubr.msk.f32.gmra.mrb[12].mxu1 %vm272_vm0, %v11257_v33 }
 0x31f   : > { %v3921_v44 = vmax.f32 %v3889_v23, 0.0  ;;  %v9192_v45 = vpop.f32.mrb[18].mxu0  ;;  %v11269_v53 = vld [vmem:[#allocation2 + $0xb1] sm:$0xff] }
 0x320   : > { %3954 = vst.msk [vmem:[#allocation2 + $0xe1] sm:$0xff] %vm272_vm0, %v3922_v37  ;;  %v3892_v47 = vadd.f32 %v9192_v45, %v11177_v9  ;;  %v3765_v48 = vpop.f32.mrb[19].mxu0  ;;  %v11263_v49 = vld [vmem:[#allocation2 + $0xa9] sm:$0xff] }
 0x321   : > { %3953 = vst.msk [vmem:[#allocation2 + $0xd9] sm:$0xff] %vm272_vm0, %v3921_v44  ;;  %v3891_v50 = vadd.f32 %v11177_v9, %v3765_v48  ;;  %9234 = vmatprep.mubr.msk.f32.mxu1 %vm272_vm0, %v11263_v49 }
 0x322   : > { %v3924_v54 = vmax.f32 %v3892_v47, 0.0  ;;  %9235 = vmatmul.mubr.msk.f32.gmra.mrb[14].mxu1 %vm272_vm0, %v11269_v53 }
 0x323   : > { %v3923_v55 = vmax.f32 %v3891_v50, 0.0  ;;  %v9195_v56 = vpop.f32.mrb[20].mxu0  ;;  %v11281_v63 = vld [vmem:[#allocation2 + $0xc9] sm:$0xff] }
 0x324   : > { %3956 = vst.msk [vmem:[#allocation2 + $0xf9] sm:$0xff] %vm272_vm0, %v3924_v54  ;;  %v3894_v57 = vadd.f32 %v9195_v56, %v11177_v9  ;;  %v3775_v59 = vpop.f32.mrb[21].mxu0  ;;  %v11275_v60 = vld [vmem:[#allocation2 + $0xc1] sm:$0xff] }
 0x325   : > { %3955 = vst.msk [vmem:[#allocation2 + $0xf1] sm:$0xff] %vm272_vm0, %v3923_v55  ;;  %v3893_v61 = vadd.f32 %v11177_v9, %v3775_v59  ;;  %9237 = vmatprep.mubr.msk.f32.mxu1 %vm272_vm0, %v11275_v60  ;;  %v3969_v59 = vld [vmem:[#allocation2] sm:$0xff] }
 0x326   : > { %v3926_v0 = vmax.f32 %v3894_v57, 0.0  ;;  %9238 = vmatmul.mubr.msk.f32.gmra.mrb[16].mxu1 %vm272_vm0, %v11281_v63 }
 0x327   : > { %v3925_v1 = vmax.f32 %v3893_v61, 0.0  ;;  %v9198_v43 = vpop.f32.mrb[22].mxu0  ;;  %v11293_v3 = vld [vmem:[#allocation2 + $0xe1] sm:$0xff] }
 0x328   : > { %3958 = vst.msk [vmem:[#allocation2 + $0x111] sm:$0xff] %vm272_vm0, %v3926_v0  ;;  %v3896_v6 = vadd.f32 %v9198_v43, %v11177_v9  ;;  %v3785_v12 = vpop.f32.mrb[23].mxu0  ;;  %v11287_v13 = vld [vmem:[#allocation2 + $0xd9] sm:$0xff]  ;;  %v3970_v0 = vld [vmem:[#allocation2 + $0x8] sm:$0xff] }
 0x329   : > { %3957 = vst.msk [vmem:[#allocation2 + $0x109] sm:$0xff] %vm272_vm0, %v3925_v1  ;;  %v3895_v14 = vadd.f32 %v11177_v9, %v3785_v12  ;;  %9240 = vmatprep.mubr.msk.f32.mxu1 %vm272_vm0, %v11287_v13  ;;  %v11367_v1 = vld [vmem:[%s12128_s4 + $0x18] sm:$0xff]  ;;  %v11380_v12 = vld [vmem:[#allocation2 + $0x30] sm:$0xff] }
 0x32a   : > { %v3928_v2 = vmax.f32 %v3896_v6, 0.0  ;;  %9241 = vmatmul.mubr.msk.f32.gmra.mrb[18].mxu1 %vm272_vm0, %v11293_v3  ;;  %v11370_v43 = vld [vmem:[#allocation2 + $0x18] sm:$0xff]  ;;  %v11376_v6 = vld [vmem:[#allocation2 + $0x20] sm:$0xff] }
 0x32b   : > { %v3927_v16 = vmax.f32 %v3895_v14, 0.0  ;;  %v9201_v18 = vpop.f32.mrb[24].mxu0  ;;  %v11305_v25 = vld [vmem:[#allocation2 + $0xf9] sm:$0xff] }
 0x32c   : > { %3960 = vst.msk [vmem:[#allocation2 + $0x129] sm:$0xff] %vm272_vm0, %v3928_v2  ;;  %v3898_v19 = vadd.f32 %v9201_v18, %v11177_v9  ;;  %v3795_v20 = vpop.f32.mrb[25].mxu0  ;;  %v11299_v21 = vld [vmem:[#allocation2 + $0xf1] sm:$0xff]  ;;  %v11400_v18 = vld [vmem:[#allocation2 + $0x68] sm:$0xff] }
 0x32d   : > { %3959 = vst.msk [vmem:[#allocation2 + $0x121] sm:$0xff] %vm272_vm0, %v3927_v16  ;;  %v3897_v22 = vadd.f32 %v11177_v9, %v3795_v20  ;;  %9243 = vmatprep.mubr.msk.f32.mxu1 %vm272_vm0, %v11299_v21  ;;  %v11384_v14 = vld [vmem:[#allocation2 + $0x38] sm:$0xff]  ;;  %v11392_v2 = vld [vmem:[#allocation2 + $0x50] sm:$0xff]  ;;  %v11396_v16 = vld [vmem:[#allocation2 + $0x60] sm:$0xff] }
 0x32e   : > { %v3930_v27 = vmax.f32 %v3898_v19, 0.0  ;;  %9244 = vmatmul.mubr.msk.f32.gmra.mrb[20].mxu1 %vm272_vm0, %v11305_v25  ;;  %v11404_v19 = vld [vmem:[#allocation2 + $0x78] sm:$0xff]  ;;  %v11408_v20 = vld [vmem:[#allocation2 + $0x80] sm:$0xff] }
 0x32f   : > { %v3929_v28 = vmax.f32 %v3897_v22, 0.0  ;;  %v9204_v29 = vpop.f32.mrb[26].mxu0  ;;  %v11317_v40 = vld [vmem:[#allocation2 + $0x111] sm:$0xff] }
 0x330   : > { %3962 = vst.msk [vmem:[#allocation2 + $0x141] sm:$0xff] %vm272_vm0, %v3930_v27  ;;  %v3900_v30 = vadd.f32 %v9204_v29, %v11177_v9  ;;  %v3805_v31 = vpop.f32.mrb[27].mxu0  ;;  %v11311_v34 = vld [vmem:[#allocation2 + $0x109] sm:$0xff]  ;;  %v11416_v27 = vld [vmem:[#allocation2 + $0x98] sm:$0xff] }
 0x331   : > { %3961 = vst.msk [vmem:[#allocation2 + $0x139] sm:$0xff] %vm272_vm0, %v3929_v28  ;;  %v3899_v36 = vadd.f32 %v11177_v9, %v3805_v31  ;;  %9246 = vmatprep.mubr.msk.f32.mxu1 %vm272_vm0, %v11311_v34  ;;  %v11412_v22 = vld [vmem:[#allocation2 + $0x90] sm:$0xff]  ;;  %v11420_v28 = vld [vmem:[#allocation2 + $0xa8] sm:$0xff] }
 0x332   : > { %v3932_v4 = vmax.f32 %v3900_v30, 0.0  ;;  %9247 = vmatmul.mubr.msk.f32.gmra.mrb[22].mxu1 %vm272_vm0, %v11317_v40  ;;  %v11424_v29 = vld [vmem:[#allocation2 + $0xb0] sm:$0xff]  ;;  %v11428_v30 = vld [vmem:[#allocation2 + $0xc0] sm:$0xff]  ;;  %v11432_v31 = vld [vmem:[#allocation2 + $0xc8] sm:$0xff] }
 0x333   : > { %v3931_v38 = vmax.f32 %v3899_v36, 0.0  ;;  %v9207_v41 = vpop.f32.mrb[28].mxu0  ;;  %v11329_v52 = vld [vmem:[#allocation2 + $0x129] sm:$0xff]  ;;  %v11436_v36 = vld [vmem:[#allocation2 + $0xd8] sm:$0xff] }
 0x334   : > { %3964 = vst.msk [vmem:[#allocation2 + $0x159] sm:$0xff] %vm272_vm0, %v3932_v4  ;;  %v3902_v11 = vadd.f32 %v9207_v41, %v11177_v9  ;;  %v3815_v42 = vpop.f32.mrb[29].mxu0  ;;  %v11323_v5 = vld [vmem:[#allocation2 + $0x121] sm:$0xff]  ;;  %v11448_v41 = vld [vmem:[#allocation2 + $0xf8] sm:$0xff] }
 0x335   : > { %3963 = vst.msk [vmem:[#allocation2 + $0x151] sm:$0xff] %vm272_vm0, %v3931_v38  ;;  %v3901_v39 = vadd.f32 %v11177_v9, %v3815_v42  ;;  %9249 = vmatprep.mubr.msk.f32.mxu1 %vm272_vm0, %v11323_v5  ;;  %v11440_v4 = vld [vmem:[#allocation2 + $0xe0] sm:$0xff]  ;;  %v11444_v38 = vld [vmem:[#allocation2 + $0xf0] sm:$0xff] }
 0x336   : > { %v3934_v8 = vmax.f32 %v3902_v11, 0.0  ;;  %9250 = vmatmul.mubr.msk.f32.gmra.mrb[24].mxu1 %vm272_vm0, %v11329_v52  ;;  %v11452_v11 = vld [vmem:[#allocation2 + $0x108] sm:$0xff]  ;;  %v11456_v42 = vld [vmem:[#allocation2 + $0x110] sm:$0xff] }
 0x337   : > { %v3933_v23 = vmax.f32 %v3901_v39, 0.0  ;;  %v9210_v37 = vpop.f32.mrb[30].mxu0  ;;  %v11341_v50 = vld [vmem:[#allocation2 + $0x141] sm:$0xff] }
 0x338   : > { %3966 = vst.msk [vmem:[#allocation2 + $0x171] sm:$0xff] %vm272_vm0, %v3934_v8  ;;  %v3904_v44 = vadd.f32 %v9210_v37, %v11177_v9  ;;  %v3825_v45 = vpop.f32.mrb[31].mxu0  ;;  %v11335_v47 = vld [vmem:[#allocation2 + $0x139] sm:$0xff]  ;;  %v11464_v8 = vld [vmem:[#allocation2 + $0x128] sm:$0xff] }
 0x339   : > { %3965 = vst.msk [vmem:[#allocation2 + $0x169] sm:$0xff] %vm272_vm0, %v3933_v23  ;;  %v3903_v48 = vadd.f32 %v11177_v9, %v3825_v45  ;;  %9252 = vmatprep.mubr.msk.f32.mxu1 %vm272_vm0, %v11335_v47  ;;  %v11460_v39 = vld [vmem:[#allocation2 + $0x120] sm:$0xff]  ;;  %v11468_v23 = vld [vmem:[#allocation2 + $0x138] sm:$0xff] }
 0x33a   : > { %v3936_v54 = vmax.f32 %v3904_v44, 0.0  ;;  %9253 = vmatmul.mubr.msk.f32.gmra.mrb[26].mxu1 %vm272_vm0, %v11341_v50  ;;  %v11472_v37 = vld [vmem:[#allocation2 + $0x140] sm:$0xff] }
 0x33b   : > { %v3935_v55 = vmax.f32 %v3903_v48, 0.0  ;;  %v11351_v9 = vld [vmem:[#allocation2 + $0x159] sm:$0xff] }
 0x33c   : > { %3968 = vst.msk [vmem:[#allocation2 + $0x189] sm:$0xff] %vm272_vm0, %v3936_v54  ;;  %v11346_v56 = vld [vmem:[#allocation2 + $0x151] sm:$0xff]  ;;  %v4678_v54 = vld [vmem:[#allocation2 + $0x2] sm:$0xff] }
 0x33d   : > { %3967 = vst.msk [vmem:[#allocation2 + $0x181] sm:$0xff] %vm272_vm0, %v3935_v55  ;;  %9255 = vmatprep.mubr.msk.f32.mxu1 %vm272_vm0, %v11346_v56  ;;  %v11476_v44 = vld [vmem:[#allocation2 + $0x150] sm:$0xff]  ;;  %v11480_v45 = vld [vmem:[#allocation2 + $0x158] sm:$0xff] }
 0x33e   : > { %9256 = vmatmul.mubr.msk.f32.gmra.mrb[28].mxu1 %vm272_vm0, %v11351_v9 }
 0x33f   : > { %v11359_v61 = vld [vmem:[#allocation2 + $0x171] sm:$0xff] }
 0x340   : > { %v11355_v57 = vld [vmem:[#allocation2 + $0x169] sm:$0xff]  ;;  %12300 = vst [vmem:[#allocation4_spill] sm:$0xff] %v11359_v61 }
 0x341   : > { %12299 = vst [vmem:[#allocation3_spill] sm:$0xff] %v11355_v57  ;;  %9258 = vmatprep.mubr.msk.f32.mxu1 %vm272_vm0, %v11355_v57  ;;  %v11484_v48 = vld [vmem:[#allocation2 + $0x168] sm:$0xff]  ;;  %v11488_v55 = vld [vmem:[#allocation2 + $0x170] sm:$0xff] }
 0x342   : > { %9259 = vmatmul.mubr.msk.f32.gmra.mrb[30].mxu1 %vm272_vm0, %v11359_v61  ;;  %v11499_v61 = vld [vmem:[#allocation2 + $0x1a] sm:$0xff]  ;;  %v11505_v57 = vld [vmem:[#allocation2 + $0x22] sm:$0xff] }
 0x343   : > { %9263 = vmatprep.mubr.msk.f32.mxu1 %vm272_vm0, %v3969_v59  ;;  %v4679_v59 = vld [vmem:[#allocation2 + $0xa] sm:$0xff]  ;;  %12301 = vst [vmem:[#allocation5_spill] sm:$0xff] %v11499_v61  ;;  %12302 = vst [vmem:[#allocation6_spill] sm:$0xff] %v11505_v57 }
 0x346   : > { %9264 = vmatmul.mubr.msk.f32.vlgmr.msra.gmra.mrb[0].mxu1 %vm272_vm0, %v3970_v0  ;;  %v11496_v0 = vld [vmem:[%s12128_s4 + $0x20] sm:$0xff] }
 0x347   : > { %9312 = vmatpush3.msra.mxu1 %v11171_v62  ;;  %9266 = vmatprep.mubr.msk.f32.mxu1 %vm272_vm0, %v11370_v43  ;;  %v11388_v62 = vld [vmem:[#allocation2 + $0x48] sm:$0xff] }
 0x348   : > { %9361 = vmatprep.subr.mxu1 %v11367_v1 }
 0x34a   : > { %9267 = vmatmul.mubr.msk.f32.gmra.mrb[2].mxu1 %vm272_vm0, %v11376_v6 }
 0x34b   : > { %9269 = vmatprep.mubr.msk.f32.mxu1 %vm272_vm0, %v11380_v12 }
 0x34e   : > { %9270 = vmatmul.mubr.msk.f32.gmra.mrb[4].mxu1 %vm272_vm0, %v11384_v14 }
 0x34f   : > { %9272 = vmatprep.mubr.msk.f32.mxu1 %vm272_vm0, %v11388_v62 }
 0x352   : > { %9273 = vmatmul.mubr.msk.f32.gmra.mrb[6].mxu1 %vm272_vm0, %v11392_v2 }
 0x353   : > { %9275 = vmatprep.mubr.msk.f32.mxu1 %vm272_vm0, %v11396_v16 }
 0x356   : > { %9276 = vmatmul.mubr.msk.f32.gmra.mrb[8].mxu1 %vm272_vm0, %v11400_v18 }
 0x357   : > { %9278 = vmatprep.mubr.msk.f32.mxu1 %vm272_vm0, %v11404_v19 }
 0x35a   : > { %9279 = vmatmul.mubr.msk.f32.gmra.mrb[10].mxu1 %vm272_vm0, %v11408_v20 }
 0x35b   : > { %9281 = vmatprep.mubr.msk.f32.mxu1 %vm272_vm0, %v11412_v22 }
 0x35e   : > { %9282 = vmatmul.mubr.msk.f32.gmra.mrb[12].mxu1 %vm272_vm0, %v11416_v27 }
 0x35f   : > { %9284 = vmatprep.mubr.msk.f32.mxu1 %vm272_vm0, %v11420_v28 }
 0x362   : > { %9285 = vmatmul.mubr.msk.f32.gmra.mrb[14].mxu1 %vm272_vm0, %v11424_v29 }
 0x363   : > { %9287 = vmatprep.mubr.msk.f32.mxu1 %vm272_vm0, %v11428_v30 }
 0x366   : > { %9288 = vmatmul.mubr.msk.f32.gmra.mrb[16].mxu1 %vm272_vm0, %v11432_v31 }
 0x367   : > { %9290 = vmatprep.mubr.msk.f32.mxu1 %vm272_vm0, %v11436_v36 }
 0x36a   : > { %9291 = vmatmul.mubr.msk.f32.gmra.mrb[18].mxu1 %vm272_vm0, %v11440_v4 }
 0x36b   : > { %9293 = vmatprep.mubr.msk.f32.mxu1 %vm272_vm0, %v11444_v38 }
 0x36e   : > { %9294 = vmatmul.mubr.msk.f32.gmra.mrb[20].mxu1 %vm272_vm0, %v11448_v41 }
 0x36f   : > { %9296 = vmatprep.mubr.msk.f32.mxu1 %vm272_vm0, %v11452_v11 }
 0x372   : > { %9297 = vmatmul.mubr.msk.f32.gmra.mrb[22].mxu1 %vm272_vm0, %v11456_v42 }
 0x373   : > { %9299 = vmatprep.mubr.msk.f32.mxu1 %vm272_vm0, %v11460_v39 }
 0x376   : > { %9300 = vmatmul.mubr.msk.f32.gmra.mrb[24].mxu1 %vm272_vm0, %v11464_v8 }
 0x377   : > { %9302 = vmatprep.mubr.msk.f32.mxu1 %vm272_vm0, %v11468_v23 }
 0x37a   : > { %9303 = vmatmul.mubr.msk.f32.gmra.mrb[26].mxu1 %vm272_vm0, %v11472_v37 }
 0x37b   : > { %9305 = vmatprep.mubr.msk.f32.mxu1 %vm272_vm0, %v11476_v44 }
 0x37e   : > { %9306 = vmatmul.mubr.msk.f32.gmra.mrb[28].mxu1 %vm272_vm0, %v11480_v45 }
 0x37f   : > { %9308 = vmatprep.mubr.msk.f32.mxu1 %vm272_vm0, %v11484_v48 }
 0x382   : > { %9309 = vmatmul.mubr.msk.f32.gmra.mrb[30].mxu1 %vm272_vm0, %v11488_v55 }
 0x383   : > { %9313 = vmatprep.mubr.msk.f32.mxu1 %vm272_vm0, %v4678_v54  ;;  %v11509_v54 = vld [vmem:[#allocation2 + $0x32] sm:$0xff] }
 0x384   : > { %12303 = vst [vmem:[#allocation7_spill] sm:$0xff] %v11509_v54 }
 0x386   : > { %9314 = vmatmul.mubr.msk.f32.vlgmr.msra.gmra.mrb[0].mxu1 %vm272_vm0, %v4679_v59  ;;  %v11513_v59 = vld [vmem:[#allocation2 + $0x3a] sm:$0xff] }
 0x387   : > { %9362 = vmatpush3.msra.mxu1 %v11367_v1  ;;  %9316 = vmatprep.mubr.msk.f32.mxu1 %vm272_vm0, %v11499_v61  ;;  %12304 = vst [vmem:[#allocation8_spill] sm:$0xff] %v11513_v59  ;;  %v11517_v1 = vld [vmem:[#allocation2 + $0x4a] sm:$0xff]  ;;  %v11521_v61 = vld [vmem:[#allocation2 + $0x52] sm:$0xff] }
 0x388   : > { %9411 = vmatprep.subr.mxu1 %v11496_v0  ;;  %12305 = vst [vmem:[#allocation9_spill] sm:$0xff] %v11517_v1  ;;  %12306 = vst [vmem:[#allocation10_spill] sm:$0xff] %v11521_v61 }
 0x38a   : > { %9317 = vmatmul.mubr.msk.f32.gmra.mrb[2].mxu1 %vm272_vm0, %v11505_v57  ;;  %v11525_v57 = vld [vmem:[#allocation2 + $0x62] sm:$0xff] }
 0x38b   : > { %9319 = vmatprep.mubr.msk.f32.mxu1 %vm272_vm0, %v11509_v54  ;;  %12307 = vst [vmem:[#allocation11_spill] sm:$0xff] %v11525_v57  ;;  %v11529_v54 = vld [vmem:[#allocation2 + $0x6a] sm:$0xff] }
 0x38c   : > { %12308 = vst [vmem:[#allocation12_spill] sm:$0xff] %v11529_v54 }
 0x38e   : > { %9320 = vmatmul.mubr.msk.f32.gmra.mrb[4].mxu1 %vm272_vm0, %v11513_v59  ;;  %v11533_v59 = vld [vmem:[#allocation2 + $0x7a] sm:$0xff] }
 0x38f   : > { %9322 = vmatprep.mubr.msk.f32.mxu1 %vm272_vm0, %v11517_v1  ;;  %12309 = vst [vmem:[#allocation13_spill] sm:$0xff] %v11533_v59  ;;  %v11537_v1 = vld [vmem:[#allocation2 + $0x82] sm:$0xff] }
 0x390   : > { %12310 = vst [vmem:[#allocation14_spill] sm:$0xff] %v11537_v1 }
 0x392   : > { %9323 = vmatmul.mubr.msk.f32.gmra.mrb[6].mxu1 %vm272_vm0, %v11521_v61  ;;  %v11541_v61 = vld [vmem:[#allocation2 + $0x92] sm:$0xff] }
 0x393   : > { %9325 = vmatprep.mubr.msk.f32.mxu1 %vm272_vm0, %v11525_v57  ;;  %12311 = vst [vmem:[#allocation15_spill] sm:$0xff] %v11541_v61  ;;  %v11545_v57 = vld [vmem:[#allocation2 + $0x9a] sm:$0xff] }
 0x394   : > { %12312 = vst [vmem:[#allocation16_spill] sm:$0xff] %v11545_v57 }
 0x396   : > { %9326 = vmatmul.mubr.msk.f32.gmra.mrb[8].mxu1 %vm272_vm0, %v11529_v54  ;;  %v11549_v54 = vld [vmem:[#allocation2 + $0xaa] sm:$0xff] }
 0x397   : > { %9328 = vmatprep.mubr.msk.f32.mxu1 %vm272_vm0, %v11533_v59  ;;  %12313 = vst [vmem:[#allocation17_spill] sm:$0xff] %v11549_v54  ;;  %v11553_v59 = vld [vmem:[#allocation2 + $0xb2] sm:$0xff] }
 0x398   : > { %12314 = vst [vmem:[#allocation18_spill] sm:$0xff] %v11553_v59 }
 0x39a   : > { %9329 = vmatmul.mubr.msk.f32.gmra.mrb[10].mxu1 %vm272_vm0, %v11537_v1  ;;  %v11557_v1 = vld [vmem:[#allocation2 + $0xc2] sm:$0xff] }
 0x39b   : > { %9331 = vmatprep.mubr.msk.f32.mxu1 %vm272_vm0, %v11541_v61  ;;  %12315 = vst [vmem:[#allocation19_spill] sm:$0xff] %v11557_v1  ;;  %v11561_v61 = vld [vmem:[#allocation2 + $0xca] sm:$0xff] }
 0x39c   : > { %12316 = vst [vmem:[#allocation20_spill] sm:$0xff] %v11561_v61 }
 0x39e   : > { %9332 = vmatmul.mubr.msk.f32.gmra.mrb[12].mxu1 %vm272_vm0, %v11545_v57  ;;  %v11565_v57 = vld [vmem:[#allocation2 + $0xda] sm:$0xff] }
 0x39f   : > { %9334 = vmatprep.mubr.msk.f32.mxu1 %vm272_vm0, %v11549_v54  ;;  %12317 = vst [vmem:[#allocation21_spill] sm:$0xff] %v11565_v57  ;;  %v11569_v54 = vld [vmem:[#allocation2 + $0xe2] sm:$0xff] }
 0x3a0   : > { %12318 = vst [vmem:[#allocation22_spill] sm:$0xff] %v11569_v54 }
 0x3a2   : > { %9335 = vmatmul.mubr.msk.f32.gmra.mrb[14].mxu1 %vm272_vm0, %v11553_v59  ;;  %v11573_v59 = vld [vmem:[#allocation2 + $0xf2] sm:$0xff] }
 0x3a3   : > { %9337 = vmatprep.mubr.msk.f32.mxu1 %vm272_vm0, %v11557_v1  ;;  %12319 = vst [vmem:[#allocation23_spill] sm:$0xff] %v11573_v59  ;;  %v11577_v1 = vld [vmem:[#allocation2 + $0xfa] sm:$0xff] }
 0x3a4   : > { %12320 = vst [vmem:[#allocation24_spill] sm:$0xff] %v11577_v1 }
 0x3a6   : > { %9338 = vmatmul.mubr.msk.f32.gmra.mrb[16].mxu1 %vm272_vm0, %v11561_v61  ;;  %v11581_v61 = vld [vmem:[#allocation2 + $0x10a] sm:$0xff] }
 0x3a7   : > { %9340 = vmatprep.mubr.msk.f32.mxu1 %vm272_vm0, %v11565_v57  ;;  %12321 = vst [vmem:[#allocation25_spill] sm:$0xff] %v11581_v61  ;;  %v11585_v57 = vld [vmem:[#allocation2 + $0x112] sm:$0xff] }
 0x3a8   : > { %12322 = vst [vmem:[#allocation26_spill] sm:$0xff] %v11585_v57 }
 0x3aa   : > { %9341 = vmatmul.mubr.msk.f32.gmra.mrb[18].mxu1 %vm272_vm0, %v11569_v54  ;;  %v11589_v54 = vld [vmem:[#allocation2 + $0x122] sm:$0xff] }
 0x3ab   : > { %9343 = vmatprep.mubr.msk.f32.mxu1 %vm272_vm0, %v11573_v59  ;;  %12323 = vst [vmem:[#allocation27_spill] sm:$0xff] %v11589_v54  ;;  %v11593_v59 = vld [vmem:[#allocation2 + $0x12a] sm:$0xff] }
 0x3ac   : > { %12324 = vst [vmem:[#allocation28_spill] sm:$0xff] %v11593_v59 }
 0x3ae   : > { %9344 = vmatmul.mubr.msk.f32.gmra.mrb[20].mxu1 %vm272_vm0, %v11577_v1  ;;  %v11597_v1 = vld [vmem:[#allocation2 + $0x13a] sm:$0xff] }
 0x3af   : > { %9346 = vmatprep.mubr.msk.f32.mxu1 %vm272_vm0, %v11581_v61  ;;  %12325 = vst [vmem:[#allocation30_spill] sm:$0xff] %v11597_v1  ;;  %v11601_v61 = vld [vmem:[#allocation2 + $0x142] sm:$0xff] }
 0x3b2   : > { %9347 = vmatmul.mubr.msk.f32.gmra.mrb[22].mxu1 %vm272_vm0, %v11585_v57  ;;  %v11605_v57 = vld [vmem:[#allocation2 + $0x152] sm:$0xff] }
 0x3b3   : > { %9349 = vmatprep.mubr.msk.f32.mxu1 %vm272_vm0, %v11589_v54  ;;  %12326 = vst [vmem:[#allocation29_spill] sm:$0xff] %v11605_v57  ;;  %v11609_v54 = vld [vmem:[#allocation2 + $0x15a] sm:$0xff] }
 0x3b6   : > { %9350 = vmatmul.mubr.msk.f32.gmra.mrb[24].mxu1 %vm272_vm0, %v11593_v59  ;;  %v11613_v59 = vld [vmem:[#allocation2 + $0x16a] sm:$0xff] }
 0x3b7   : > { %9352 = vmatprep.mubr.msk.f32.mxu1 %vm272_vm0, %v11597_v1  ;;  %12327 = vst [vmem:[#allocation31_spill] sm:$0xff] %v11613_v59  ;;  %v11617_v1 = vld [vmem:[#allocation2 + $0x172] sm:$0xff] }
 0x3ba   : > { %9353 = vmatmul.mubr.msk.f32.gmra.mrb[26].mxu1 %vm272_vm0, %v11601_v61 }
 0x3bb   : > { %9355 = vmatprep.mubr.msk.f32.mxu1 %vm272_vm0, %v11605_v57  ;;  %v8029_v57 = vld [vmem:[%s12128_s4 + $0x28] sm:$0xff] }
 0x3be   : > { %9356 = vmatmul.mubr.msk.f32.gmra.mrb[28].mxu1 %vm272_vm0, %v11609_v54 }
 0x3bf   : > { %9358 = vmatprep.mubr.msk.f32.mxu1 %vm272_vm0, %v11613_v59 }
 0x3c2   : > { %9359 = vmatmul.mubr.msk.f32.gmra.mrb[30].mxu1 %vm272_vm0, %v11617_v1 }
 0x3c3   : > { %9363 = vmatprep.mubr.msk.f32.mxu1 %vm272_vm0, %v11370_v43  ;;  %v11685_v43 = vld [vmem:[#allocation2 + $0x180] sm:$0xff] }
 0x3c6   : > { %9364 = vmatmul.mubr.msk.f32.vlgmr.msra.gmra.mrb[0].mxu1 %vm272_vm0, %v11376_v6  ;;  %v11689_v6 = vld [vmem:[#allocation2 + $0x188] sm:$0xff] }
 0x3c7   : > { %9412 = vmatpush3.msra.mxu1 %v11496_v0  ;;  %9366 = vmatprep.mubr.msk.f32.mxu1 %vm272_vm0, %v11380_v12  ;;  %v8062_v0 = vld [vmem:[%s12128_s4 + $0x30] sm:$0xff] }
 0x3c8   : > { %9461 = vmatprep.subr.mxu1 %v8029_v57 }
 0x3ca   : > { %9367 = vmatmul.mubr.msk.f32.gmra.mrb[2].mxu1 %vm272_vm0, %v11384_v14 }
 0x3cb   : > { %9369 = vmatprep.mubr.msk.f32.mxu1 %vm272_vm0, %v11388_v62 }
 0x3ce   : > { %9370 = vmatmul.mubr.msk.f32.gmra.mrb[4].mxu1 %vm272_vm0, %v11392_v2 }
 0x3cf   : > { %9372 = vmatprep.mubr.msk.f32.mxu1 %vm272_vm0, %v11396_v16 }
 0x3d2   : > { %9373 = vmatmul.mubr.msk.f32.gmra.mrb[6].mxu1 %vm272_vm0, %v11400_v18 }
 0x3d3   : > { %9375 = vmatprep.mubr.msk.f32.mxu1 %vm272_vm0, %v11404_v19 }
 0x3d6   : > { %9376 = vmatmul.mubr.msk.f32.gmra.mrb[8].mxu1 %vm272_vm0, %v11408_v20 }
 0x3d7   : > { %9378 = vmatprep.mubr.msk.f32.mxu1 %vm272_vm0, %v11412_v22 }
 0x3da   : > { %9379 = vmatmul.mubr.msk.f32.gmra.mrb[10].mxu1 %vm272_vm0, %v11416_v27 }
 0x3db   : > { %9381 = vmatprep.mubr.msk.f32.mxu1 %vm272_vm0, %v11420_v28 }
 0x3de   : > { %9382 = vmatmul.mubr.msk.f32.gmra.mrb[12].mxu1 %vm272_vm0, %v11424_v29 }
 0x3df   : > { %9384 = vmatprep.mubr.msk.f32.mxu1 %vm272_vm0, %v11428_v30 }
 0x3e2   : > { %9385 = vmatmul.mubr.msk.f32.gmra.mrb[14].mxu1 %vm272_vm0, %v11432_v31 }
 0x3e3   : > { %9387 = vmatprep.mubr.msk.f32.mxu1 %vm272_vm0, %v11436_v36 }
 0x3e6   : > { %9388 = vmatmul.mubr.msk.f32.gmra.mrb[16].mxu1 %vm272_vm0, %v11440_v4 }
 0x3e7   : > { %9390 = vmatprep.mubr.msk.f32.mxu1 %vm272_vm0, %v11444_v38 }
 0x3ea   : > { %9391 = vmatmul.mubr.msk.f32.gmra.mrb[18].mxu1 %vm272_vm0, %v11448_v41 }
 0x3eb   : > { %9393 = vmatprep.mubr.msk.f32.mxu1 %vm272_vm0, %v11452_v11 }
 0x3ee   : > { %9394 = vmatmul.mubr.msk.f32.gmra.mrb[20].mxu1 %vm272_vm0, %v11456_v42 }
 0x3ef   : > { %9396 = vmatprep.mubr.msk.f32.mxu1 %vm272_vm0, %v11460_v39 }
 0x3f2   : > { %9397 = vmatmul.mubr.msk.f32.gmra.mrb[22].mxu1 %vm272_vm0, %v11464_v8 }
 0x3f3   : > { %9399 = vmatprep.mubr.msk.f32.mxu1 %vm272_vm0, %v11468_v23 }
 0x3f6   : > { %9400 = vmatmul.mubr.msk.f32.gmra.mrb[24].mxu1 %vm272_vm0, %v11472_v37 }
 0x3f7   : > { %9402 = vmatprep.mubr.msk.f32.mxu1 %vm272_vm0, %v11476_v44 }
 0x3fa   : > { %9403 = vmatmul.mubr.msk.f32.gmra.mrb[26].mxu1 %vm272_vm0, %v11480_v45 }
 0x3fb   : > { %9405 = vmatprep.mubr.msk.f32.mxu1 %vm272_vm0, %v11484_v48 }
 0x3fe   : > { %9406 = vmatmul.mubr.msk.f32.gmra.mrb[28].mxu1 %vm272_vm0, %v11488_v55 }
 0x3ff   : > { %9408 = vmatprep.mubr.msk.f32.mxu1 %vm272_vm0, %v11685_v43 }
 0x402   : > { %9409 = vmatmul.mubr.msk.f32.gmra.mrb[30].mxu1 %vm272_vm0, %v11689_v6 }
 0x403   : > { %9413 = vmatprep.mubr.msk.f32.mxu1 %vm272_vm0, %v11191_v46  ;;  %v12328_v46 = vld [vmem:[#allocation3_spill] sm:$0xff] }
 0x406   : > { %9414 = vmatmul.mubr.msk.f32.vlgmr.msra.gmra.mrb[0].mxu1 %vm272_vm0, %v11197_v15  ;;  %v12329_v15 = vld [vmem:[#allocation4_spill] sm:$0xff] }
 0x407   : > { %9462 = vmatpush3.msra.mxu1 %v8029_v57  ;;  %9416 = vmatprep.mubr.msk.f32.mxu1 %vm272_vm0, %v11203_v10  ;;  %v11756_v10 = vld [vmem:[#allocation2 + $0x181] sm:$0xff]  ;;  %v12337_v57 = vld [vmem:[#allocation12_spill] sm:$0xff] }
 0x408   : > { %9511 = vmatprep.subr.mxu1 %v8062_v0 }
 0x40a   : > { %9417 = vmatmul.mubr.msk.f32.gmra.mrb[2].mxu1 %vm272_vm0, %v11209_v17  ;;  %v11760_v17 = vld [vmem:[#allocation2 + $0x189] sm:$0xff] }
 0x40b   : > { %9419 = vmatprep.mubr.msk.f32.mxu1 %vm272_vm0, %v11215_v24  ;;  %v12330_v24 = vld [vmem:[#allocation5_spill] sm:$0xff] }
 0x40e   : > { %9420 = vmatmul.mubr.msk.f32.gmra.mrb[4].mxu1 %vm272_vm0, %v11221_v26  ;;  %v8095_v26 = vld [vmem:[%s12128_s4 + $0x38] sm:$0xff] }
 0x40f   : > { %9422 = vmatprep.mubr.msk.f32.mxu1 %vm272_vm0, %v11227_v32  ;;  %v12331_v32 = vld [vmem:[#allocation6_spill] sm:$0xff] }
 0x412   : > { %9423 = vmatmul.mubr.msk.f32.gmra.mrb[6].mxu1 %vm272_vm0, %v11233_v35  ;;  %v12332_v35 = vld [vmem:[#allocation7_spill] sm:$0xff] }
 0x413   : > { %9425 = vmatprep.mubr.msk.f32.mxu1 %vm272_vm0, %v11239_v7  ;;  %v12333_v7 = vld [vmem:[#allocation8_spill] sm:$0xff] }
 0x416   : > { %9426 = vmatmul.mubr.msk.f32.gmra.mrb[8].mxu1 %vm272_vm0, %v11245_v51  ;;  %v12334_v51 = vld [vmem:[#allocation9_spill] sm:$0xff] }
 0x417   : > { %9428 = vmatprep.mubr.msk.f32.mxu1 %vm272_vm0, %v11251_v58  ;;  %v12335_v58 = vld [vmem:[#allocation10_spill] sm:$0xff] }
 0x41a   : > { %9429 = vmatmul.mubr.msk.f32.gmra.mrb[10].mxu1 %vm272_vm0, %v11257_v33  ;;  %v12336_v33 = vld [vmem:[#allocation11_spill] sm:$0xff] }
 0x41b   : > { %9431 = vmatprep.mubr.msk.f32.mxu1 %vm272_vm0, %v11263_v49 }
 0x41e   : > { %9432 = vmatmul.mubr.msk.f32.gmra.mrb[12].mxu1 %vm272_vm0, %v11269_v53 }
 0x41f   : > { %9434 = vmatprep.mubr.msk.f32.mxu1 %vm272_vm0, %v11275_v60 }
 0x422   : > { %9435 = vmatmul.mubr.msk.f32.gmra.mrb[14].mxu1 %vm272_vm0, %v11281_v63 }
 0x423   : > { %9437 = vmatprep.mubr.msk.f32.mxu1 %vm272_vm0, %v11287_v13 }
 0x426   : > { %9438 = vmatmul.mubr.msk.f32.gmra.mrb[16].mxu1 %vm272_vm0, %v11293_v3 }
 0x427   : > { %9440 = vmatprep.mubr.msk.f32.mxu1 %vm272_vm0, %v11299_v21 }
 0x42a   : > { %9441 = vmatmul.mubr.msk.f32.gmra.mrb[18].mxu1 %vm272_vm0, %v11305_v25 }
 0x42b   : > { %9443 = vmatprep.mubr.msk.f32.mxu1 %vm272_vm0, %v11311_v34 }
 0x42e   : > { %9444 = vmatmul.mubr.msk.f32.gmra.mrb[20].mxu1 %vm272_vm0, %v11317_v40 }
 0x42f   : > { %9446 = vmatprep.mubr.msk.f32.mxu1 %vm272_vm0, %v11323_v5 }
 0x432   : > { %9447 = vmatmul.mubr.msk.f32.gmra.mrb[22].mxu1 %vm272_vm0, %v11329_v52 }
 0x433   : > { %9449 = vmatprep.mubr.msk.f32.mxu1 %vm272_vm0, %v11335_v47 }
 0x436   : > { %9450 = vmatmul.mubr.msk.f32.gmra.mrb[24].mxu1 %vm272_vm0, %v11341_v50 }
 0x437   : > { %9452 = vmatprep.mubr.msk.f32.mxu1 %vm272_vm0, %v11346_v56 }
 0x43a   : > { %9453 = vmatmul.mubr.msk.f32.gmra.mrb[26].mxu1 %vm272_vm0, %v11351_v9 }
 0x43b   : > { %9455 = vmatprep.mubr.msk.f32.mxu1 %vm272_vm0, %v12328_v46 }
 0x43e   : > { %9456 = vmatmul.mubr.msk.f32.gmra.mrb[28].mxu1 %vm272_vm0, %v12329_v15 }
 0x43f   : > { %9458 = vmatprep.mubr.msk.f32.mxu1 %vm272_vm0, %v11756_v10 }
 0x442   : > { %9459 = vmatmul.mubr.msk.f32.gmra.mrb[30].mxu1 %vm272_vm0, %v11760_v17 }
 0x443   : > { %9463 = vmatprep.mubr.msk.f32.mxu1 %vm272_vm0, %v12330_v24  ;;  %v12339_v24 = vld [vmem:[#allocation14_spill] sm:$0xff] }
 0x446   : > { %9464 = vmatmul.mubr.msk.f32.vlgmr.msra.gmra.mrb[0].mxu1 %vm272_vm0, %v12331_v32  ;;  %v12340_v32 = vld [vmem:[#allocation15_spill] sm:$0xff] }
 0x447   : > { %9512 = vmatpush3.msra.mxu1 %v8062_v0  ;;  %9466 = vmatprep.mubr.msk.f32.mxu1 %vm272_vm0, %v12332_v35  ;;  %v12338_v0 = vld [vmem:[#allocation13_spill] sm:$0xff] }
 0x448   : > { %9561 = vmatprep.subr.mxu1 %v8095_v26 }
 0x44a   : > { %9467 = vmatmul.mubr.msk.f32.gmra.mrb[2].mxu1 %vm272_vm0, %v12333_v7  ;;  %v12341_v7 = vld [vmem:[#allocation16_spill] sm:$0xff] }
 0x44b   : > { %9469 = vmatprep.mubr.msk.f32.mxu1 %vm272_vm0, %v12334_v51  ;;  %v12342_v51 = vld [vmem:[#allocation17_spill] sm:$0xff] }
 0x44e   : > { %9470 = vmatmul.mubr.msk.f32.gmra.mrb[4].mxu1 %vm272_vm0, %v12335_v58  ;;  %v12343_v58 = vld [vmem:[#allocation18_spill] sm:$0xff] }
 0x44f   : > { %9472 = vmatprep.mubr.msk.f32.mxu1 %vm272_vm0, %v12336_v33  ;;  %v12344_v33 = vld [vmem:[#allocation19_spill] sm:$0xff] }
 0x452   : > { %9473 = vmatmul.mubr.msk.f32.gmra.mrb[6].mxu1 %vm272_vm0, %v12337_v57  ;;  %v12345_v57 = vld [vmem:[#allocation20_spill] sm:$0xff] }
 0x453   : > { %9475 = vmatprep.mubr.msk.f32.mxu1 %vm272_vm0, %v12338_v0  ;;  %v12346_v0 = vld [vmem:[#allocation21_spill] sm:$0xff] }
 0x456   : > { %9476 = vmatmul.mubr.msk.f32.gmra.mrb[8].mxu1 %vm272_vm0, %v12339_v24  ;;  %v12347_v24 = vld [vmem:[#allocation22_spill] sm:$0xff] }
 0x457   : > { %9478 = vmatprep.mubr.msk.f32.mxu1 %vm272_vm0, %v12340_v32  ;;  %v12348_v32 = vld [vmem:[#allocation23_spill] sm:$0xff] }
 0x45a   : > { %9479 = vmatmul.mubr.msk.f32.gmra.mrb[10].mxu1 %vm272_vm0, %v12341_v7  ;;  %v12349_v7 = vld [vmem:[#allocation24_spill] sm:$0xff] }
 0x45b   : > { %9481 = vmatprep.mubr.msk.f32.mxu1 %vm272_vm0, %v12342_v51  ;;  %v12350_v51 = vld [vmem:[#allocation25_spill] sm:$0xff] }
 0x45e   : > { %9482 = vmatmul.mubr.msk.f32.gmra.mrb[12].mxu1 %vm272_vm0, %v12343_v58  ;;  %v12351_v58 = vld [vmem:[#allocation26_spill] sm:$0xff] }
 0x45f   : > { %9484 = vmatprep.mubr.msk.f32.mxu1 %vm272_vm0, %v12344_v33  ;;  %v12352_v33 = vld [vmem:[#allocation27_spill] sm:$0xff] }
 0x462   : > { %9485 = vmatmul.mubr.msk.f32.gmra.mrb[14].mxu1 %vm272_vm0, %v12345_v57  ;;  %v12353_v57 = vld [vmem:[#allocation28_spill] sm:$0xff] }
 0x463   : > { %9487 = vmatprep.mubr.msk.f32.mxu1 %vm272_vm0, %v12346_v0  ;;  %v12354_v0 = vld [vmem:[#allocation30_spill] sm:$0xff] }
 0x466   : > { %9488 = vmatmul.mubr.msk.f32.gmra.mrb[16].mxu1 %vm272_vm0, %v12347_v24 }
 0x467   : > { %9490 = vmatprep.mubr.msk.f32.mxu1 %vm272_vm0, %v12348_v32  ;;  %v12355_v32 = vld [vmem:[#allocation29_spill] sm:$0xff] }
 0x46a   : > { %9491 = vmatmul.mubr.msk.f32.gmra.mrb[18].mxu1 %vm272_vm0, %v12349_v7 }
 0x46b   : > { %9493 = vmatprep.mubr.msk.f32.mxu1 %vm272_vm0, %v12350_v51 }
 0x46e   : > { %9494 = vmatmul.mubr.msk.f32.gmra.mrb[20].mxu1 %vm272_vm0, %v12351_v58 }
 0x46f   : > { %9496 = vmatprep.mubr.msk.f32.mxu1 %vm272_vm0, %v12352_v33  ;;  %v11827_v33 = vld [vmem:[#allocation2 + $0x182] sm:$0xff] }
 0x472   : > { %9497 = vmatmul.mubr.msk.f32.gmra.mrb[22].mxu1 %vm272_vm0, %v12353_v57 }
 0x473   : > { %9499 = vmatprep.mubr.msk.f32.mxu1 %vm272_vm0, %v12354_v0  ;;  %v11831_v0 = vld [vmem:[#allocation2 + $0x18a] sm:$0xff] }
 0x476   : > { %9500 = vmatmul.mubr.msk.f32.gmra.mrb[24].mxu1 %vm272_vm0, %v11601_v61 }
 0x477   : > { %9502 = vmatprep.mubr.msk.f32.mxu1 %vm272_vm0, %v12355_v32 }
 0x47a   : > { %9503 = vmatmul.mubr.msk.f32.gmra.mrb[26].mxu1 %vm272_vm0, %v11609_v54 }
 0x47b   : > { %9505 = vmatprep.mubr.msk.f32.mxu1 %vm272_vm0, %v11613_v59  ;;  %v8128_v59 = vld [vmem:[%s12128_s4 + $0x40] sm:$0xff] }
 0x47e   : > { %9506 = vmatmul.mubr.msk.f32.gmra.mrb[28].mxu1 %vm272_vm0, %v11617_v1 }
 0x47f   : > { %9508 = vmatprep.mubr.msk.f32.mxu1 %vm272_vm0, %v11827_v33 }
 0x482   : > { %9509 = vmatmul.mubr.msk.f32.gmra.mrb[30].mxu1 %vm272_vm0, %v11831_v0 }
 0x483   : > { %9513 = vmatprep.mubr.msk.f32.mxu1 %vm272_vm0, %v11380_v12  ;;  %v6256_v12 = vld [vmem:[#allocation2 + $0x198] sm:$0xff] }
 0x486   : > { %9514 = vmatmul.mubr.msk.f32.vlgmr.msra.gmra.mrb[0].mxu1 %vm272_vm0, %v11384_v14  ;;  %v6257_v14 = vld [vmem:[#allocation2 + $0x1a0] sm:$0xff] }
 0x487   : > { %9562 = vmatpush3.msra.mxu1 %v8095_v26  ;;  %9516 = vmatprep.mubr.msk.f32.mxu1 %vm272_vm0, %v11388_v62  ;;  %v6613_v62 = vld [vmem:[#allocation2 + $0x31] sm:$0xff] }
 0x488   : > { %9611 = vmatprep.subr.mxu1 %v8128_v59 }
 0x48a   : > { %9517 = vmatmul.mubr.msk.f32.gmra.mrb[2].mxu1 %vm272_vm0, %v11392_v2  ;;  %v6614_v2 = vld [vmem:[#allocation2 + $0x39] sm:$0xff] }
 0x48b   : > { %9519 = vmatprep.mubr.msk.f32.mxu1 %vm272_vm0, %v11396_v16  ;;  %v6615_v16 = vld [vmem:[#allocation2 + $0x49] sm:$0xff] }
 0x48e   : > { %9520 = vmatmul.mubr.msk.f32.gmra.mrb[4].mxu1 %vm272_vm0, %v11400_v18  ;;  %v6616_v18 = vld [vmem:[#allocation2 + $0x51] sm:$0xff] }
 0x48f   : > { %9522 = vmatprep.mubr.msk.f32.mxu1 %vm272_vm0, %v11404_v19  ;;  %v6617_v19 = vld [vmem:[#allocation2 + $0x61] sm:$0xff] }
 0x492   : > { %9523 = vmatmul.mubr.msk.f32.gmra.mrb[6].mxu1 %vm272_vm0, %v11408_v20  ;;  %v6618_v20 = vld [vmem:[#allocation2 + $0x69] sm:$0xff] }
 0x493   : > { %9525 = vmatprep.mubr.msk.f32.mxu1 %vm272_vm0, %v11412_v22  ;;  %v6619_v22 = vld [vmem:[#allocation2 + $0x79] sm:$0xff] }
 0x496   : > { %9526 = vmatmul.mubr.msk.f32.gmra.mrb[8].mxu1 %vm272_vm0, %v11416_v27  ;;  %v6620_v27 = vld [vmem:[#allocation2 + $0x81] sm:$0xff] }
 0x497   : > { %9528 = vmatprep.mubr.msk.f32.mxu1 %vm272_vm0, %v11420_v28  ;;  %v6621_v28 = vld [vmem:[#allocation2 + $0x91] sm:$0xff] }
 0x49a   : > { %9529 = vmatmul.mubr.msk.f32.gmra.mrb[10].mxu1 %vm272_vm0, %v11424_v29  ;;  %v6622_v29 = vld [vmem:[#allocation2 + $0x99] sm:$0xff] }
 0x49b   : > { %9531 = vmatprep.mubr.msk.f32.mxu1 %vm272_vm0, %v11428_v30  ;;  %v12370_v30 = vld [vmem:[#allocation23_spill] sm:$0xff] }
 0x49e   : > { %9532 = vmatmul.mubr.msk.f32.gmra.mrb[12].mxu1 %vm272_vm0, %v11432_v31  ;;  %v12371_v31 = vld [vmem:[#allocation27_spill] sm:$0xff] }
 0x49f   : > { %9534 = vmatprep.mubr.msk.f32.mxu1 %vm272_vm0, %v11436_v36  ;;  %v12372_v36 = vld [vmem:[#allocation30_spill] sm:$0xff] }
 0x4a2   : > { %9535 = vmatmul.mubr.msk.f32.gmra.mrb[14].mxu1 %vm272_vm0, %v11440_v4  ;;  %v12373_v4 = vld [vmem:[#allocation31_spill] sm:$0xff] }
 0x4a3   : > { %9537 = vmatprep.mubr.msk.f32.mxu1 %vm272_vm0, %v11444_v38  ;;  %v7030_v38 = vld [vmem:[#allocation2 + $0x19a] sm:$0xff] }
 0x4a6   : > { %9538 = vmatmul.mubr.msk.f32.gmra.mrb[16].mxu1 %vm272_vm0, %v11448_v41  ;;  %v12017_v41 = vld [vmem:[%s12129_s5] ss:$0 sm:$0xff] }
 0x4a7   : > { %9540 = vmatprep.mubr.msk.f32.mxu1 %vm272_vm0, %v11452_v11 }
 0x4aa   : > { %9541 = vmatmul.mubr.msk.f32.gmra.mrb[18].mxu1 %vm272_vm0, %v11456_v42 }
 0x4ab   : > { %9543 = vmatprep.mubr.msk.f32.mxu1 %vm272_vm0, %v11460_v39 }
 0x4ae   : > { %9544 = vmatmul.mubr.msk.f32.gmra.mrb[20].mxu1 %vm272_vm0, %v11464_v8 }
 0x4af   : > { %9546 = vmatprep.mubr.msk.f32.mxu1 %vm272_vm0, %v11468_v23 }
 0x4b2   : > { %9547 = vmatmul.mubr.msk.f32.gmra.mrb[22].mxu1 %vm272_vm0, %v11472_v37 }
 0x4b3   : > { %9549 = vmatprep.mubr.msk.f32.mxu1 %vm272_vm0, %v11476_v44 }
 0x4b6   : > { %9550 = vmatmul.mubr.msk.f32.gmra.mrb[24].mxu1 %vm272_vm0, %v11480_v45 }
 0x4b7   : > { %9552 = vmatprep.mubr.msk.f32.mxu1 %vm272_vm0, %v11484_v48 }
 0x4ba   : > { %9553 = vmatmul.mubr.msk.f32.gmra.mrb[26].mxu1 %vm272_vm0, %v11488_v55 }
 0x4bb   : > { %9555 = vmatprep.mubr.msk.f32.mxu1 %vm272_vm0, %v11685_v43 }
 0x4be   : > { %9556 = vmatmul.mubr.msk.f32.gmra.mrb[28].mxu1 %vm272_vm0, %v11689_v6 }
 0x4bf   : > { %9558 = vmatprep.mubr.msk.f32.mxu1 %vm272_vm0, %v6256_v12 }
 0x4c2   : > { %9559 = vmatmul.mubr.msk.f32.gmra.mrb[30].mxu1 %vm272_vm0, %v6257_v14 }
 0x4c3   : > { %9563 = vmatprep.mubr.msk.f32.mxu1 %vm272_vm0, %v6613_v62 }
 0x4c6   : > { %9564 = vmatmul.mubr.msk.f32.vlgmr.msra.gmra.mrb[0].mxu1 %vm272_vm0, %v6614_v2 }
 0x4c7   : > { %9612 = vmatpush3.msra.mxu1 %v8128_v59  ;;  %9566 = vmatprep.mubr.msk.f32.mxu1 %vm272_vm0, %v6615_v16 }
 0x4ca   : > { %9567 = vmatmul.mubr.msk.f32.gmra.mrb[2].mxu1 %vm272_vm0, %v6616_v18 }
 0x4cb   : > { %9569 = vmatprep.mubr.msk.f32.mxu1 %vm272_vm0, %v6617_v19 }
 0x4ce   : > { %9570 = vmatmul.mubr.msk.f32.gmra.mrb[4].mxu1 %vm272_vm0, %v6618_v20 }
 0x4cf   : > { %9572 = vmatprep.mubr.msk.f32.mxu1 %vm272_vm0, %v6619_v22 }
 0x4d2   : > { %9573 = vmatmul.mubr.msk.f32.gmra.mrb[6].mxu1 %vm272_vm0, %v6620_v27 }
 0x4d3   : > { %9575 = vmatprep.mubr.msk.f32.mxu1 %vm272_vm0, %v6621_v28 }
 0x4d6   : > { %9576 = vmatmul.mubr.msk.f32.gmra.mrb[8].mxu1 %vm272_vm0, %v6622_v29 }
 0x4d7   : > { %9578 = vmatprep.mubr.msk.f32.mxu1 %vm272_vm0, %v11263_v49  ;;  %v6643_v49 = vld [vmem:[#allocation2 + $0x199] sm:$0xff] }
 0x4da   : > { %9579 = vmatmul.mubr.msk.f32.gmra.mrb[10].mxu1 %vm272_vm0, %v11269_v53  ;;  %v6644_v53 = vld [vmem:[#allocation2 + $0x1a1] sm:$0xff] }
 0x4db   : > { %9581 = vmatprep.mubr.msk.f32.mxu1 %vm272_vm0, %v11275_v60  ;;  %v12356_v60 = vld [vmem:[#allocation8_spill] sm:$0xff] }
 0x4de   : > { %9582 = vmatmul.mubr.msk.f32.gmra.mrb[12].mxu1 %vm272_vm0, %v11281_v63  ;;  %v12357_v63 = vld [vmem:[#allocation9_spill] sm:$0xff] }
 0x4df   : > { %9584 = vmatprep.mubr.msk.f32.mxu1 %vm272_vm0, %v11287_v13  ;;  %v12358_v13 = vld [vmem:[#allocation10_spill] sm:$0xff] }
 0x4e2   : > { %9585 = vmatmul.mubr.msk.f32.gmra.mrb[14].mxu1 %vm272_vm0, %v11293_v3  ;;  %v12359_v3 = vld [vmem:[#allocation11_spill] sm:$0xff] }
 0x4e3   : > { %9587 = vmatprep.mubr.msk.f32.mxu1 %vm272_vm0, %v11299_v21  ;;  %v12360_v21 = vld [vmem:[#allocation12_spill] sm:$0xff] }
 0x4e6   : > { %9588 = vmatmul.mubr.msk.f32.gmra.mrb[16].mxu1 %vm272_vm0, %v11305_v25  ;;  %v12361_v25 = vld [vmem:[#allocation13_spill] sm:$0xff] }
 0x4e7   : > { %9590 = vmatprep.mubr.msk.f32.mxu1 %vm272_vm0, %v11311_v34  ;;  %v12362_v34 = vld [vmem:[#allocation14_spill] sm:$0xff] }
 0x4ea   : > { %9591 = vmatmul.mubr.msk.f32.gmra.mrb[18].mxu1 %vm272_vm0, %v11317_v40  ;;  %v12363_v40 = vld [vmem:[#allocation15_spill] sm:$0xff] }
 0x4eb   : > { %9593 = vmatprep.mubr.msk.f32.mxu1 %vm272_vm0, %v11323_v5  ;;  %v12364_v5 = vld [vmem:[#allocation16_spill] sm:$0xff] }
 0x4ee   : > { %9594 = vmatmul.mubr.msk.f32.gmra.mrb[20].mxu1 %vm272_vm0, %v11329_v52  ;;  %v12365_v52 = vld [vmem:[#allocation17_spill] sm:$0xff] }
 0x4ef   : > { %9596 = vmatprep.mubr.msk.f32.mxu1 %vm272_vm0, %v11335_v47  ;;  %v12366_v47 = vld [vmem:[#allocation18_spill] sm:$0xff] }
 0x4f2   : > { %9597 = vmatmul.mubr.msk.f32.gmra.mrb[22].mxu1 %vm272_vm0, %v11341_v50  ;;  %v12367_v50 = vld [vmem:[#allocation19_spill] sm:$0xff] }
 0x4f3   : > { %9599 = vmatprep.mubr.msk.f32.mxu1 %vm272_vm0, %v11346_v56  ;;  %v12368_v56 = vld [vmem:[#allocation20_spill] sm:$0xff] }
 0x4f6   : > { %9600 = vmatmul.mubr.msk.f32.gmra.mrb[24].mxu1 %vm272_vm0, %v11351_v9  ;;  %v12369_v9 = vld [vmem:[#allocation21_spill] sm:$0xff] }
 0x4f7   : > { %9602 = vmatprep.mubr.msk.f32.mxu1 %vm272_vm0, %v12328_v46 }
 0x4fa   : > { %9603 = vmatmul.mubr.msk.f32.gmra.mrb[26].mxu1 %vm272_vm0, %v12329_v15 }
 0x4fb   : > { %9605 = vmatprep.mubr.msk.f32.mxu1 %vm272_vm0, %v11756_v10 }
 0x4fe   : > { %9606 = vmatmul.mubr.msk.f32.gmra.mrb[28].mxu1 %vm272_vm0, %v11760_v17 }
 0x4ff   : > { %9608 = vmatprep.mubr.msk.f32.mxu1 %vm272_vm0, %v6643_v49 }
 0x502   : > { %9609 = vmatmul.mubr.msk.f32.gmra.mrb[30].mxu1 %vm272_vm0, %v6644_v53 }
 0x503   : > { %9613 = vmatprep.mubr.msk.f32.mxu1 %vm272_vm0, %v12332_v35 }
 0x506   : > { %9614 = vmatmul.mubr.msk.f32.vlgmr.msra.gmra.mrb[0].mxu1 %vm272_vm0, %v12356_v60 }
 0x507   : > { %9616 = vmatprep.mubr.msk.f32.mxu1 %vm272_vm0, %v12357_v63 }
 0x50a   : > { %9617 = vmatmul.mubr.msk.f32.gmra.mrb[2].mxu1 %vm272_vm0, %v12358_v13 }
 0x50b   : > { %9619 = vmatprep.mubr.msk.f32.mxu1 %vm272_vm0, %v12359_v3 }
 0x50e   : > { %9620 = vmatmul.mubr.msk.f32.gmra.mrb[4].mxu1 %vm272_vm0, %v12360_v21 }
 0x50f   : > { %9622 = vmatprep.mubr.msk.f32.mxu1 %vm272_vm0, %v12361_v25 }
 0x512   : > { %9623 = vmatmul.mubr.msk.f32.gmra.mrb[6].mxu1 %vm272_vm0, %v12362_v34 }
 0x513   : > { %9625 = vmatprep.mubr.msk.f32.mxu1 %vm272_vm0, %v12363_v40 }
 0x516   : > { %9626 = vmatmul.mubr.msk.f32.gmra.mrb[8].mxu1 %vm272_vm0, %v12364_v5 }
 0x517   : > { %9628 = vmatprep.mubr.msk.f32.mxu1 %vm272_vm0, %v12365_v52 }
 0x51a   : > { %9629 = vmatmul.mubr.msk.f32.gmra.mrb[10].mxu1 %vm272_vm0, %v12366_v47 }
 0x51b   : > { %9631 = vmatprep.mubr.msk.f32.mxu1 %vm272_vm0, %v12367_v50 }
 0x51e   : > { %9632 = vmatmul.mubr.msk.f32.gmra.mrb[12].mxu1 %vm272_vm0, %v12368_v56 }
 0x51f   : > { %9634 = vmatprep.mubr.msk.f32.mxu1 %vm272_vm0, %v12369_v9 }
 0x522   : > { %9635 = vmatmul.mubr.msk.f32.gmra.mrb[14].mxu1 %vm272_vm0, %v12347_v24 }
 0x523   : > { %9637 = vmatprep.mubr.msk.f32.mxu1 %vm272_vm0, %v12370_v30 }
 0x526   : > { %9638 = vmatmul.mubr.msk.f32.gmra.mrb[16].mxu1 %vm272_vm0, %v12349_v7 }
 0x527   : > { %9640 = vmatprep.mubr.msk.f32.mxu1 %vm272_vm0, %v12350_v51 }
 0x52a   : > { %9641 = vmatmul.mubr.msk.f32.gmra.mrb[18].mxu1 %vm272_vm0, %v12351_v58 }
 0x52b   : > { %9643 = vmatprep.mubr.msk.f32.mxu1 %vm272_vm0, %v12371_v31 }
 0x52e   : > { %9644 = vmatmul.mubr.msk.f32.gmra.mrb[20].mxu1 %vm272_vm0, %v12353_v57 }
 0x52f   : > { %9646 = vmatprep.mubr.msk.f32.mxu1 %vm272_vm0, %v12372_v36 }
 0x532   : > { %9647 = vmatmul.mubr.msk.f32.gmra.mrb[22].mxu1 %vm272_vm0, %v11601_v61  ;;  %v7031_v61 = vld [vmem:[#allocation2 + $0x1a2] sm:$0xff] }
 0x533   : > { %9649 = vmatprep.mubr.msk.f32.mxu1 %vm272_vm0, %v12355_v32 }
 0x536   : > { %9650 = vmatmul.mubr.msk.f32.gmra.mrb[24].mxu1 %vm272_vm0, %v11609_v54 }
 0x537   : > { %9652 = vmatprep.mubr.msk.f32.mxu1 %vm272_vm0, %v12373_v4 }
 0x53a   : > { %9653 = vmatmul.mubr.msk.f32.gmra.mrb[26].mxu1 %vm272_vm0, %v11617_v1 }
 0x53b   : > { %9655 = vmatprep.mubr.msk.f32.mxu1 %vm272_vm0, %v11827_v33 }
 0x53e   : > { %9656 = vmatmul.mubr.msk.f32.gmra.mrb[28].mxu1 %vm272_vm0, %v11831_v0 }
 0x53f   : > { %9658 = vmatprep.mubr.msk.f32.mxu1 %vm272_vm0, %v7030_v38 }
 0x542   : > { %9659 = vmatmul.mubr.msk.f32.gmra.mrb[30].mxu1 %vm272_vm0, %v7031_v61 }
 0x5d9   : > { %v9615_v11 = vpop.f32.mrb[0].mxu1 }
 0x5da   : > { %v7395_v42 = vadd.f32 %v9615_v11, %v12017_v41  ;;  %v7196_v39 = vpop.f32.mrb[1].mxu1 }
 0x5db   : > { %v7394_v8 = vadd.f32 %v12017_v41, %v7196_v39 }
 0x5dc   : > { %v7427_v23 = vmax.f32 %v7395_v42, 0.0 }
 0x5dd   : > { %v7426_v37 = vmax.f32 %v7394_v8, 0.0  ;;  %v9618_v44 = vpop.f32.mrb[2].mxu1 }
 0x5de   : > { %7459 = vst.msk [vmem:[%s12024_s28 + $0x8] sm:$0xff] %vm272_vm0, %v7427_v23  ;;  %v7397_v45 = vadd.f32 %v9618_v44, %v12017_v41  ;;  %v7206_v48 = vpop.f32.mrb[3].mxu1 }
 0x5df   : > { %7458 = vst.msk [vmem:[%s12024_s28] sm:$0xff] %vm272_vm0, %v7426_v37  ;;  %v7396_v55 = vadd.f32 %v12017_v41, %v7206_v48 }
 0x5e0   : > { %v7429_v54 = vmax.f32 %v7397_v45, 0.0 }
 0x5e1   : > { %v7428_v59 = vmax.f32 %v7396_v55, 0.0  ;;  %v9621_v1 = vpop.f32.mrb[4].mxu1 }
 0x5e2   : > { %7461 = vst.msk [vmem:[%s12024_s28 + $0x18] sm:$0xff] %vm272_vm0, %v7429_v54  ;;  %v7399_v43 = vadd.f32 %v9621_v1, %v12017_v41  ;;  %v7216_v6 = vpop.f32.mrb[5].mxu1 }
 0x5e3   : > { %7460 = vst.msk [vmem:[%s12024_s28 + $0x10] sm:$0xff] %vm272_vm0, %v7428_v59  ;;  %v7398_v46 = vadd.f32 %v12017_v41, %v7216_v6 }
 0x5e4   : > { %v7431_v15 = vmax.f32 %v7399_v43, 0.0 }
 0x5e5   : > { %v7430_v10 = vmax.f32 %v7398_v46, 0.0  ;;  %v9624_v17 = vpop.f32.mrb[6].mxu1 }
 0x5e6   : > { %7463 = vst.msk [vmem:[%s12024_s28 + $0x28] sm:$0xff] %vm272_vm0, %v7431_v15  ;;  %v7401_v26 = vadd.f32 %v9624_v17, %v12017_v41  ;;  %v7226_v35 = vpop.f32.mrb[7].mxu1 }
 0x5e7   : > { %7462 = vst.msk [vmem:[%s12024_s28 + $0x20] sm:$0xff] %vm272_vm0, %v7430_v10  ;;  %v7400_v7 = vadd.f32 %v12017_v41, %v7226_v35 }
 0x5e8   : > { %v7433_v51 = vmax.f32 %v7401_v26, 0.0 }
 0x5e9   : > { %v7432_v58 = vmax.f32 %v7400_v7, 0.0  ;;  %v9627_v33 = vpop.f32.mrb[8].mxu1 }
 0x5ea   : > { %7465 = vst.msk [vmem:[%s12024_s28 + $0x38] sm:$0xff] %vm272_vm0, %v7433_v51  ;;  %v7403_v57 = vadd.f32 %v9627_v33, %v12017_v41  ;;  %v7236_v0 = vpop.f32.mrb[9].mxu1 }
 0x5eb   : > { %7464 = vst.msk [vmem:[%s12024_s28 + $0x30] sm:$0xff] %vm272_vm0, %v7432_v58  ;;  %v7402_v24 = vadd.f32 %v12017_v41, %v7236_v0 }
 0x5ec   : > { %v7435_v32 = vmax.f32 %v7403_v57, 0.0 }
 0x5ed   : > { %v7434_v12 = vmax.f32 %v7402_v24, 0.0  ;;  %v9630_v14 = vpop.f32.mrb[10].mxu1 }
 0x5ee   : > { %7467 = vst.msk [vmem:[%s12024_s28 + $0x48] sm:$0xff] %vm272_vm0, %v7435_v32  ;;  %v7405_v62 = vadd.f32 %v9630_v14, %v12017_v41  ;;  %v7246_v2 = vpop.f32.mrb[11].mxu1 }
 0x5ef   : > { %7466 = vst.msk [vmem:[%s12024_s28 + $0x40] sm:$0xff] %vm272_vm0, %v7434_v12  ;;  %v7404_v16 = vadd.f32 %v12017_v41, %v7246_v2 }
 0x5f0   : > { %v7437_v18 = vmax.f32 %v7405_v62, 0.0 }
 0x5f1   : > { %v7436_v19 = vmax.f32 %v7404_v16, 0.0  ;;  %v9633_v20 = vpop.f32.mrb[12].mxu1 }
 0x5f2   : > { %7469 = vst.msk [vmem:[%s12024_s28 + $0x58] sm:$0xff] %vm272_vm0, %v7437_v18  ;;  %v7407_v22 = vadd.f32 %v9633_v20, %v12017_v41  ;;  %v7256_v27 = vpop.f32.mrb[13].mxu1 }
 0x5f3   : > { %7468 = vst.msk [vmem:[%s12024_s28 + $0x50] sm:$0xff] %vm272_vm0, %v7436_v19  ;;  %v7406_v28 = vadd.f32 %v12017_v41, %v7256_v27 }
 0x5f4   : > { %v7439_v29 = vmax.f32 %v7407_v22, 0.0 }
 0x5f5   : > { %v7438_v49 = vmax.f32 %v7406_v28, 0.0  ;;  %v9636_v53 = vpop.f32.mrb[14].mxu1 }
 0x5f6   : > { %7471 = vst.msk [vmem:[%s12024_s28 + $0x68] sm:$0xff] %vm272_vm0, %v7439_v29  ;;  %v7409_v60 = vadd.f32 %v9636_v53, %v12017_v41  ;;  %v7266_v63 = vpop.f32.mrb[15].mxu1 }
 0x5f7   : > { %7470 = vst.msk [vmem:[%s12024_s28 + $0x60] sm:$0xff] %vm272_vm0, %v7438_v49  ;;  %v7408_v13 = vadd.f32 %v12017_v41, %v7266_v63 }
 0x5f8   : > { %v7441_v3 = vmax.f32 %v7409_v60, 0.0 }
 0x5f9   : > { %v7440_v21 = vmax.f32 %v7408_v13, 0.0  ;;  %v9639_v25 = vpop.f32.mrb[16].mxu1 }
 0x5fa   : > { %7473 = vst.msk [vmem:[%s12024_s28 + $0x78] sm:$0xff] %vm272_vm0, %v7441_v3  ;;  %v7411_v34 = vadd.f32 %v9639_v25, %v12017_v41  ;;  %v7276_v40 = vpop.f32.mrb[17].mxu1 }
 0x5fb   : > { %7472 = vst.msk [vmem:[%s12024_s28 + $0x70] sm:$0xff] %vm272_vm0, %v7440_v21  ;;  %v7410_v5 = vadd.f32 %v12017_v41, %v7276_v40 }
 0x5fc   : > { %v7443_v52 = vmax.f32 %v7411_v34, 0.0 }
 0x5fd   : > { %v7442_v47 = vmax.f32 %v7410_v5, 0.0  ;;  %v9642_v50 = vpop.f32.mrb[18].mxu1 }
 0x5fe   : > { %7475 = vst.msk [vmem:[%s12024_s28 + $0x88] sm:$0xff] %vm272_vm0, %v7443_v52  ;;  %v7413_v56 = vadd.f32 %v9642_v50, %v12017_v41  ;;  %v7286_v9 = vpop.f32.mrb[19].mxu1 }
 0x5ff   : > { %7474 = vst.msk [vmem:[%s12024_s28 + $0x80] sm:$0xff] %vm272_vm0, %v7442_v47  ;;  %v7412_v30 = vadd.f32 %v12017_v41, %v7286_v9 }
 0x600   : > { %v7445_v31 = vmax.f32 %v7413_v56, 0.0 }
 0x601   : > { %v7444_v36 = vmax.f32 %v7412_v30, 0.0  ;;  %v9645_v4 = vpop.f32.mrb[20].mxu1 }
 0x602   : > { %7477 = vst.msk [vmem:[%s12024_s28 + $0x98] sm:$0xff] %vm272_vm0, %v7445_v31  ;;  %v7415_v38 = vadd.f32 %v9645_v4, %v12017_v41  ;;  %v7296_v61 = vpop.f32.mrb[21].mxu1 }
 0x603   : > { %7476 = vst.msk [vmem:[%s12024_s28 + $0x90] sm:$0xff] %vm272_vm0, %v7444_v36  ;;  %v7414_v11 = vadd.f32 %v12017_v41, %v7296_v61 }
 0x604   : > { %v7447_v42 = vmax.f32 %v7415_v38, 0.0 }
 0x605   : > { %v7446_v39 = vmax.f32 %v7414_v11, 0.0  ;;  %v9648_v8 = vpop.f32.mrb[22].mxu1 }
 0x606   : > { %7479 = vst.msk [vmem:[%s12024_s28 + $0xa8] sm:$0xff] %vm272_vm0, %v7447_v42  ;;  %v7417_v23 = vadd.f32 %v9648_v8, %v12017_v41  ;;  %v7306_v37 = vpop.f32.mrb[23].mxu1 }
 0x607   : > { %7478 = vst.msk [vmem:[%s12024_s28 + $0xa0] sm:$0xff] %vm272_vm0, %v7446_v39  ;;  %v7416_v44 = vadd.f32 %v12017_v41, %v7306_v37 }
 0x608   : > { %v7449_v45 = vmax.f32 %v7417_v23, 0.0 }
 0x609   : > { %v7448_v48 = vmax.f32 %v7416_v44, 0.0  ;;  %v9651_v55 = vpop.f32.mrb[24].mxu1 }
 0x60a   : > { %7481 = vst.msk [vmem:[%s12024_s28 + $0xb8] sm:$0xff] %vm272_vm0, %v7449_v45  ;;  %v7419_v54 = vadd.f32 %v9651_v55, %v12017_v41  ;;  %v7316_v59 = vpop.f32.mrb[25].mxu1 }
 0x60b   : > { %7480 = vst.msk [vmem:[%s12024_s28 + $0xb0] sm:$0xff] %vm272_vm0, %v7448_v48  ;;  %v7418_v1 = vadd.f32 %v12017_v41, %v7316_v59 }
 0x60c   : > { %v7451_v43 = vmax.f32 %v7419_v54, 0.0 }
 0x60d   : > { %v7450_v6 = vmax.f32 %v7418_v1, 0.0  ;;  %v9654_v46 = vpop.f32.mrb[26].mxu1 }
 0x60e   : > { %7483 = vst.msk [vmem:[%s12024_s28 + $0xc8] sm:$0xff] %vm272_vm0, %v7451_v43  ;;  %v7421_v15 = vadd.f32 %v9654_v46, %v12017_v41  ;;  %v7326_v10 = vpop.f32.mrb[27].mxu1 }
 0x60f   : > { %7482 = vst.msk [vmem:[%s12024_s28 + $0xc0] sm:$0xff] %vm272_vm0, %v7450_v6  ;;  %v7420_v17 = vadd.f32 %v12017_v41, %v7326_v10 }
 0x610   : > { %v7453_v26 = vmax.f32 %v7421_v15, 0.0 }
 0x611   : > { %v7452_v35 = vmax.f32 %v7420_v17, 0.0  ;;  %v9657_v7 = vpop.f32.mrb[28].mxu1 }
 0x612   : > { %7485 = vst.msk [vmem:[%s12024_s28 + $0xd8] sm:$0xff] %vm272_vm0, %v7453_v26  ;;  %v7423_v51 = vadd.f32 %v9657_v7, %v12017_v41  ;;  %v7336_v58 = vpop.f32.mrb[29].mxu1 }
 0x613   : > { %7484 = vst.msk [vmem:[%s12024_s28 + $0xd0] sm:$0xff] %vm272_vm0, %v7452_v35  ;;  %v7422_v33 = vadd.f32 %v12017_v41, %v7336_v58 }
 0x614   : > { %v7455_v57 = vmax.f32 %v7423_v51, 0.0 }
 0x615   : > { %v7454_v0 = vmax.f32 %v7422_v33, 0.0  ;;  %v9660_v24 = vpop.f32.mrb[30].mxu1 }
 0x616   : > { %7487 = vst.msk [vmem:[%s12024_s28 + $0xe8] sm:$0xff] %vm272_vm0, %v7455_v57  ;;  %v7425_v32 = vadd.f32 %v9660_v24, %v12017_v41  ;;  %v7346_v12 = vpop.f32.mrb[31].mxu1 }
 0x617   : > { %7486 = vst.msk [vmem:[%s12024_s28 + $0xe0] sm:$0xff] %vm272_vm0, %v7454_v0  ;;  %v7424_v14 = vadd.f32 %v12017_v41, %v7346_v12 }
 0x618   : > { %v7457_v62 = vmax.f32 %v7425_v32, 0.0 }
 0x619   : > { %v7456_v2 = vmax.f32 %v7424_v14, 0.0 }
 0x61a   : > { %7489 = vst.msk [vmem:[%s12024_s28 + $0xf8] sm:$0xff] %vm272_vm0, %v7457_v62 }
 0x61b   : > { %7488 = vst.msk [vmem:[%s12024_s28 + $0xf0] sm:$0xff] %vm272_vm0, %v7456_v2 }
 0x61c PF: > { %s16_s21 = sadd.s32 1, %s10188_s21  }
 0x61d   : > { %p13_p4 = scmp.ge.s32.totalorder %s16_s21, 4  }
 0x61f   :  { %15 = sbr.rel (!%p13_p4) target bundleno = 1 (0x1), region = 96 }

</bundles_post_ra>
